<compile_context>
chip_gen: v6e
topology: v6e:2x2x1
jax: 0.10.0
libtpu: 0.0.40
codegen_flags: <defaults>
</compile_context>

<pallas_src>
import functools

import jax
import jax.numpy as jnp
from jax.experimental import pallas as pl
from jax.experimental.pallas import tpu as pltpu

BN_EPS = 1e-3


def _round_up(x, m):
    return (x + m - 1) // m * m


# ----------------------------- Pallas kernels ------------------------------ #

def _matmul_bias_relu_kernel(a_ref, w_ref, b_ref, o_ref, acc_ref, *, tk):
    """One (tm, tn) output tile of ReLU(A @ W + b).

    a_ref : [tm, tk]  bf16 im2col patches (current k-chunk)
    w_ref : [Kp, tn]  bf16 BN-folded weights, whole K resident in VMEM
    b_ref : [1, tn]   f32  BN-folded bias
    acc_ref: [tm, tn] f32  accumulator scratch
    """
    k = pl.program_id(2)

    @pl.when(k == 0)
    def _():
        acc_ref[...] = jnp.zeros_like(acc_ref)

    k0 = pl.multiple_of(k * tk, tk)
    acc_ref[...] += jnp.dot(a_ref[...], w_ref[pl.ds(k0, tk), :],
                            preferred_element_type=jnp.float32)

    @pl.when(k == pl.num_programs(2) - 1)
    def _():
        o_ref[...] = jnp.maximum(acc_ref[...] + b_ref[...], 0.0).astype(o_ref.dtype)


def _maxpool_kernel(p_ref, o_ref):
    # p_ref: [T, tm, C] pooling taps; elementwise max over the tap axis (VPU).
    o_ref[...] = jnp.max(p_ref[...], axis=0)


# --------------------------- Pallas call wrappers --------------------------- #

def _pallas_matmul_bias_relu(a, w, b, out_dtype):
    """ReLU(A @ W + b). A:[M,K], W:[K,N], b:[1,N]. bf16 operands, f32 accum."""
    M, K = a.shape
    Kw, N = w.shape
    assert K == Kw

    tm = min(512, _round_up(M, 8))
    Mp = _round_up(M, tm)

    Np = _round_up(N, 128)
    tn = 256 if Np % 256 == 0 else 128

    Kp = _round_up(K, 128)
    if Kp <= 2048:
        tk = Kp                    # whole K in one step for every layer here
    else:
        tk = next(t for t in (512, 256, 128) if Kp % t == 0)

    a_p = a.astype(jnp.bfloat16)
    if (Mp, Kp) != (M, K):
        a_p = jnp.pad(a_p, ((0, Mp - M), (0, Kp - K)))
    w_p = w.astype(jnp.bfloat16)
    if (Kp, Np) != (K, N):
        w_p = jnp.pad(w_p, ((0, Kp - K), (0, Np - N)))
    b_p = b.astype(jnp.float32)
    if Np != N:
        b_p = jnp.pad(b_p, ((0, 0), (0, Np - N)))

    grid = (Np // tn, Mp // tm, Kp // tk)   # (N-tile, M-tile, K-tile)

    out = pl.pallas_call(
        functools.partial(_matmul_bias_relu_kernel, tk=tk),
        out_shape=jax.ShapeDtypeStruct((Mp, Np), out_dtype),
        grid_spec=pltpu.PrefetchScalarGridSpec(
            num_scalar_prefetch=0,
            grid=grid,
            in_specs=[
                pl.BlockSpec((tm, tk), lambda j, i, k: (i, k)),
                pl.BlockSpec((Kp, tn), lambda j, i, k: (0, j)),   # W K-resident
                pl.BlockSpec((1, tn), lambda j, i, k: (0, j)),
            ],
            out_specs=pl.BlockSpec((tm, tn), lambda j, i, k: (i, j)),
            scratch_shapes=[pltpu.VMEM((tm, tn), jnp.float32)],
        ),
        compiler_params=pltpu.CompilerParams(
            dimension_semantics=("parallel", "parallel", "arbitrary"),
            vmem_limit_bytes=32 * 1024 * 1024,
        ),
    )(a_p, w_p, b_p)
    if (Mp, Np) != (M, N):
        out = out[:M, :N]
    return out


def _pallas_maxpool(patches):
    """Max over taps. patches: [T, M, C] f32 -> [M, C] f32."""
    T, M, C = patches.shape
    tm = min(512, _round_up(M, 8))
    Mp = _round_up(M, tm)
    if Mp != M:
        patches = jnp.pad(patches, ((0, 0), (0, Mp - M), (0, 0)))

    out = pl.pallas_call(
        _maxpool_kernel,
        out_shape=jax.ShapeDtypeStruct((Mp, C), patches.dtype),
        grid_spec=pltpu.PrefetchScalarGridSpec(
            num_scalar_prefetch=0,
            grid=(Mp // tm,),
            in_specs=[pl.BlockSpec((T, tm, C), lambda i: (0, i, 0))],
            out_specs=pl.BlockSpec((tm, C), lambda i: (i, 0)),
        ),
        compiler_params=pltpu.CompilerParams(
            dimension_semantics=("parallel",),
            vmem_limit_bytes=32 * 1024 * 1024,
        ),
    )(patches)
    return out[:M] if Mp != M else out


# ------------------------------- JAX glue ---------------------------------- #

def _extract_patches(x_nhwc, kh, kw, sh, sw, ph, pw):
    """im2col: returns patches [N, Ho, Wo, kh*kw, C] (tap-major, channel-minor)."""
    x = jnp.pad(x_nhwc, ((0, 0), (ph, ph), (pw, pw), (0, 0)))
    N, H, W, C = x.shape
    Ho = (H - kh) // sh + 1
    Wo = (W - kw) // sw + 1
    cols = []
    for i in range(kh):
        for j in range(kw):
            cols.append(x[:, i:i + sh * (Ho - 1) + 1:sh,
                          j:j + sw * (Wo - 1) + 1:sw, :])
    patches = jnp.stack(cols, axis=3)  # [N, Ho, Wo, kh*kw, C]
    return patches, (N, Ho, Wo, C)


def _fold_bn(p):
    """BN-folded weight matrix [kh*kw*Cin, Cout] and bias [1, Cout]."""
    w = p["w"]                      # [Cout, Cin, kh, kw]  (PyTorch layout)
    Cout, Cin, kh, kw = w.shape
    scale = p["gamma"] / jnp.sqrt(p["var"] + BN_EPS)
    bias = p["beta"] - p["mean"] * scale
    w_mat = jnp.transpose(w, (2, 3, 1, 0)).reshape(kh * kw * Cin, Cout)
    return w_mat * scale[None, :], bias.reshape(1, Cout), (kh, kw)


def conv_bn_relu(x_nhwc, p, stride=(1, 1), padding=(0, 0), out_dtype=jnp.bfloat16):
    """Conv2d(bias=False) + BatchNorm2d(eval, eps=1e-3) + ReLU as one Pallas matmul."""
    w_mat, bias, (kh, kw) = _fold_bn(p)
    patches, (N, Ho, Wo, C) = _extract_patches(
        x_nhwc.astype(jnp.bfloat16), kh, kw,
        stride[0], stride[1], padding[0], padding[1])
    a = patches.reshape(N * Ho * Wo, kh * kw * C)
    out = _pallas_matmul_bias_relu(a, w_mat, bias, out_dtype)
    return out.reshape(N, Ho, Wo, -1)


def fused_1x1_pair(x_nhwc, p_a, p_b, out_dtype=jnp.bfloat16):
    """Two parallel 1x1 Conv+BN+ReLU on the same input as ONE fused matmul."""
    N, H, W, Cin = x_nhwc.shape
    wa, ba, _ = _fold_bn(p_a)
    wb, bb, _ = _fold_bn(p_b)
    na = wa.shape[1]
    w = jnp.concatenate([wa, wb], axis=1)
    b = jnp.concatenate([ba, bb], axis=1)
    a = x_nhwc.astype(jnp.bfloat16).reshape(N * H * W, Cin)
    out = _pallas_matmul_bias_relu(a, w, b, out_dtype)
    oa = out[:, :na].reshape(N, H, W, na)
    ob = out[:, na:].reshape(N, H, W, -1)
    return oa, ob


def max_pool_3x3_s2(x_nhwc):
    N, H, W, C = x_nhwc.shape
    Ho = (H - 3) // 2 + 1
    Wo = (W - 3) // 2 + 1
    M = N * Ho * Wo
    taps = [x_nhwc[:, i:i + 2 * (Ho - 1) + 1:2,
                   j:j + 2 * (Wo - 1) + 1:2, :].reshape(M, C)
            for i in range(3) for j in range(3)]
    p = jnp.stack(taps, axis=0)  # [9, M, C]
    out = _pallas_maxpool(p)
    return out.reshape(N, Ho, Wo, C)


def inception_d_forward(x_nchw, params):
    x = jnp.transpose(x_nchw, (0, 2, 3, 1))  # NCHW -> NHWC

    # Both branch heads are 1x1 convs on the same input -> single fused matmul.
    b3, b7 = fused_1x1_pair(x, params["b3x3_1"], params["b7_1"],
                            out_dtype=jnp.bfloat16)

    b3 = conv_bn_relu(b3, params["b3x3_2"], stride=(2, 2),
                      out_dtype=jnp.float32)                     # 3x3 s2 (final)

    b7 = conv_bn_relu(b7, params["b7_2"], padding=(0, 3),
                      out_dtype=jnp.bfloat16)                    # 1x7
    b7 = conv_bn_relu(b7, params["b7_3"], padding=(3, 0),
                      out_dtype=jnp.bfloat16)                    # 7x1
    b7 = conv_bn_relu(b7, params["b7_4"], stride=(2, 2),
                      out_dtype=jnp.float32)                     # 3x3 s2 (final)

    bp = max_pool_3x3_s2(x)                                      # maxpool 3x3 s2

    out = jnp.concatenate([b3, b7, bp], axis=-1)                 # channel concat
    return jnp.transpose(out, (0, 3, 1, 2))                      # NHWC -> NCHW


# ------------------------- deterministic parameters ------------------------ #

def _init_conv_bn(key, cin, cout, kh, kw):
    kw_, kg, kb, km, kv = jax.random.split(key, 5)
    return dict(
        w=jax.random.normal(kw_, (cout, cin, kh, kw), jnp.float32) * 0.05,
        gamma=jax.random.uniform(kg, (cout,), jnp.float32, 0.5, 1.5),
        beta=jax.random.normal(kb, (cout,), jnp.float32) * 0.1,
        mean=jax.random.normal(km, (cout,), jnp.float32) * 0.1,
        var=jax.random.uniform(kv, (cout,), jnp.float32, 0.5, 1.5),
    )


def init_inception_d_params(key, in_channels):
    keys = jax.random.split(key, 6)
    return {
        "b3x3_1": _init_conv_bn(keys[0], in_channels, 192, 1, 1),
        "b3x3_2": _init_conv_bn(keys[1], 192, 320, 3, 3),
        "b7_1":   _init_conv_bn(keys[2], in_channels, 192, 1, 1),
        "b7_2":   _init_conv_bn(keys[3], 192, 192, 1, 7),
        "b7_3":   _init_conv_bn(keys[4], 192, 192, 7, 1),
        "b7_4":   _init_conv_bn(keys[5], 192, 192, 3, 3),
    }


# ---------------------------------- main ----------------------------------- #

if __name__ == "__main__":
    key = jax.random.PRNGKey(0)
    k_x, k_p = jax.random.split(key)

    batch, in_channels, spatial = 2, 16, 9
    x = jax.random.normal(k_x, (batch, in_channels, spatial, spatial), jnp.float32)
    params = init_inception_d_params(k_p, in_channels)

    out = jax.jit(inception_d_forward)(x, params)
    out = jax.block_until_ready(out)

    # Expected: NCHW, channels = 320 + 192 + in_channels, spatial (9-3)//2+1 = 4
    expected = (batch, 320 + 192 + in_channels, 4, 4)
    assert out.shape == expected, (out.shape, expected)
    assert bool(jnp.all(jnp.isfinite(out)))
    print("KERNEL_OK")
</pallas_src>

<mosaic_0001>
module attributes {stable_mosaic.version = 11 : i64} {
  func.func @_matmul_bias_relu_kernel(%arg0: i32, %arg1: i32, %arg2: i32, %arg3: memref<168x128xbf16, #tpu.memory_space<vmem>>, %arg4: memref<128x128xbf16, #tpu.memory_space<vmem>>, %arg5: memref<1x128xf32, #tpu.memory_space<vmem>>, %arg6: memref<168x128xbf16, #tpu.memory_space<vmem>>, %arg7: memref<168x128xf32, #tpu.memory_space<vmem>>) attributes {dimension_semantics = [#tpu.dimension_semantics<parallel>, #tpu.dimension_semantics<parallel>, #tpu.dimension_semantics<arbitrary>], iteration_bounds = array<i64: 3, 1, 1>, scalar_prefetch = 0 : i64, scratch_operands = 1 : i64, tpu.core_type = #tpu.core_type<tc>, window_params = [{transform_indices = @transform_0, window_bounds = array<i64: 168, 128>}, {transform_indices = @transform_1, window_bounds = array<i64: 128, 128>}, {transform_indices = @transform_2, window_bounds = array<i64: 1, 128>}, {transform_indices = @transform_3, window_bounds = array<i64: 168, 128>}]} {
    %c0_i32 = arith.constant 0 : i32
    %0 = arith.cmpi eq, %arg2, %c0_i32 : i32
    %1 = arith.extui %0 : i1 to i32
    %c0_i32_0 = arith.constant 0 : i32
    %2 = arith.cmpi ne, %1, %c0_i32_0 : i32
    scf.if %2 {
      %cst_9 = arith.constant 0.000000e+00 : f32
      %15 = vector.broadcast %cst_9 : f32 to vector<168x128xf32>
      %c0_10 = arith.constant 0 : index
      %c0_11 = arith.constant 0 : index
      %16 = vector.load %arg7[%c0_10, %c0_11] : memref<168x128xf32, #tpu.memory_space<vmem>>, vector<168x128xf32>
      tpu.vector_store %arg7[%c0_10, %c0_11], %15 {strides = array<i32>} : memref<168x128xf32, #tpu.memory_space<vmem>>, vector<168x128xf32>,
    } else {
    }
    %c128_i32 = arith.constant 128 : i32
    %3 = arith.muli %arg2, %c128_i32 : i32
    %4 = tpu.assume_multiple %3, 128 : i32
    %c0 = arith.constant 0 : index
    %c0_1 = arith.constant 0 : index
    %5 = vector.load %arg7[%c0, %c0_1] : memref<168x128xf32, #tpu.memory_space<vmem>>, vector<168x128xf32>
    %c0_2 = arith.constant 0 : index
    %c0_3 = arith.constant 0 : index
    %6 = vector.load %arg3[%c0_2, %c0_3] : memref<168x128xbf16, #tpu.memory_space<vmem>>, vector<168x128xbf16>
    %7 = arith.index_cast %4 : i32 to index
    %c0_4 = arith.constant 0 : index
    %8 = vector.load %arg4[%7, %c0_4] : memref<128x128xbf16, #tpu.memory_space<vmem>>, vector<128x128xbf16>
    %cst = arith.constant dense<0.000000e+00> : vector<168x128xf32>
    %9 = tpu.matmul %6, %8, %cst {dimension_numbers = #tpu.dot_dimension_numbers<[1], [0], [0], [1], [0, 0, 1, 1], [], []>} : vector<168x128xbf16>, vector<128x128xbf16>, vector<168x128xf32> -> vector<168x128xf32>
    %10 = arith.addf %5, %9 : vector<168x128xf32>
    %c0_5 = arith.constant 0 : index
    %c0_6 = arith.constant 0 : index
    %11 = vector.load %arg7[%c0_5, %c0_6] : memref<168x128xf32, #tpu.memory_space<vmem>>, vector<168x128xf32>
    tpu.vector_store %arg7[%c0_5, %c0_6], %10 {strides = array<i32>} : memref<168x128xf32, #tpu.memory_space<vmem>>, vector<168x128xf32>,
    %c0_i32_7 = arith.constant 0 : i32
    %12 = arith.cmpi eq, %arg2, %c0_i32_7 : i32
    %13 = arith.extui %12 : i1 to i32
    %c0_i32_8 = arith.constant 0 : i32
    %14 = arith.cmpi ne, %13, %c0_i32_8 : i32
    scf.if %14 {
      %c0_9 = arith.constant 0 : index
      %c0_10 = arith.constant 0 : index
      %15 = vector.load %arg7[%c0_9, %c0_10] : memref<168x128xf32, #tpu.memory_space<vmem>>, vector<168x128xf32>
      %c0_11 = arith.constant 0 : index
      %c0_12 = arith.constant 0 : index
      %16 = vector.load %arg5[%c0_11, %c0_12] : memref<1x128xf32, #tpu.memory_space<vmem>>, vector<1x128xf32>
      %17 = vector.broadcast %16 : vector<1x128xf32> to vector<168x128xf32>
      %18 = arith.addf %15, %17 : vector<168x128xf32>
      %cst_13 = arith.constant 0.000000e+00 : f32
      %19 = vector.broadcast %cst_13 : f32 to vector<168x128xf32>
      %20 = arith.maximumf %18, %19 : vector<168x128xf32>
      %21 = arith.truncf %20 : vector<168x128xf32> to vector<168x128xbf16>
      %c0_14 = arith.constant 0 : index
      %c0_15 = arith.constant 0 : index
      %22 = vector.load %arg6[%c0_14, %c0_15] : memref<168x128xbf16, #tpu.memory_space<vmem>>, vector<168x128xbf16>
      tpu.vector_store %arg6[%c0_14, %c0_15], %21 {strides = array<i32>} : memref<168x128xbf16, #tpu.memory_space<vmem>>, vector<168x128xbf16>,
    } else {
    }
    return
  }
  func.func @transform_0(%arg0: i32, %arg1: i32, %arg2: i32) -> (i32, i32) {
    %c0_i32 = arith.constant 0 : i32
    return %arg1, %arg2 : i32, i32
  }
  func.func @transform_1(%arg0: i32, %arg1: i32, %arg2: i32) -> (i32, i32) {
    %c0_i32 = arith.constant 0 : i32
    %c0_i32_0 = arith.constant 0 : i32
    return %c0_i32, %arg0 : i32, i32
  }
  func.func @transform_2(%arg0: i32, %arg1: i32, %arg2: i32) -> (i32, i32) {
    %c0_i32 = arith.constant 0 : i32
    %c0_i32_0 = arith.constant 0 : i32
    return %c0_i32, %arg0 : i32, i32
  }
  func.func @transform_3(%arg0: i32, %arg1: i32, %arg2: i32) -> (i32, i32) {
    %c0_i32 = arith.constant 0 : i32
    return %arg1, %arg0 : i32, i32
  }
}

module attributes {stable_mosaic.version = 11 : i64} {
  func.func @_matmul_bias_relu_kernel(%arg0: i32, %arg1: i32, %arg2: i32, %arg3: memref<168x1408xbf16, #tpu.memory_space<vmem>>, %arg4: memref<1408x256xbf16, #tpu.memory_space<vmem>>, %arg5: memref<1x256xf32, #tpu.memory_space<vmem>>, %arg6: memref<168x256xbf16, #tpu.memory_space<vmem>>, %arg7: memref<168x256xf32, #tpu.memory_space<vmem>>) attributes {dimension_semantics = [#tpu.dimension_semantics<parallel>, #tpu.dimension_semantics<parallel>, #tpu.dimension_semantics<arbitrary>], iteration_bounds = array<i64: 1, 1, 1>, scalar_prefetch = 0 : i64, scratch_operands = 1 : i64, tpu.core_type = #tpu.core_type<tc>, window_params = [{transform_indices = @transform_0, window_bounds = array<i64: 168, 1408>}, {transform_indices = @transform_1, window_bounds = array<i64: 1408, 256>}, {transform_indices = @transform_2, window_bounds = array<i64: 1, 256>}, {transform_indices = @transform_3, window_bounds = array<i64: 168, 256>}]} {
    %c0_i32 = arith.constant 0 : i32
    %0 = arith.cmpi eq, %arg2, %c0_i32 : i32
    %1 = arith.extui %0 : i1 to i32
    %c0_i32_0 = arith.constant 0 : i32
    %2 = arith.cmpi ne, %1, %c0_i32_0 : i32
    scf.if %2 {
      %cst_9 = arith.constant 0.000000e+00 : f32
      %15 = vector.broadcast %cst_9 : f32 to vector<168x256xf32>
      %c0_10 = arith.constant 0 : index
      %c0_11 = arith.constant 0 : index
      %16 = vector.load %arg7[%c0_10, %c0_11] : memref<168x256xf32, #tpu.memory_space<vmem>>, vector<168x256xf32>
      tpu.vector_store %arg7[%c0_10, %c0_11], %15 {strides = array<i32>} : memref<168x256xf32, #tpu.memory_space<vmem>>, vector<168x256xf32>,
    } else {
    }
    %c1408_i32 = arith.constant 1408 : i32
    %3 = arith.muli %arg2, %c1408_i32 : i32
    %4 = tpu.assume_multiple %3, 1408 : i32
    %c0 = arith.constant 0 : index
    %c0_1 = arith.constant 0 : index
    %5 = vector.load %arg7[%c0, %c0_1] : memref<168x256xf32, #tpu.memory_space<vmem>>, vector<168x256xf32>
    %c0_2 = arith.constant 0 : index
    %c0_3 = arith.constant 0 : index
    %6 = vector.load %arg3[%c0_2, %c0_3] : memref<168x1408xbf16, #tpu.memory_space<vmem>>, vector<168x1408xbf16>
    %7 = arith.index_cast %4 : i32 to index
    %c0_4 = arith.constant 0 : index
    %8 = vector.load %arg4[%7, %c0_4] : memref<1408x256xbf16, #tpu.memory_space<vmem>>, vector<1408x256xbf16>
    %cst = arith.constant dense<0.000000e+00> : vector<168x256xf32>
    %9 = tpu.matmul %6, %8, %cst {dimension_numbers = #tpu.dot_dimension_numbers<[1], [0], [0], [1], [0, 0, 1, 1], [], []>} : vector<168x1408xbf16>, vector<1408x256xbf16>, vector<168x256xf32> -> vector<168x256xf32>
    %10 = arith.addf %5, %9 : vector<168x256xf32>
    %c0_5 = arith.constant 0 : index
    %c0_6 = arith.constant 0 : index
    %11 = vector.load %arg7[%c0_5, %c0_6] : memref<168x256xf32, #tpu.memory_space<vmem>>, vector<168x256xf32>
    tpu.vector_store %arg7[%c0_5, %c0_6], %10 {strides = array<i32>} : memref<168x256xf32, #tpu.memory_space<vmem>>, vector<168x256xf32>,
    %c0_i32_7 = arith.constant 0 : i32
    %12 = arith.cmpi eq, %arg2, %c0_i32_7 : i32
    %13 = arith.extui %12 : i1 to i32
    %c0_i32_8 = arith.constant 0 : i32
    %14 = arith.cmpi ne, %13, %c0_i32_8 : i32
    scf.if %14 {
      %c0_9 = arith.constant 0 : index
      %c0_10 = arith.constant 0 : index
      %15 = vector.load %arg7[%c0_9, %c0_10] : memref<168x256xf32, #tpu.memory_space<vmem>>, vector<168x256xf32>
      %c0_11 = arith.constant 0 : index
      %c0_12 = arith.constant 0 : index
      %16 = vector.load %arg5[%c0_11, %c0_12] : memref<1x256xf32, #tpu.memory_space<vmem>>, vector<1x256xf32>
      %17 = vector.broadcast %16 : vector<1x256xf32> to vector<168x256xf32>
      %18 = arith.addf %15, %17 : vector<168x256xf32>
      %cst_13 = arith.constant 0.000000e+00 : f32
      %19 = vector.broadcast %cst_13 : f32 to vector<168x256xf32>
      %20 = arith.maximumf %18, %19 : vector<168x256xf32>
      %21 = arith.truncf %20 : vector<168x256xf32> to vector<168x256xbf16>
      %c0_14 = arith.constant 0 : index
      %c0_15 = arith.constant 0 : index
      %22 = vector.load %arg6[%c0_14, %c0_15] : memref<168x256xbf16, #tpu.memory_space<vmem>>, vector<168x256xbf16>
      tpu.vector_store %arg6[%c0_14, %c0_15], %21 {strides = array<i32>} : memref<168x256xbf16, #tpu.memory_space<vmem>>, vector<168x256xbf16>,
    } else {
    }
    return
  }
  func.func @transform_0(%arg0: i32, %arg1: i32, %arg2: i32) -> (i32, i32) {
    %c0_i32 = arith.constant 0 : i32
    return %arg1, %arg2 : i32, i32
  }
  func.func @transform_1(%arg0: i32, %arg1: i32, %arg2: i32) -> (i32, i32) {
    %c0_i32 = arith.constant 0 : i32
    %c0_i32_0 = arith.constant 0 : i32
    return %c0_i32, %arg0 : i32, i32
  }
  func.func @transform_2(%arg0: i32, %arg1: i32, %arg2: i32) -> (i32, i32) {
    %c0_i32 = arith.constant 0 : i32
    %c0_i32_0 = arith.constant 0 : i32
    return %c0_i32, %arg0 : i32, i32
  }
  func.func @transform_3(%arg0: i32, %arg1: i32, %arg2: i32) -> (i32, i32) {
    %c0_i32 = arith.constant 0 : i32
    return %arg1, %arg0 : i32, i32
  }
}

module attributes {stable_mosaic.version = 11 : i64} {
  func.func @_matmul_bias_relu_kernel(%arg0: i32, %arg1: i32, %arg2: i32, %arg3: memref<32x1792xbf16, #tpu.memory_space<vmem>>, %arg4: memref<1792x256xbf16, #tpu.memory_space<vmem>>, %arg5: memref<1x256xf32, #tpu.memory_space<vmem>>, %arg6: memref<32x256xf32, #tpu.memory_space<vmem>>, %arg7: memref<32x256xf32, #tpu.memory_space<vmem>>) attributes {dimension_semantics = [#tpu.dimension_semantics<parallel>, #tpu.dimension_semantics<parallel>, #tpu.dimension_semantics<arbitrary>], iteration_bounds = array<i64: 1, 1, 1>, scalar_prefetch = 0 : i64, scratch_operands = 1 : i64, tpu.core_type = #tpu.core_type<tc>, window_params = [{transform_indices = @transform_0, window_bounds = array<i64: 32, 1792>}, {transform_indices = @transform_1, window_bounds = array<i64: 1792, 256>}, {transform_indices = @transform_2, window_bounds = array<i64: 1, 256>}, {transform_indices = @transform_3, window_bounds = array<i64: 32, 256>}]} {
    %c0_i32 = arith.constant 0 : i32
    %0 = arith.cmpi eq, %arg2, %c0_i32 : i32
    %1 = arith.extui %0 : i1 to i32
    %c0_i32_0 = arith.constant 0 : i32
    %2 = arith.cmpi ne, %1, %c0_i32_0 : i32
    scf.if %2 {
      %cst_9 = arith.constant 0.000000e+00 : f32
      %15 = vector.broadcast %cst_9 : f32 to vector<32x256xf32>
      %c0_10 = arith.constant 0 : index
      %c0_11 = arith.constant 0 : index
      %16 = vector.load %arg7[%c0_10, %c0_11] : memref<32x256xf32, #tpu.memory_space<vmem>>, vector<32x256xf32>
      tpu.vector_store %arg7[%c0_10, %c0_11], %15 {strides = array<i32>} : memref<32x256xf32, #tpu.memory_space<vmem>>, vector<32x256xf32>,
    } else {
    }
    %c1792_i32 = arith.constant 1792 : i32
    %3 = arith.muli %arg2, %c1792_i32 : i32
    %4 = tpu.assume_multiple %3, 1792 : i32
    %c0 = arith.constant 0 : index
    %c0_1 = arith.constant 0 : index
    %5 = vector.load %arg7[%c0, %c0_1] : memref<32x256xf32, #tpu.memory_space<vmem>>, vector<32x256xf32>
    %c0_2 = arith.constant 0 : index
    %c0_3 = arith.constant 0 : index
    %6 = vector.load %arg3[%c0_2, %c0_3] : memref<32x1792xbf16, #tpu.memory_space<vmem>>, vector<32x1792xbf16>
    %7 = arith.index_cast %4 : i32 to index
    %c0_4 = arith.constant 0 : index
    %8 = vector.load %arg4[%7, %c0_4] : memref<1792x256xbf16, #tpu.memory_space<vmem>>, vector<1792x256xbf16>
    %cst = arith.constant dense<0.000000e+00> : vector<32x256xf32>
    %9 = tpu.matmul %6, %8, %cst {dimension_numbers = #tpu.dot_dimension_numbers<[1], [0], [0], [1], [0, 0, 1, 1], [], []>} : vector<32x1792xbf16>, vector<1792x256xbf16>, vector<32x256xf32> -> vector<32x256xf32>
    %10 = arith.addf %5, %9 : vector<32x256xf32>
    %c0_5 = arith.constant 0 : index
    %c0_6 = arith.constant 0 : index
    %11 = vector.load %arg7[%c0_5, %c0_6] : memref<32x256xf32, #tpu.memory_space<vmem>>, vector<32x256xf32>
    tpu.vector_store %arg7[%c0_5, %c0_6], %10 {strides = array<i32>} : memref<32x256xf32, #tpu.memory_space<vmem>>, vector<32x256xf32>,
    %c0_i32_7 = arith.constant 0 : i32
    %12 = arith.cmpi eq, %arg2, %c0_i32_7 : i32
    %13 = arith.extui %12 : i1 to i32
    %c0_i32_8 = arith.constant 0 : i32
    %14 = arith.cmpi ne, %13, %c0_i32_8 : i32
    scf.if %14 {
      %c0_9 = arith.constant 0 : index
      %c0_10 = arith.constant 0 : index
      %15 = vector.load %arg7[%c0_9, %c0_10] : memref<32x256xf32, #tpu.memory_space<vmem>>, vector<32x256xf32>
      %c0_11 = arith.constant 0 : index
      %c0_12 = arith.constant 0 : index
      %16 = vector.load %arg5[%c0_11, %c0_12] : memref<1x256xf32, #tpu.memory_space<vmem>>, vector<1x256xf32>
      %17 = vector.broadcast %16 : vector<1x256xf32> to vector<32x256xf32>
      %18 = arith.addf %15, %17 : vector<32x256xf32>
      %cst_13 = arith.constant 0.000000e+00 : f32
      %19 = vector.broadcast %cst_13 : f32 to vector<32x256xf32>
      %20 = arith.maximumf %18, %19 : vector<32x256xf32>
      %c0_14 = arith.constant 0 : index
      %c0_15 = arith.constant 0 : index
      %21 = vector.load %arg6[%c0_14, %c0_15] : memref<32x256xf32, #tpu.memory_space<vmem>>, vector<32x256xf32>
      tpu.vector_store %arg6[%c0_14, %c0_15], %20 {strides = array<i32>} : memref<32x256xf32, #tpu.memory_space<vmem>>, vector<32x256xf32>,
    } else {
    }
    return
  }
  func.func @transform_0(%arg0: i32, %arg1: i32, %arg2: i32) -> (i32, i32) {
    %c0_i32 = arith.constant 0 : i32
    return %arg1, %arg2 : i32, i32
  }
  func.func @transform_1(%arg0: i32, %arg1: i32, %arg2: i32) -> (i32, i32) {
    %c0_i32 = arith.constant 0 : i32
    %c0_i32_0 = arith.constant 0 : i32
    return %c0_i32, %arg0 : i32, i32
  }
  func.func @transform_2(%arg0: i32, %arg1: i32, %arg2: i32) -> (i32, i32) {
    %c0_i32 = arith.constant 0 : i32
    %c0_i32_0 = arith.constant 0 : i32
    return %c0_i32, %arg0 : i32, i32
  }
  func.func @transform_3(%arg0: i32, %arg1: i32, %arg2: i32) -> (i32, i32) {
    %c0_i32 = arith.constant 0 : i32
    return %arg1, %arg0 : i32, i32
  }
}

module attributes {stable_mosaic.version = 11 : i64} {
  func.func @_matmul_bias_relu_kernel(%arg0: i32, %arg1: i32, %arg2: i32, %arg3: memref<32x1792xbf16, #tpu.memory_space<vmem>>, %arg4: memref<1792x128xbf16, #tpu.memory_space<vmem>>, %arg5: memref<1x128xf32, #tpu.memory_space<vmem>>, %arg6: memref<32x128xf32, #tpu.memory_space<vmem>>, %arg7: memref<32x128xf32, #tpu.memory_space<vmem>>) attributes {dimension_semantics = [#tpu.dimension_semantics<parallel>, #tpu.dimension_semantics<parallel>, #tpu.dimension_semantics<arbitrary>], iteration_bounds = array<i64: 3, 1, 1>, scalar_prefetch = 0 : i64, scratch_operands = 1 : i64, tpu.core_type = #tpu.core_type<tc>, window_params = [{transform_indices = @transform_0, window_bounds = array<i64: 32, 1792>}, {transform_indices = @transform_1, window_bounds = array<i64: 1792, 128>}, {transform_indices = @transform_2, window_bounds = array<i64: 1, 128>}, {transform_indices = @transform_3, window_bounds = array<i64: 32, 128>}]} {
    %c0_i32 = arith.constant 0 : i32
    %0 = arith.cmpi eq, %arg2, %c0_i32 : i32
    %1 = arith.extui %0 : i1 to i32
    %c0_i32_0 = arith.constant 0 : i32
    %2 = arith.cmpi ne, %1, %c0_i32_0 : i32
    scf.if %2 {
      %cst_9 = arith.constant 0.000000e+00 : f32
      %15 = vector.broadcast %cst_9 : f32 to vector<32x128xf32>
      %c0_10 = arith.constant 0 : index
      %c0_11 = arith.constant 0 : index
      %16 = vector.load %arg7[%c0_10, %c0_11] : memref<32x128xf32, #tpu.memory_space<vmem>>, vector<32x128xf32>
      tpu.vector_store %arg7[%c0_10, %c0_11], %15 {strides = array<i32>} : memref<32x128xf32, #tpu.memory_space<vmem>>, vector<32x128xf32>,
    } else {
    }
    %c1792_i32 = arith.constant 1792 : i32
    %3 = arith.muli %arg2, %c1792_i32 : i32
    %4 = tpu.assume_multiple %3, 1792 : i32
    %c0 = arith.constant 0 : index
    %c0_1 = arith.constant 0 : index
    %5 = vector.load %arg7[%c0, %c0_1] : memref<32x128xf32, #tpu.memory_space<vmem>>, vector<32x128xf32>
    %c0_2 = arith.constant 0 : index
    %c0_3 = arith.constant 0 : index
    %6 = vector.load %arg3[%c0_2, %c0_3] : memref<32x1792xbf16, #tpu.memory_space<vmem>>, vector<32x1792xbf16>
    %7 = arith.index_cast %4 : i32 to index
    %c0_4 = arith.constant 0 : index
    %8 = vector.load %arg4[%7, %c0_4] : memref<1792x128xbf16, #tpu.memory_space<vmem>>, vector<1792x128xbf16>
    %cst = arith.constant dense<0.000000e+00> : vector<32x128xf32>
    %9 = tpu.matmul %6, %8, %cst {dimension_numbers = #tpu.dot_dimension_numbers<[1], [0], [0], [1], [0, 0, 1, 1], [], []>} : vector<32x1792xbf16>, vector<1792x128xbf16>, vector<32x128xf32> -> vector<32x128xf32>
    %10 = arith.addf %5, %9 : vector<32x128xf32>
    %c0_5 = arith.constant 0 : index
    %c0_6 = arith.constant 0 : index
    %11 = vector.load %arg7[%c0_5, %c0_6] : memref<32x128xf32, #tpu.memory_space<vmem>>, vector<32x128xf32>
    tpu.vector_store %arg7[%c0_5, %c0_6], %10 {strides = array<i32>} : memref<32x128xf32, #tpu.memory_space<vmem>>, vector<32x128xf32>,
    %c0_i32_7 = arith.constant 0 : i32
    %12 = arith.cmpi eq, %arg2, %c0_i32_7 : i32
    %13 = arith.extui %12 : i1 to i32
    %c0_i32_8 = arith.constant 0 : i32
    %14 = arith.cmpi ne, %13, %c0_i32_8 : i32
    scf.if %14 {
      %c0_9 = arith.constant 0 : index
      %c0_10 = arith.constant 0 : index
      %15 = vector.load %arg7[%c0_9, %c0_10] : memref<32x128xf32, #tpu.memory_space<vmem>>, vector<32x128xf32>
      %c0_11 = arith.constant 0 : index
      %c0_12 = arith.constant 0 : index
      %16 = vector.load %arg5[%c0_11, %c0_12] : memref<1x128xf32, #tpu.memory_space<vmem>>, vector<1x128xf32>
      %17 = vector.broadcast %16 : vector<1x128xf32> to vector<32x128xf32>
      %18 = arith.addf %15, %17 : vector<32x128xf32>
      %cst_13 = arith.constant 0.000000e+00 : f32
      %19 = vector.broadcast %cst_13 : f32 to vector<32x128xf32>
      %20 = arith.maximumf %18, %19 : vector<32x128xf32>
      %c0_14 = arith.constant 0 : index
      %c0_15 = arith.constant 0 : index
      %21 = vector.load %arg6[%c0_14, %c0_15] : memref<32x128xf32, #tpu.memory_space<vmem>>, vector<32x128xf32>
      tpu.vector_store %arg6[%c0_14, %c0_15], %20 {strides = array<i32>} : memref<32x128xf32, #tpu.memory_space<vmem>>, vector<32x128xf32>,
    } else {
    }
    return
  }
  func.func @transform_0(%arg0: i32, %arg1: i32, %arg2: i32) -> (i32, i32) {
    %c0_i32 = arith.constant 0 : i32
    return %arg1, %arg2 : i32, i32
  }
  func.func @transform_1(%arg0: i32, %arg1: i32, %arg2: i32) -> (i32, i32) {
    %c0_i32 = arith.constant 0 : i32
    %c0_i32_0 = arith.constant 0 : i32
    return %c0_i32, %arg0 : i32, i32
  }
  func.func @transform_2(%arg0: i32, %arg1: i32, %arg2: i32) -> (i32, i32) {
    %c0_i32 = arith.constant 0 : i32
    %c0_i32_0 = arith.constant 0 : i32
    return %c0_i32, %arg0 : i32, i32
  }
  func.func @transform_3(%arg0: i32, %arg1: i32, %arg2: i32) -> (i32, i32) {
    %c0_i32 = arith.constant 0 : i32
    return %arg1, %arg0 : i32, i32
  }
}

module attributes {stable_mosaic.version = 11 : i64} {
  func.func @_maxpool_kernel(%arg0: i32, %arg1: memref<9x32x16xf32, #tpu.memory_space<vmem>>, %arg2: memref<32x16xf32, #tpu.memory_space<vmem>>) attributes {dimension_semantics = [#tpu.dimension_semantics<parallel>], iteration_bounds = array<i64: 1>, scalar_prefetch = 0 : i64, scratch_operands = 0 : i64, tpu.core_type = #tpu.core_type<tc>, window_params = [{transform_indices = @transform_0, window_bounds = array<i64: 9, 32, 16>}, {transform_indices = @transform_1, window_bounds = array<i64: 32, 16>}]} {
    %c0 = arith.constant 0 : index
    %c0_0 = arith.constant 0 : index
    %c0_1 = arith.constant 0 : index
    %0 = vector.load %arg1[%c0, %c0_0, %c0_1] : memref<9x32x16xf32, #tpu.memory_space<vmem>>, vector<9x32x16xf32>
    %cst = arith.constant dense<0xFF800000> : vector<32x16xf32>
    %1 = vector.multi_reduction <maximumf>, %0, %cst [0] : vector<9x32x16xf32> to vector<32x16xf32>
    %c0_2 = arith.constant 0 : index
    %c0_3 = arith.constant 0 : index
    %2 = vector.load %arg2[%c0_2, %c0_3] : memref<32x16xf32, #tpu.memory_space<vmem>>, vector<32x16xf32>
    tpu.vector_store %arg2[%c0_2, %c0_3], %1 {strides = array<i32>} : memref<32x16xf32, #tpu.memory_space<vmem>>, vector<32x16xf32>,
    return
  }
  func.func @transform_0(%arg0: i32) -> (i32, i32, i32) {
    %c0_i32 = arith.constant 0 : i32
    %c0_i32_0 = arith.constant 0 : i32
    %c0_i32_1 = arith.constant 0 : i32
    return %c0_i32, %arg0, %c0_i32_0 : i32, i32, i32
  }
  func.func @transform_1(%arg0: i32) -> (i32, i32) {
    %c0_i32 = arith.constant 0 : i32
    %c0_i32_0 = arith.constant 0 : i32
    return %arg0, %c0_i32 : i32, i32
  }
}

</mosaic_0001>

<bundles_post_ra>
// kernel: inception_d_forward.6
= control target key start
LH: loop header
LB: loop body
LE: loop exit
PB: predicated region body
PF: predicated region fallthrough
CT: control target
= control target key end

     0   :  { %s1463_s12 = smov 0   ;;  %s1465_s13 = smov 0   ;;  %s1723_s0 = inlined_call_operand.vmem [shape: bf16[168,128], index: 0, kind: input, shape index: {}]   ;;  %s1724_s1 = inlined_call_operand.vmem [shape: bf16[128,384], index: 1, kind: input, shape index: {}]   ;;  %s1725_s2 = inlined_call_operand.vmem [shape: f32[1,384], index: 2, kind: input, shape index: {}]   ;;  %s1726_s3 = inlined_call_operand.vmem [shape: bf16[168,384], index: 3, kind: output, shape index: {}]  }
   0x1   :  { %s1467_s14 = smov 0   ;;  %s1469_s15 = smov 0  }
   0x2   :  { %s1471_s16 = smov 0  }
   0x3 LB: > { %s32_s17 = sadd.s32 1, %s1435_s15  ;;  %s1111_s18 = sadd.s32 4294967295, %s1439_s16   ;;  %s1439_s16 = sphi %s1471_s16, %s13_s16   ;;  %s1435_s15 = sphi %s1469_s15, %s1731_s15   ;;  %s1431_s14 = sphi %s1467_s14, %s1730_s14   ;;  %s1427_s13 = sphi %s1465_s13, %s1729_s13   ;;  %s1423_s12 = sphi %s1463_s12, %s1728_s12  }
   0x4   : > { %p34_p0 = scmp.ge.s32.totalorder %s32_s17, 3  ;;  %p74_p1 = scmp.ne.s32.totalorder %s1427_s13, %s1423_s12 }
   0x5   : > { %p75_p2 = scmp.eq.s32.totalorder %s1439_s16, 0  ;;  %p132_p4 = scmp.eq.s32.totalorder %s1111_s18, 2 }
   0x6   : > { %s1733_s17 = smov (%p34_p0, %s32_s17), 0  ;;  %s67_s20 = sadd.s32 1, %s1427_s13 }
   0x7   : > { %p76_p3 = por %p75_p2, %p74_p1  ;;  %s64_s19 = ssub.s32 %s1435_s15, %s1733_s17 }
   0x8   : > { %p65_p5 = scmp.eq.s32.totalorder %s64_s19, 0  ;;  %p1498_p6 = por %p132_p4, %p74_p1 }
   0x9   : > { %p1115_p7 = scmp.ge.s32.totalorder %s1439_s16, 3 }
   0xa   : > { %s1503_s22 = scalar_select %p65_p5, %s1427_s13, %s67_s20  }
   0xb   : > { %166 = sbr.rel (%p1115_p7) target bundleno = 30 (0x1e), region = 20 }
  0x10   : > { %169 = sbr.rel (!%p76_p3) target bundleno = 30 (0x1e), region = 24  ;;  %s171_s23 = sand.u32 (%p76_p3), 1, %s1427_s13  }
  0x11   : > { %s1117_s24 = sshll.u32 (%p76_p3), %s1435_s15, 2  ;;  %s1116_s25 = sshll.u32 (%p76_p3), %s171_s23, 6 }
  0x12   : > { %s1511_s28 = scalar_lea.vmem (%p76_p3), %s1724_s1, %s1117_s24  ;;  %s173_s29 = scalar_lea.vmem (%p76_p3), [#allocation3], %s1116_s25 }
  0x13   : > { %v192_v0 = vld [vmem:[%s1511_s28] sm:$0xf] (%p76_p3)  ;;  %v194_v1 = vld [vmem:[%s1511_s28 + $0xc] sm:$0xf] (%p76_p3)  ;;  %v196_v2 = vld [vmem:[%s1511_s28 + $0x18] sm:$0xf] (%p76_p3) }
  0x14   : > { %193 = vst [vmem:[%s173_s29] sm:$0xf] (%p76_p3), %v192_v0  ;;  %195 = vst [vmem:[%s173_s29 + $0x4] sm:$0xf] (%p76_p3), %v194_v1  ;;  %v198_v3 = vld [vmem:[%s1511_s28 + $0x24] sm:$0xf] (%p76_p3) }
  0x15   : > { %v200_v4 = vld [vmem:[%s1511_s28 + $0x30] sm:$0xf]  ;;  %197 = vst [vmem:[%s173_s29 + $0x8] sm:$0xf] %v196_v2  ;;  %199 = vst [vmem:[%s173_s29 + $0xc] sm:$0xf] %v198_v3 }
  0x16   : > { %201 = vst [vmem:[%s173_s29 + $0x10] sm:$0xf] %v200_v4  ;;  %v202_v5 = vld [vmem:[%s1511_s28 + $0x3c] sm:$0xf]  ;;  %v204_v6 = vld [vmem:[%s1511_s28 + $0x48] sm:$0xf] }
  0x17   : > { %v206_v7 = vld [vmem:[%s1511_s28 + $0x54] sm:$0xf]  ;;  %203 = vst [vmem:[%s173_s29 + $0x14] sm:$0xf] %v202_v5  ;;  %205 = vst [vmem:[%s173_s29 + $0x18] sm:$0xf] %v204_v6 }
  0x18   : > { %207 = vst [vmem:[%s173_s29 + $0x1c] sm:$0xf] %v206_v7  ;;  %v208_v8 = vld [vmem:[%s1511_s28 + $0x60] sm:$0xf]  ;;  %v210_v9 = vld [vmem:[%s1511_s28 + $0x6c] sm:$0xf] }
  0x19   : > { %v212_v10 = vld [vmem:[%s1511_s28 + $0x78] sm:$0xf]  ;;  %209 = vst [vmem:[%s173_s29 + $0x20] sm:$0xf] %v208_v8  ;;  %211 = vst [vmem:[%s173_s29 + $0x24] sm:$0xf] %v210_v9 }
  0x1a   : > { %213 = vst [vmem:[%s173_s29 + $0x28] sm:$0xf] %v212_v10  ;;  %v214_v11 = vld [vmem:[%s1511_s28 + $0x84] sm:$0xf]  ;;  %v216_v12 = vld [vmem:[%s1511_s28 + $0x90] sm:$0xf] }
  0x1b   : > { %v218_v13 = vld [vmem:[%s1511_s28 + $0x9c] sm:$0xf]  ;;  %215 = vst [vmem:[%s173_s29 + $0x2c] sm:$0xf] %v214_v11  ;;  %217 = vst [vmem:[%s173_s29 + $0x30] sm:$0xf] %v216_v12 }
  0x1c   : > { %219 = vst [vmem:[%s173_s29 + $0x34] sm:$0xf] %v218_v13  ;;  %v220_v14 = vld [vmem:[%s1511_s28 + $0xa8] sm:$0xf]  ;;  %v222_v15 = vld [vmem:[%s1511_s28 + $0xb4] sm:$0xf] }
  0x1d   : > { %221 = vst [vmem:[%s173_s29 + $0x38] sm:$0xf] %v220_v14  ;;  %223 = vst [vmem:[%s173_s29 + $0x3c] sm:$0xf] %v222_v15 }
  0x1e PF: > { %p1118_p8 = scmp.ge.s32.totalorder %s1439_s16, 1  ;;  %p284_p9 = scmp.lt.s32.totalorder %s1439_s16, 4 }
  0x20   : > { %p285_p10 = pnand %p1118_p8, %p284_p9 }
  0x21   : > { %s291_s30 = sand.u32 (!%p285_p10), 1, %s1423_s12   ;;  %p333_p11 = scmp.lt.s32.totalorder (!%p285_p10), %s1431_s14, 2 }
  0x22   : > { %288 = sbr.rel (%p285_p10) target bundleno = 325 (0x145), region = 69  ;;  %s1119_s4 = sshll.u32 (!%p285_p10), %s291_s30, 6 }
  0x23   : > { %s1540_s5 = scalar_lea.vmem (!%p285_p10), [#allocation3], %s1119_s4  ;;  %s1339_s20 = smul.u32 (!%p285_p10), 84, %s291_s30 }
  0x25   : > { %s1629_s12 = scalar_lea.vmem (!%p285_p10), [#allocation4], %s1339_s20 }
  0x27   : > { %v1441_v16 = vmov 0.0   ;;  %vm1442_vm0 = vmmov 0   ;;  %v1382_v17 = vld [vmem:[%s1540_s5 + $0x38] sm:$0xff]   ;;  %v1383_v18 = vld [vmem:[%s1540_s5 + $0x30] sm:$0xff]   ;;  %v1384_v19 = vld [vmem:[%s1540_s5 + $0x28] sm:$0xff]   ;;  %s334_s10 = scalar_select %p333_p11, %s1431_s14, 2 }
  0x28   : > { %1263 = vmatprep.subr.bf16.mxu0 %v1441_v16  ;;  %1323 = vmatprep.subr.bf16.mxu1 %v1441_v16  ;;  %v1385_v20 = vld [vmem:[%s1540_s5 + $0x20] sm:$0xff]   ;;  %v1386_v21 = vld [vmem:[%s1540_s5 + $0x18] sm:$0xff]   ;;  %v1387_v22 = vld [vmem:[%s1540_s5 + $0x10] sm:$0xff]   ;;  %s1161_s30 = sshll.u32 (%p1498_p6), %s1431_s14, 2 }
  0x29   : > { %1279 = vmatprep.mubr.msk.bf16.mxu0 %vm1442_vm0, %v1441_v16  ;;  %1303 = vmatprep.mubr.msk.bf16.mxu1 %vm1442_vm0, %v1441_v16  ;;  %v1388_v23 = vld [vmem:[%s1540_s5 + $0x8] sm:$0xff]   ;;  %v1389_v24 = vld [vmem:[%s1540_s5] sm:$0xff]   ;;  %v1391_v26 = vld [vmem:[%s1723_s0 + $0x30] sm:$0xff]   ;;  %s335_s19 = scalar_lea.vmem %s1725_s2, %s334_s10  ;;  %s1666_s25 = scalar_lea.vmem (%p1498_p6), %s1726_s3, %s1161_s30 }
  0x2a   : > { %1264 = vmatpush3.bf16.msra.mxu0 %v1382_v17  ;;  %1331 = vmatpush3.bf16.msra.mxu1 %v1382_v17  ;;  %v1390_v25 = vld [vmem:[%s1723_s0] sm:$0xff]   ;;  %v1392_v27 = vld [vmem:[%s1723_s0 + $0x8] sm:$0xff]   ;;  %v1393_v28 = vld [vmem:[%s1723_s0 + $0x38] sm:$0xff]  }
  0x2b   : > { %1265 = vmatprep.subr.bf16.mxu0 %v1441_v16  ;;  %1324 = vmatprep.subr.bf16.mxu1 %v1441_v16  ;;  %v1394_v29 = vld [vmem:[%s1723_s0 + $0x10] sm:$0xff]   ;;  %v1395_v30 = vld [vmem:[%s1723_s0 + $0x40] sm:$0xff]   ;;  %v1396_v31 = vld [vmem:[%s1723_s0 + $0x18] sm:$0xff]  }
  0x2c   : > { %v1397_v32 = vld [vmem:[%s1723_s0 + $0x48] sm:$0xff]   ;;  %v1398_v33 = vld [vmem:[%s1723_s0 + $0x20] sm:$0xff]   ;;  %v1399_v34 = vld [vmem:[%s1723_s0 + $0x50] ss:$0 sps:$4 sm:$0xff]  }
  0x2d   : > { %v1400_v35 = vld [vmem:[%s1723_s0 + $0x28] sm:$0xff]   ;;  %v1620_v37 = vld [vmem:[%s335_s19] ss:$0 sm:$0xff] }
  0x2e   : > { %1266 = vmatpush3.bf16.msra.mxu0 %v1383_v18  ;;  %1332 = vmatpush3.bf16.msra.mxu1 %v1383_v18 }
  0x2f   : > { %1267 = vmatprep.subr.bf16.mxu0 %v1441_v16  ;;  %1325 = vmatprep.subr.bf16.mxu1 %v1441_v16 }
  0x32   : > { %1268 = vmatpush3.bf16.msra.mxu0 %v1384_v19  ;;  %1333 = vmatpush3.bf16.msra.mxu1 %v1384_v19 }
  0x33   : > { %1269 = vmatprep.subr.bf16.mxu0 %v1441_v16  ;;  %1326 = vmatprep.subr.bf16.mxu1 %v1441_v16 }
  0x36   : > { %1270 = vmatpush3.bf16.msra.mxu0 %v1385_v20  ;;  %1334 = vmatpush3.bf16.msra.mxu1 %v1385_v20 }
  0x37   : > { %1271 = vmatprep.subr.bf16.mxu0 %v1441_v16  ;;  %1327 = vmatprep.subr.bf16.mxu1 %v1441_v16 }
  0x3a   : > { %1272 = vmatpush3.bf16.msra.mxu0 %v1386_v21  ;;  %1335 = vmatpush3.bf16.msra.mxu1 %v1386_v21 }
  0x3b   : > { %1273 = vmatprep.subr.bf16.mxu0 %v1441_v16  ;;  %1328 = vmatprep.subr.bf16.mxu1 %v1441_v16 }
  0x3e   : > { %1274 = vmatpush3.bf16.msra.mxu0 %v1387_v22  ;;  %1336 = vmatpush3.bf16.msra.mxu1 %v1387_v22 }
  0x3f   : > { %1275 = vmatprep.subr.bf16.mxu0 %v1441_v16  ;;  %1329 = vmatprep.subr.bf16.mxu1 %v1441_v16 }
  0x42   : > { %1276 = vmatpush3.bf16.msra.mxu0 %v1388_v23  ;;  %1337 = vmatpush3.bf16.msra.mxu1 %v1388_v23 }
  0x43   : > { %1277 = vmatprep.subr.bf16.mxu0 %v1441_v16  ;;  %1330 = vmatprep.subr.bf16.mxu1 %v1441_v16 }
  0x46   : > { %1278 = vmatpush3.bf16.msra.mxu0 %v1389_v24  ;;  %1338 = vmatpush3.bf16.msra.mxu1 %v1389_v24 }
  0x49   : > { %1280 = vmatmul.mubr.bf16.vlgmr.msra.gmra.mxu0 %v1390_v25  ;;  %1304 = vmatmul.mubr.bf16.vlgmr.msra.gmra.mxu1 %v1391_v26 }
  0x4a   : > { %1283 = vmatprep.mubr.msk.bf16.mxu0 %vm1442_vm0, %v1441_v16  ;;  %1307 = vmatprep.mubr.msk.bf16.mxu1 %vm1442_vm0, %v1441_v16 }
  0x51   : > { %1284 = vmatmul.mubr.bf16.gmra.mxu0 %v1392_v27  ;;  %1308 = vmatmul.mubr.bf16.gmra.mxu1 %v1393_v28 }
  0x52   : > { %1287 = vmatprep.mubr.msk.bf16.mxu0 %vm1442_vm0, %v1441_v16  ;;  %1311 = vmatprep.mubr.msk.bf16.mxu1 %vm1442_vm0, %v1441_v16 }
  0x59   : > { %1288 = vmatmul.mubr.bf16.gmra.mxu0 %v1394_v29  ;;  %1312 = vmatmul.mubr.bf16.gmra.mxu1 %v1395_v30 }
  0x5a   : > { %1291 = vmatprep.mubr.msk.bf16.mxu0 %vm1442_vm0, %v1441_v16  ;;  %1315 = vmatprep.mubr.msk.bf16.mxu1 %vm1442_vm0, %v1441_v16 }
  0x61   : > { %1292 = vmatmul.mubr.bf16.gmra.mxu0 %v1396_v31  ;;  %1316 = vmatmul.mubr.bf16.gmra.mxu1 %v1397_v32 }
  0x62   : > { %1295 = vmatprep.mubr.msk.bf16.mxu0 %vm1442_vm0, %v1441_v16  ;;  %1319 = vmatprep.mubr.msk.bf16.mxu1 %vm1442_vm0, %v1441_v16 }
  0x69   : > { %1296 = vmatmul.mubr.bf16.gmra.mxu0 %v1398_v33  ;;  %1320 = vmatmul.mubr.bf16.gmra.mxu1 %v1399_v34 }
  0x6a   : > { %1299 = vmatprep.mubr.msk.bf16.mxu0 %vm1442_vm0, %v1441_v16 }
  0x71   : > { %1300 = vmatmul.mubr.bf16.gmra.mxu0 %v1400_v35 }
 0x109   : > { %v572_v36 = vpop.f32.mrf.mxu0  ;;  %v620_v38 = vpop.f32.mrf.mxu1 }
 0x10a   : > { %v743_v39 = vadd.f32 %v1620_v37, %v620_v38  ;;  %v731_v42 = vadd.f32 %v1620_v37, %v572_v36 }
 0x10b   : > { %v1281_v40 = vpop.f32.mrf.mxu0  ;;  %v1305_v41 = vpop.f32.mrf.mxu1 }
 0x10c   : > { %v764_v46 = vmax.f32 %v743_v39, 0.0  ;;  %v752_v50 = vmax.f32 %v731_v42, 0.0 }
 0x10d   : > { %v575_v43 = vpop.f32.mrf.mxu0  ;;  %v623_v44 = vpop.f32.mrf.mxu1 }
 0x10e   : > { %v732_v45 = vadd.f32 %v1620_v37, %v575_v43  ;;  %v744_v47 = vadd.f32 %v1620_v37, %v623_v44 }
 0x10f   : > { %v1282_v48 = vpop.f32.mrf.mxu0  ;;  %v1306_v49 = vpop.f32.mrf.mxu1 }
 0x110   : > { %v753_v51 = vmax.f32 %v732_v45, 0.0  ;;  %v765_v52 = vmax.f32 %v744_v47, 0.0 }
 0x111   : > { %v580_v53 = vpop.f32.mrf.mxu0  ;;  %v628_v54 = vpop.f32.mrf.mxu1 }
 0x112   : > { %v1188_v55 = vpack.c.bf16 %v753_v51, %v752_v50  ;;  %v1218_v56 = vpack.c.bf16 %v765_v52, %v764_v46  ;;  %v745_v57 = vadd.f32 %v1620_v37, %v628_v54  ;;  %v733_v60 = vadd.f32 %v1620_v37, %v580_v53 }
 0x113   : > { %v1285_v58 = vpop.f32.mrf.mxu0  ;;  %v1309_v59 = vpop.f32.mrf.mxu1 }
 0x114   : > { %1189 = vst [vmem:[%s1629_s12] sm:$0xff] %v1188_v55   ;;  %1240 = vst [vmem:[%s1629_s12 + $0x30] sm:$0xff] %v1218_v56   ;;  %v766_v0 = vmax.f32 %v745_v57, 0.0  ;;  %v754_v4 = vmax.f32 %v733_v60, 0.0 }
 0x115   : > { %v583_v61 = vpop.f32.mrf.mxu0  ;;  %v631_v62 = vpop.f32.mrf.mxu1 }
 0x116   : > { %v734_v63 = vadd.f32 %v1620_v37, %v583_v61  ;;  %v746_v1 = vadd.f32 %v1620_v37, %v631_v62 }
 0x117   : > { %v1286_v2 = vpop.f32.mrf.mxu0  ;;  %v1310_v3 = vpop.f32.mrf.mxu1 }
 0x118   : > { %v755_v5 = vmax.f32 %v734_v63, 0.0  ;;  %v767_v6 = vmax.f32 %v746_v1, 0.0 }
 0x119   : > { %v588_v7 = vpop.f32.mrf.mxu0  ;;  %v636_v8 = vpop.f32.mrf.mxu1 }
 0x11a   : > { %v1193_v9 = vpack.c.bf16 %v755_v5, %v754_v4  ;;  %v1223_v10 = vpack.c.bf16 %v767_v6, %v766_v0  ;;  %v747_v11 = vadd.f32 %v1620_v37, %v636_v8  ;;  %v735_v14 = vadd.f32 %v1620_v37, %v588_v7 }
 0x11b   : > { %v1289_v12 = vpop.f32.mrf.mxu0  ;;  %v1313_v13 = vpop.f32.mrf.mxu1  ;;  %v907_v7 = vld [vmem:[%s1629_s12] sm:$0xf] (%p1498_p6) }
 0x11c   : > { %1235 = vst [vmem:[%s1629_s12 + $0x8] sm:$0xff] %v1193_v9   ;;  %1241 = vst [vmem:[%s1629_s12 + $0x38] sm:$0xff] %v1223_v10   ;;  %v768_v18 = vmax.f32 %v747_v11, 0.0  ;;  %v756_v22 = vmax.f32 %v735_v14, 0.0 }
 0x11d   : > { %v591_v15 = vpop.f32.mrf.mxu0  ;;  %v639_v16 = vpop.f32.mrf.mxu1  ;;  %908 = vst [vmem:[%s1666_s25] sm:$0xf] (%p1498_p6), %v907_v7 }
 0x11e   : > { %v736_v17 = vadd.f32 %v1620_v37, %v591_v15  ;;  %v748_v19 = vadd.f32 %v1620_v37, %v639_v16 }
 0x11f   : > { %v1290_v20 = vpop.f32.mrf.mxu0  ;;  %v1314_v21 = vpop.f32.mrf.mxu1 }
 0x120   : > { %v757_v23 = vmax.f32 %v736_v17, 0.0  ;;  %v769_v24 = vmax.f32 %v748_v19, 0.0  ;;  %v933_v19 = vld [vmem:[%s1629_s12 + $0x34] sm:$0xf] (%p1498_p6) }
 0x121   : > { %v596_v25 = vpop.f32.mrf.mxu0  ;;  %v644_v26 = vpop.f32.mrf.mxu1  ;;  %934 = vst [vmem:[%s1666_s25 + $0x9c] sm:$0xf] (%p1498_p6), %v933_v19 }
 0x122   : > { %v1198_v27 = vpack.c.bf16 %v757_v23, %v756_v22  ;;  %v1228_v28 = vpack.c.bf16 %v769_v24, %v768_v18  ;;  %v749_v29 = vadd.f32 %v1620_v37, %v644_v26  ;;  %v737_v32 = vadd.f32 %v1620_v37, %v596_v25  ;;  %v931_v18 = vld [vmem:[%s1629_s12 + $0x30] sm:$0xf] (%p1498_p6) }
 0x123   : > { %v1293_v30 = vpop.f32.mrf.mxu0  ;;  %v1317_v31 = vpop.f32.mrf.mxu1  ;;  %v911_v8 = vld [vmem:[%s1629_s12 + $0x8] sm:$0xf] (%p1498_p6)  ;;  %v913_v9 = vld [vmem:[%s1629_s12 + $0xc] sm:$0xf] (%p1498_p6)  ;;  %932 = vst [vmem:[%s1666_s25 + $0x90] sm:$0xf] (%p1498_p6), %v931_v18 }
 0x124   : > { %1236 = vst [vmem:[%s1629_s12 + $0x10] sm:$0xff] %v1198_v27   ;;  %1242 = vst [vmem:[%s1629_s12 + $0x40] sm:$0xff] %v1228_v28   ;;  %v770_v36 = vmax.f32 %v749_v29, 0.0  ;;  %v758_v41 = vmax.f32 %v737_v32, 0.0  ;;  %v935_v20 = vld [vmem:[%s1629_s12 + $0x38] sm:$0xf] (%p1498_p6) }
 0x125   : > { %v599_v33 = vpop.f32.mrf.mxu0  ;;  %v647_v34 = vpop.f32.mrf.mxu1  ;;  %912 = vst [vmem:[%s1666_s25 + $0x18] sm:$0xf] (%p1498_p6), %v911_v8  ;;  %914 = vst [vmem:[%s1666_s25 + $0x24] sm:$0xf] (%p1498_p6), %v913_v9  ;;  %v937_v21 = vld [vmem:[%s1629_s12 + $0x3c] sm:$0xf] (%p1498_p6) }
 0x126   : > { %v738_v35 = vadd.f32 %v1620_v37, %v599_v33  ;;  %v750_v38 = vadd.f32 %v1620_v37, %v647_v34  ;;  %936 = vst [vmem:[%s1666_s25 + $0xa8] sm:$0xf] (%p1498_p6), %v935_v20  ;;  %938 = vst [vmem:[%s1666_s25 + $0xb4] sm:$0xf] (%p1498_p6), %v937_v21 }
 0x127   : > { %v1294_v39 = vpop.f32.mrf.mxu0  ;;  %v1318_v40 = vpop.f32.mrf.mxu1 }
 0x128   : > { %v759_v42 = vmax.f32 %v738_v35, 0.0  ;;  %v771_v43 = vmax.f32 %v750_v38, 0.0 }
 0x129   : > { %v604_v44 = vpop.f32.mrf.mxu0  ;;  %v652_v45 = vpop.f32.mrf.mxu1 }
 0x12a   : > { %v1203_v46 = vpack.c.bf16 %v759_v42, %v758_v41  ;;  %v1233_v47 = vpack.c.bf16 %v771_v43, %v770_v36  ;;  %v751_v48 = vadd.f32 %v1620_v37, %v652_v45  ;;  %v739_v51 = vadd.f32 %v1620_v37, %v604_v44 }
 0x12b   : > { %v1297_v49 = vpop.f32.mrf.mxu0  ;;  %v1321_v50 = vpop.f32.mrf.mxu1  ;;  %v915_v10 = vld [vmem:[%s1629_s12 + $0x10] sm:$0xf] (%p1498_p6)  ;;  %v917_v11 = vld [vmem:[%s1629_s12 + $0x14] sm:$0xf] (%p1498_p6)  ;;  %v939_v22 = vld [vmem:[%s1629_s12 + $0x40] sm:$0xf] (%p1498_p6) }
 0x12c   : > { %1237 = vst [vmem:[%s1629_s12 + $0x18] sm:$0xff] %v1203_v46   ;;  %1243 = vst [vmem:[%s1629_s12 + $0x48] sm:$0xff] %v1233_v47   ;;  %v772_v52 = vmax.f32 %v751_v48, 0.0  ;;  %v760_v59 = vmax.f32 %v739_v51, 0.0  ;;  %v941_v23 = vld [vmem:[%s1629_s12 + $0x44] sm:$0xf] (%p1498_p6) }
 0x12d   : > { %v607_v53 = vpop.f32.mrf.mxu0  ;;  %v655_v54 = vpop.f32.mrf.mxu1  ;;  %916 = vst [vmem:[%s1666_s25 + $0x30] sm:$0xf] (%p1498_p6), %v915_v10  ;;  %918 = vst [vmem:[%s1666_s25 + $0x3c] sm:$0xf] (%p1498_p6), %v917_v11 }
 0x12e   : > { %v740_v55 = vadd.f32 %v1620_v37, %v607_v53  ;;  %v1184_v56 = vpack.c.bf16 %v772_v52, %v772_v52  ;;  %940 = vst [vmem:[%s1666_s25 + $0xc0] sm:$0xf] (%p1498_p6), %v939_v22  ;;  %942 = vst [vmem:[%s1666_s25 + $0xcc] sm:$0xf] (%p1498_p6), %v941_v23 }
 0x12f   : > { %v1298_v57 = vpop.f32.mrf.mxu0  ;;  %v1322_v58 = vpop.f32.mrf.mxu1 }
 0x130   : > { %v761_v60 = vmax.f32 %v740_v55, 0.0  ;;  %878 = vst [vmem:[%s1629_s12 + $0x50] sm:$0xf] %v1184_v56 }
 0x131   : > { %v612_v61 = vpop.f32.mrf.mxu0 }
 0x132   : > { %v1208_v62 = vpack.c.bf16 %v761_v60, %v760_v59  ;;  %v741_v0 = vadd.f32 %v1620_v37, %v612_v61 }
 0x133   : > { %v1301_v63 = vpop.f32.mrf.mxu0  ;;  %v919_v12 = vld [vmem:[%s1629_s12 + $0x18] sm:$0xf] (%p1498_p6)  ;;  %v921_v13 = vld [vmem:[%s1629_s12 + $0x1c] sm:$0xf] (%p1498_p6)  ;;  %v943_v24 = vld [vmem:[%s1629_s12 + $0x48] sm:$0xf] (%p1498_p6) }
 0x134   : > { %1238 = vst [vmem:[%s1629_s12 + $0x20] sm:$0xff] %v1208_v62   ;;  %v762_v4 = vmax.f32 %v741_v0, 0.0  ;;  %920 = vst [vmem:[%s1666_s25 + $0x48] sm:$0xf] (%p1498_p6), %v919_v12  ;;  %v945_v25 = vld [vmem:[%s1629_s12 + $0x4c] sm:$0xf] (%p1498_p6) }
 0x135   : > { %v615_v1 = vpop.f32.mrf.mxu0  ;;  %922 = vst [vmem:[%s1666_s25 + $0x54] sm:$0xf] (%p1498_p6), %v921_v13  ;;  %944 = vst [vmem:[%s1666_s25 + $0xd8] sm:$0xf] (%p1498_p6), %v943_v24 }
 0x136   : > { %v742_v2 = vadd.f32 %v1620_v37, %v615_v1  ;;  %v909_v37 = vld [vmem:[%s1629_s12 + $0x4] sm:$0xf] (%p1498_p6)  ;;  %946 = vst [vmem:[%s1666_s25 + $0xe4] sm:$0xf] (%p1498_p6), %v945_v25 }
 0x137   : > { %v1302_v3 = vpop.f32.mrf.mxu0  ;;  %910 = vst [vmem:[%s1666_s25 + $0xc] sm:$0xf] (%p1498_p6), %v909_v37  ;;  %v947_v26 = vld [vmem:[%s1629_s12 + $0x50] sm:$0xf] (%p1498_p6) }
 0x138   : > { %v763_v5 = vmax.f32 %v742_v2, 0.0  ;;  %885 = sbr.rel (!%p1498_p6) target bundleno = 325 (0x145), region = 85  ;;  %948 = vst [vmem:[%s1666_s25 + $0xf0] sm:$0xf] (%p1498_p6), %v947_v26 }
 0x13a   : > { %v1213_v6 = vpack.c.bf16 %v763_v5, %v762_v4 }
 0x13b   : > { %v923_v14 = vld [vmem:[%s1629_s12 + $0x20] sm:$0xf] (%p1498_p6)  ;;  %v925_v15 = vld [vmem:[%s1629_s12 + $0x24] sm:$0xf] (%p1498_p6) }
 0x13c   : > { %1239 = vst [vmem:[%s1629_s12 + $0x28] sm:$0xff] %v1213_v6   ;;  %924 = vst [vmem:[%s1666_s25 + $0x60] sm:$0xf] (%p1498_p6), %v923_v14 }
 0x13d   : > { %926 = vst [vmem:[%s1666_s25 + $0x6c] sm:$0xf] %v925_v15 }
 0x143   : > { %v927_v16 = vld [vmem:[%s1629_s12 + $0x28] sm:$0xf]  ;;  %v929_v17 = vld [vmem:[%s1629_s12 + $0x2c] sm:$0xf] }
 0x144   : > { %928 = vst [vmem:[%s1666_s25 + $0x78] sm:$0xf] %v927_v16  ;;  %930 = vst [vmem:[%s1666_s25 + $0x84] sm:$0xf] %v929_v17 }
 0x145 PF: > { %s13_s16 = sadd.s32 1, %s1439_s16   ;;  %s1728_s12 = smov %s1427_s13 }
 0x146   : > { %p10_p12 = scmp.ge.s32.totalorder %s13_s16, 5   ;;  %s1729_s13 = smov %s1503_s22 }
 0x147   : > { %s1730_s14 = smov %s1435_s15  ;;  %s1731_s15 = smov %s1733_s17 }
 0x148   :  { %12 = sbr.rel (!%p10_p12) target bundleno = 3 (0x3), region = 164 }

// kernel: inception_d_forward.8
= control target key start
LH: loop header
LB: loop body
LE: loop exit
PB: predicated region body
PF: predicated region fallthrough
CT: control target
= control target key end

     0   :  { %s5163_s1 = inlined_call_operand.vmem [shape: bf16[1408,256], index: 1, kind: input, shape index: {}]   ;;  %s5164_s0 = inlined_call_operand.vmem [shape: bf16[168,1408], index: 0, kind: input, shape index: {}]   ;;  %s5165_s2 = inlined_call_operand.vmem [shape: f32[1,256], index: 2, kind: input, shape index: {}]   ;;  %s5166_s3 = inlined_call_operand.vmem [shape: bf16[168,256], index: 3, kind: output, shape index: {}]  }
   0x1   :  { %v3456_v0 = vld [vmem:[%s5163_s1 + $0x74] ss:$8 sps:$4 sm:$0xff]   ;;  %v3460_v2 = vld [vmem:[%s5163_s1 + $0x70] ss:$8 sps:$4 sm:$0xff]   ;;  %v3462_v4 = vld [vmem:[%s5163_s1 + $0x64] ss:$8 sps:$4 sm:$0xff]  }
   0x2   :  { %v3458_v1 = vld [vmem:[%s5163_s1 + $0x174] ss:$8 sps:$4 sm:$0xff]   ;;  %1890 = vmatprep.subr.bf16.mxu0 %v3456_v0  ;;  %v3461_v3 = vld [vmem:[%s5163_s1 + $0x170] ss:$8 sps:$4 sm:$0xff]   ;;  %v3464_v5 = vld [vmem:[%s5163_s1 + $0x164] ss:$8 sps:$4 sm:$0xff]  }
   0x3   :  { %2031 = vmatprep.subr.bf16.mxu1 %v3458_v1  ;;  %1891 = vmatpush1.bf16.msra.mxu0 %v3460_v2  ;;  %v3466_v6 = vld [vmem:[%s5163_s1 + $0x60] ss:$8 sps:$4 sm:$0xff]   ;;  %v3468_v8 = vld [vmem:[%s5163_s1 + $0x54] ss:$8 sps:$4 sm:$0xff]   ;;  %v3472_v10 = vld [vmem:[%s5163_s1 + $0x50] ss:$8 sps:$4 sm:$0xff]  }
   0x4   :  { %2032 = vmatpush1.bf16.msra.mxu1 %v3461_v3  ;;  %1892 = vmatprep.subr.bf16.mxu0 %v3462_v4  ;;  %v3467_v7 = vld [vmem:[%s5163_s1 + $0x160] ss:$8 sps:$4 sm:$0xff]   ;;  %v3470_v9 = vld [vmem:[%s5163_s1 + $0x154] ss:$8 sps:$4 sm:$0xff]   ;;  %v3473_v11 = vld [vmem:[%s5163_s1 + $0x150] ss:$8 sps:$4 sm:$0xff]  }
   0x5   :  { %2033 = vmatprep.subr.bf16.mxu1 %v3464_v5  ;;  %v3474_v12 = vld [vmem:[%s5163_s1 + $0x44] ss:$8 sps:$4 sm:$0xff]   ;;  %v3478_v14 = vld [vmem:[%s5163_s1 + $0x40] ss:$8 sps:$4 sm:$0xff]   ;;  %v3480_v16 = vld [vmem:[%s5163_s1 + $0x34] ss:$8 sps:$4 sm:$0xff]  }
   0x6   :  { %v3476_v13 = vld [vmem:[%s5163_s1 + $0x144] ss:$8 sps:$4 sm:$0xff]   ;;  %v3479_v15 = vld [vmem:[%s5163_s1 + $0x140] ss:$8 sps:$4 sm:$0xff]   ;;  %v3482_v17 = vld [vmem:[%s5163_s1 + $0x134] ss:$8 sps:$4 sm:$0xff]  }
   0x7   :  { %1893 = vmatpush1.bf16.msra.mxu0 %v3466_v6  ;;  %v3484_v18 = vld [vmem:[%s5163_s1 + $0x30] ss:$8 sps:$4 sm:$0xff]   ;;  %v3486_v20 = vld [vmem:[%s5163_s1 + $0x24] ss:$8 sps:$4 sm:$0xff]   ;;  %v3490_v22 = vld [vmem:[%s5163_s1 + $0x20] ss:$8 sps:$4 sm:$0xff]  }
   0x8   :  { %2034 = vmatpush1.bf16.msra.mxu1 %v3467_v7  ;;  %1894 = vmatprep.subr.bf16.mxu0 %v3468_v8  ;;  %v3485_v19 = vld [vmem:[%s5163_s1 + $0x130] ss:$8 sps:$4 sm:$0xff]   ;;  %v3488_v21 = vld [vmem:[%s5163_s1 + $0x124] ss:$8 sps:$4 sm:$0xff]   ;;  %v3491_v23 = vld [vmem:[%s5163_s1 + $0x120] ss:$8 sps:$4 sm:$0xff]  }
   0x9   :  { %2035 = vmatprep.subr.bf16.mxu1 %v3470_v9  ;;  %v3492_v24 = vld [vmem:[%s5163_s1 + $0x14] ss:$8 sps:$4 sm:$0xff]   ;;  %v3496_v26 = vld [vmem:[%s5163_s1 + $0x10] ss:$8 sps:$4 sm:$0xff]   ;;  %v3498_v28 = vld [vmem:[%s5163_s1 + $0x4] ss:$8 sps:$4 sm:$0xff]  }
   0xa   :  { %v3494_v25 = vld [vmem:[%s5163_s1 + $0x114] ss:$8 sps:$4 sm:$0xff]   ;;  %v3497_v27 = vld [vmem:[%s5163_s1 + $0x110] ss:$8 sps:$4 sm:$0xff]   ;;  %v3500_v29 = vld [vmem:[%s5163_s1 + $0x104] ss:$8 sps:$4 sm:$0xff]  }
   0xb   :  { %1895 = vmatpush1.bf16.msra.mxu0 %v3472_v10  ;;  %v3502_v30 = vld [vmem:[%s5163_s1] ss:$8 sps:$4 sm:$0xff]   ;;  %v3504_v32 = vld [vmem:[%s5163_s1 + $0xf4] ss:$8 sps:$4 sm:$0xff]   ;;  %v3508_v34 = vld [vmem:[%s5163_s1 + $0xf0] ss:$8 sps:$4 sm:$0xff]  }
   0xc   :  { %2036 = vmatpush1.bf16.msra.mxu1 %v3473_v11  ;;  %1896 = vmatprep.subr.bf16.mxu0 %v3474_v12  ;;  %v3503_v31 = vld [vmem:[%s5163_s1 + $0x100] ss:$8 sps:$4 sm:$0xff]   ;;  %v3506_v33 = vld [vmem:[%s5163_s1 + $0x1f4] ss:$8 sps:$4 sm:$0xff]   ;;  %v3509_v35 = vld [vmem:[%s5163_s1 + $0x1f0] ss:$8 sps:$4 sm:$0xff]  }
   0xd   :  { %2037 = vmatprep.subr.bf16.mxu1 %v3476_v13  ;;  %v3510_v36 = vld [vmem:[%s5163_s1 + $0xe4] ss:$8 sps:$4 sm:$0xff]   ;;  %v3514_v38 = vld [vmem:[%s5163_s1 + $0xe0] ss:$8 sps:$4 sm:$0xff]   ;;  %v3516_v40 = vld [vmem:[%s5163_s1 + $0xd4] ss:$8 sps:$4 sm:$0xff]  }
   0xe   :  { %v3512_v37 = vld [vmem:[%s5163_s1 + $0x1e4] ss:$8 sps:$4 sm:$0xff]   ;;  %v3515_v39 = vld [vmem:[%s5163_s1 + $0x1e0] ss:$8 sps:$4 sm:$0xff]   ;;  %v3518_v41 = vld [vmem:[%s5163_s1 + $0x1d4] ss:$8 sps:$4 sm:$0xff]  }
   0xf   :  { %1897 = vmatpush1.bf16.msra.mxu0 %v3478_v14  ;;  %v3520_v42 = vld [vmem:[%s5163_s1 + $0xd0] ss:$8 sps:$4 sm:$0xff]   ;;  %v3522_v44 = vld [vmem:[%s5163_s1 + $0xc4] ss:$8 sps:$4 sm:$0xff]   ;;  %v3526_v46 = vld [vmem:[%s5163_s1 + $0xc0] ss:$8 sps:$4 sm:$0xff]  }
  0x10   :  { %2038 = vmatpush1.bf16.msra.mxu1 %v3479_v15  ;;  %1898 = vmatprep.subr.bf16.mxu0 %v3480_v16  ;;  %v3521_v43 = vld [vmem:[%s5163_s1 + $0x1d0] ss:$8 sps:$4 sm:$0xff]   ;;  %v3524_v45 = vld [vmem:[%s5163_s1 + $0x1c4] ss:$8 sps:$4 sm:$0xff]   ;;  %v3527_v47 = vld [vmem:[%s5163_s1 + $0x1c0] ss:$8 sps:$4 sm:$0xff]  }
  0x11   :  { %2039 = vmatprep.subr.bf16.mxu1 %v3482_v17  ;;  %v3528_v48 = vld [vmem:[%s5163_s1 + $0xb4] ss:$8 sps:$4 sm:$0xff]   ;;  %v3554_v49 = vld [vmem:[%s5164_s0 + $0x4] ss:$44 sps:$4 sm:$0xff]   ;;  %v3557_v51 = vld [vmem:[%s5164_s0 + $0xc] ss:$44 sps:$4 sm:$0xff]  }
  0x12   :  { %v3530_v50 = vld [vmem:[%s5163_s1 + $0x1b4] ss:$8 sps:$4 sm:$0xff]   ;;  %1922 = vmatprep.mubr.bf16.mxu0 %v3554_v49  ;;  %v3532_v52 = vld [vmem:[%s5163_s1 + $0xb0] ss:$8 sps:$4 sm:$0xff]   ;;  %2063 = vmatprep.mubr.bf16.mxu1 %v3557_v51  ;;  %v3534_v54 = vld [vmem:[%s5163_s1 + $0xa4] ss:$8 sps:$4 sm:$0xff]  }
  0x13   :  { %1899 = vmatpush1.bf16.msra.mxu0 %v3484_v18  ;;  %v3533_v53 = vld [vmem:[%s5163_s1 + $0x1b0] ss:$8 sps:$4 sm:$0xff]   ;;  %v3536_v55 = vld [vmem:[%s5163_s1 + $0x1a4] ss:$8 sps:$4 sm:$0xff]   ;;  %v3538_v56 = vld [vmem:[%s5163_s1 + $0xa0] ss:$8 sps:$4 sm:$0xff]  }
  0x14   :  { %2040 = vmatpush1.bf16.msra.mxu1 %v3485_v19  ;;  %1900 = vmatprep.subr.bf16.mxu0 %v3486_v20  ;;  %v3539_v57 = vld [vmem:[%s5163_s1 + $0x1a0] ss:$8 sps:$4 sm:$0xff]   ;;  %v3540_v58 = vld [vmem:[%s5163_s1 + $0x94] ss:$8 sps:$4 sm:$0xff]   ;;  %v3544_v60 = vld [vmem:[%s5163_s1 + $0x90] ss:$8 sps:$4 sm:$0xff]  }
  0x15   :  { %2041 = vmatprep.subr.bf16.mxu1 %v3488_v21  ;;  %v3542_v59 = vld [vmem:[%s5163_s1 + $0x194] ss:$8 sps:$4 sm:$0xff]   ;;  %v3545_v61 = vld [vmem:[%s5163_s1 + $0x190] ss:$8 sps:$4 sm:$0xff]   ;;  %v3546_v62 = vld [vmem:[%s5163_s1 + $0x84] ss:$8 sps:$4 sm:$0xff]  }
  0x16   :  { %v3548_v63 = vld [vmem:[%s5163_s1 + $0x184] ss:$8 sps:$4 sm:$0xff]   ;;  %v3550_v0 = vld [vmem:[%s5163_s1 + $0x80] ss:$8 sps:$4 sm:$0xff]   ;;  %v3560_v2 = vld [vmem:[%s5163_s1 + $0x274] ss:$8 sps:$4 sm:$0xff]  }
  0x17   :  { %1901 = vmatpush1.bf16.msra.mxu0 %v3490_v22  ;;  %v3551_v1 = vld [vmem:[%s5163_s1 + $0x180] ss:$8 sps:$4 sm:$0xff]   ;;  %v3563_v3 = vld [vmem:[%s5163_s1 + $0x374] ss:$8 sps:$4 sm:$0xff]   ;;  %v3558_v6 = vld [vmem:[%s5163_s1 + $0x270] ss:$8 sps:$4 sm:$0xff]  }
  0x18   :  { %2042 = vmatpush1.bf16.msra.mxu1 %v3491_v23  ;;  %1902 = vmatprep.subr.bf16.mxu0 %v3492_v24  ;;  %v3552_v4 = vld [vmem:[%s5164_s0] ss:$44 sps:$4 sm:$0xff]   ;;  %v3555_v5 = vld [vmem:[%s5164_s0 + $0x8] ss:$44 sps:$4 sm:$0xff]   ;;  %v3561_v7 = vld [vmem:[%s5163_s1 + $0x370] ss:$8 sps:$4 sm:$0xff]  }
  0x19   :  { %2043 = vmatprep.subr.bf16.mxu1 %v3494_v25  ;;  %v3566_v8 = vld [vmem:[%s5163_s1 + $0x264] ss:$8 sps:$4 sm:$0xff]   ;;  %v3567_v9 = vld [vmem:[%s5164_s0 + $0x5c] ss:$44 sps:$4 sm:$0xff]   ;;  %v3576_v18 = vld [vmem:[%s5163_s1 + $0x250] ss:$8 sps:$4 sm:$0xff]  }
  0x1a   :  { %v3569_v10 = vld [vmem:[%s5164_s0 + $0x64] ss:$44 sps:$4 sm:$0xff]   ;;  %v3564_v12 = vld [vmem:[%s5163_s1 + $0x260] ss:$8 sps:$4 sm:$0xff]   ;;  %v3578_v14 = vld [vmem:[%s5163_s1 + $0x254] ss:$8 sps:$4 sm:$0xff]  }
  0x1b   :  { %1903 = vmatpush1.bf16.msra.mxu0 %v3496_v26  ;;  %v3575_v11 = vld [vmem:[%s5163_s1 + $0x364] ss:$8 sps:$4 sm:$0xff]   ;;  %v3573_v13 = vld [vmem:[%s5163_s1 + $0x360] ss:$8 sps:$4 sm:$0xff]   ;;  %v3581_v15 = vld [vmem:[%s5163_s1 + $0x354] ss:$8 sps:$4 sm:$0xff]  }
  0x1c   :  { %2044 = vmatpush1.bf16.msra.mxu1 %v3497_v27  ;;  %1904 = vmatprep.subr.bf16.mxu0 %v3498_v28  ;;  %v3571_v16 = vld [vmem:[%s5164_s0 + $0x58] ss:$44 sps:$4 sm:$0xff]   ;;  %v3572_v17 = vld [vmem:[%s5164_s0 + $0x60] ss:$44 sps:$4 sm:$0xff]   ;;  %v3584_v21 = vld [vmem:[%s5164_s0 + $0xbc] ss:$44 sps:$4 sm:$0xff]  }
  0x1d   :  { %2045 = vmatprep.subr.bf16.mxu1 %v3500_v29  ;;  %v3579_v19 = vld [vmem:[%s5163_s1 + $0x350] ss:$8 sps:$4 sm:$0xff]   ;;  %v3582_v20 = vld [vmem:[%s5164_s0 + $0xb4] ss:$44 sps:$4 sm:$0xff]   ;;  %v3590_v22 = vld [vmem:[%s5163_s1 + $0x244] ss:$8 sps:$4 sm:$0xff]  }
  0x1e   :  { %v3593_v23 = vld [vmem:[%s5163_s1 + $0x344] ss:$8 sps:$4 sm:$0xff]   ;;  %v3588_v24 = vld [vmem:[%s5163_s1 + $0x240] ss:$8 sps:$4 sm:$0xff]   ;;  %v3596_v26 = vld [vmem:[%s5163_s1 + $0x234] ss:$8 sps:$4 sm:$0xff]  }
  0x1f   :  { %1905 = vmatpush1.bf16.msra.mxu0 %v3502_v30  ;;  %v3591_v25 = vld [vmem:[%s5163_s1 + $0x340] ss:$8 sps:$4 sm:$0xff]   ;;  %v3605_v27 = vld [vmem:[%s5163_s1 + $0x334] ss:$8 sps:$4 sm:$0xff]   ;;  %v3587_v29 = vld [vmem:[%s5164_s0 + $0xb8] ss:$44 sps:$4 sm:$0xff]  }
  0x20   :  { %2046 = vmatpush1.bf16.msra.mxu1 %v3503_v31  ;;  %1906 = vmatprep.subr.bf16.mxu0 %v3504_v32  ;;  %v3586_v28 = vld [vmem:[%s5164_s0 + $0xb0] ss:$44 sps:$4 sm:$0xff]   ;;  %v3597_v31 = vld [vmem:[%s5164_s0 + $0x10c] ss:$44 sps:$4 sm:$0xff]   ;;  %v3599_v32 = vld [vmem:[%s5164_s0 + $0x114] ss:$44 sps:$4 sm:$0xff]  }
  0x21   :  { %2047 = vmatprep.subr.bf16.mxu1 %v3506_v33  ;;  %v3594_v30 = vld [vmem:[%s5163_s1 + $0x230] ss:$8 sps:$4 sm:$0xff]   ;;  %v3616_v49 = vld [vmem:[%s5164_s0 + $0x160] ss:$44 sps:$4 sm:$0xff]  }
  0x22   :  { %v3603_v33 = vld [vmem:[%s5163_s1 + $0x330] ss:$8 sps:$4 sm:$0xff]   ;;  %v3633_v51 = vld [vmem:[%s5163_s1 + $0x300] ss:$8 sps:$4 sm:$0xff]  }
  0x23   :  { %1907 = vmatpush2.bf16.msra.mxu0 %v3508_v34  ;;  %v3608_v34 = vld [vmem:[%s5163_s1 + $0x224] ss:$8 sps:$4 sm:$0xff]  }
  0x24   :  { %2048 = vmatpush2.bf16.msra.mxu1 %v3509_v35  ;;  %1908 = vmatprep.subr.bf16.mxu0 %v3510_v36  ;;  %v3611_v35 = vld [vmem:[%s5163_s1 + $0x324] ss:$8 sps:$4 sm:$0xff]   ;;  %v3606_v36 = vld [vmem:[%s5163_s1 + $0x220] ss:$8 sps:$4 sm:$0xff]  }
  0x25   :  { %2049 = vmatprep.subr.bf16.mxu1 %v3512_v37  ;;  %v3601_v37 = vld [vmem:[%s5164_s0 + $0x108] ss:$44 sps:$4 sm:$0xff]  }
  0x27   :  { %1909 = vmatpush2.bf16.msra.mxu0 %v3514_v38  ;;  %v3602_v38 = vld [vmem:[%s5164_s0 + $0x110] ss:$44 sps:$4 sm:$0xff]  }
  0x28   :  { %2050 = vmatpush2.bf16.msra.mxu1 %v3515_v39  ;;  %1910 = vmatprep.subr.bf16.mxu0 %v3516_v40  ;;  %v3609_v39 = vld [vmem:[%s5163_s1 + $0x320] ss:$8 sps:$4 sm:$0xff]   ;;  %v3612_v40 = vld [vmem:[%s5164_s0 + $0x164] ss:$44 sps:$4 sm:$0xff]  }
  0x29   :  { %2051 = vmatprep.subr.bf16.mxu1 %v3518_v41  ;;  %v3620_v41 = vld [vmem:[%s5163_s1 + $0x214] ss:$8 sps:$4 sm:$0xff]  }
  0x2b   :  { %1911 = vmatpush2.bf16.msra.mxu0 %v3520_v42  ;;  %v3623_v42 = vld [vmem:[%s5163_s1 + $0x314] ss:$8 sps:$4 sm:$0xff]  }
  0x2c   :  { %2052 = vmatpush2.bf16.msra.mxu1 %v3521_v43  ;;  %1912 = vmatprep.subr.bf16.mxu0 %v3522_v44  ;;  %v3614_v43 = vld [vmem:[%s5164_s0 + $0x16c] ss:$44 sps:$4 sm:$0xff]  }
  0x2d   :  { %2053 = vmatprep.subr.bf16.mxu1 %v3524_v45  ;;  %v3618_v44 = vld [vmem:[%s5163_s1 + $0x210] ss:$8 sps:$4 sm:$0xff]  }
  0x2e   :  { %v3621_v45 = vld [vmem:[%s5163_s1 + $0x310] ss:$8 sps:$4 sm:$0xff]  }
  0x2f   :  { %1913 = vmatpush2.bf16.msra.mxu0 %v3526_v46  ;;  %v3630_v46 = vld [vmem:[%s5163_s1 + $0x204] ss:$8 sps:$4 sm:$0xff]  }
  0x30   :  { %2054 = vmatpush2.bf16.msra.mxu1 %v3527_v47  ;;  %1914 = vmatprep.subr.bf16.mxu0 %v3528_v48  ;;  %v3635_v47 = vld [vmem:[%s5163_s1 + $0x304] ss:$8 sps:$4 sm:$0xff]   ;;  %v3628_v48 = vld [vmem:[%s5163_s1 + $0x200] ss:$8 sps:$4 sm:$0xff]  }
  0x31   :  { %2055 = vmatprep.subr.bf16.mxu1 %v3530_v50  ;;  %v3617_v50 = vld [vmem:[%s5164_s0 + $0x168] ss:$44 sps:$4 sm:$0xff]  }
  0x33   :  { %1915 = vmatpush2.bf16.msra.mxu0 %v3532_v52  ;;  %v3638_v52 = vld [vmem:[%s5163_s1 + $0x2f4] ss:$8 sps:$4 sm:$0xff]  }
  0x34   :  { %2056 = vmatpush2.bf16.msra.mxu1 %v3533_v53  ;;  %1916 = vmatprep.subr.bf16.mxu0 %v3534_v54  ;;  %v3641_v53 = vld [vmem:[%s5163_s1 + $0x3f4] ss:$8 sps:$4 sm:$0xff]  }
  0x35   :  { %2057 = vmatprep.subr.bf16.mxu1 %v3536_v55  ;;  %v3624_v54 = vld [vmem:[%s5164_s0 + $0x1bc] ss:$44 sps:$4 sm:$0xff]   ;;  %v3626_v55 = vld [vmem:[%s5164_s0 + $0x1c4] ss:$44 sps:$4 sm:$0xff]  }
  0x37   :  { %1917 = vmatpush2.bf16.msra.mxu0 %v3538_v56  ;;  %v3636_v56 = vld [vmem:[%s5163_s1 + $0x2f0] ss:$8 sps:$4 sm:$0xff]  }
  0x38   :  { %2058 = vmatpush2.bf16.msra.mxu1 %v3539_v57  ;;  %1918 = vmatprep.subr.bf16.mxu0 %v3540_v58  ;;  %v3639_v57 = vld [vmem:[%s5163_s1 + $0x3f0] ss:$8 sps:$4 sm:$0xff]   ;;  %v3650_v58 = vld [vmem:[%s5163_s1 + $0x2e4] ss:$8 sps:$4 sm:$0xff]  }
  0x39   :  { %2059 = vmatprep.subr.bf16.mxu1 %v3542_v59  ;;  %v3653_v59 = vld [vmem:[%s5163_s1 + $0x3e4] ss:$8 sps:$4 sm:$0xff]  }
  0x3b   :  { %1919 = vmatpush2.bf16.msra.mxu0 %v3544_v60  ;;  %v3648_v60 = vld [vmem:[%s5163_s1 + $0x2e0] ss:$8 sps:$4 sm:$0xff]  }
  0x3c   :  { %2060 = vmatpush2.bf16.msra.mxu1 %v3545_v61  ;;  %1920 = vmatprep.subr.bf16.mxu0 %v3546_v62  ;;  %v3651_v61 = vld [vmem:[%s5163_s1 + $0x3e0] ss:$8 sps:$4 sm:$0xff]   ;;  %v3631_v62 = vld [vmem:[%s5164_s0 + $0x1b8] ss:$44 sps:$4 sm:$0xff]  }
  0x3d   :  { %2061 = vmatprep.subr.bf16.mxu1 %v3548_v63  ;;  %v3660_v63 = vld [vmem:[%s5163_s1 + $0x2d4] ss:$8 sps:$4 sm:$0xff]  }
  0x3f   :  { %1921 = vmatpush2.bf16.msra.mxu0 %v3550_v0  ;;  %v3665_v0 = vld [vmem:[%s5163_s1 + $0x3d4] ss:$8 sps:$4 sm:$0xff]  }
  0x40   :  { %2062 = vmatpush2.bf16.msra.mxu1 %v3551_v1  ;;  %2172 = vmatprep.subr.bf16.mxu0 %v3560_v2  ;;  %v3632_v1 = vld [vmem:[%s5164_s0 + $0x1c0] ss:$44 sps:$4 sm:$0xff]  }
  0x41   :  { %2313 = vmatprep.subr.bf16.mxu1 %v3563_v3  ;;  %v3642_v2 = vld [vmem:[%s5164_s0 + $0x214] ss:$44 sps:$4 sm:$0xff]   ;;  %v3644_v3 = vld [vmem:[%s5164_s0 + $0x21c] ss:$44 sps:$4 sm:$0xff]  }
  0x42   :  { %1923 = vmatmul.mubr.bf16.vlgmr.msra.gmra.mxu0 %v3552_v4  ;;  %v3658_v4 = vld [vmem:[%s5163_s1 + $0x2d0] ss:$8 sps:$4 sm:$0xff]  }
  0x43   :  { %2064 = vmatmul.mubr.bf16.vlgmr.msra.gmra.mxu1 %v3555_v5  ;;  %2173 = vmatpush1.bf16.msra.mxu0 %v3558_v6  ;;  %v3663_v5 = vld [vmem:[%s5163_s1 + $0x3d0] ss:$8 sps:$4 sm:$0xff]   ;;  %v3668_v6 = vld [vmem:[%s5163_s1 + $0x2c4] ss:$8 sps:$4 sm:$0xff]  }
  0x44   :  { %2314 = vmatpush1.bf16.msra.mxu1 %v3561_v7  ;;  %2174 = vmatprep.subr.bf16.mxu0 %v3566_v8  ;;  %v3675_v7 = vld [vmem:[%s5163_s1 + $0x3c4] ss:$8 sps:$4 sm:$0xff]   ;;  %v3666_v8 = vld [vmem:[%s5163_s1 + $0x2c0] ss:$8 sps:$4 sm:$0xff]  }
  0x45   :  { %1932 = vmatprep.mubr.bf16.mxu0 %v3567_v9  ;;  %2073 = vmatprep.mubr.bf16.mxu1 %v3569_v10  ;;  %v3646_v9 = vld [vmem:[%s5164_s0 + $0x210] ss:$44 sps:$4 sm:$0xff]   ;;  %v3647_v10 = vld [vmem:[%s5164_s0 + $0x218] ss:$44 sps:$4 sm:$0xff]  }
  0x46   :  { %2315 = vmatprep.subr.bf16.mxu1 %v3575_v11  ;;  %v3673_v11 = vld [vmem:[%s5163_s1 + $0x3c0] ss:$8 sps:$4 sm:$0xff]  }
  0x47   :  { %2175 = vmatpush1.bf16.msra.mxu0 %v3564_v12  ;;  %v3680_v12 = vld [vmem:[%s5163_s1 + $0x2b4] ss:$8 sps:$4 sm:$0xff]  }
  0x48   :  { %2316 = vmatpush1.bf16.msra.mxu1 %v3573_v13  ;;  %2176 = vmatprep.subr.bf16.mxu0 %v3578_v14  ;;  %v3683_v13 = vld [vmem:[%s5163_s1 + $0x3b4] ss:$8 sps:$4 sm:$0xff]   ;;  %v3654_v14 = vld [vmem:[%s5164_s0 + $0x26c] ss:$44 sps:$4 sm:$0xff]  }
  0x49   :  { %2317 = vmatprep.subr.bf16.mxu1 %v3581_v15  ;;  %v3656_v15 = vld [vmem:[%s5164_s0 + $0x274] ss:$44 sps:$4 sm:$0xff]  }
  0x4a   :  { %1933 = vmatmul.mubr.bf16.gmra.mxu0 %v3571_v16  ;;  %v3678_v16 = vld [vmem:[%s5163_s1 + $0x2b0] ss:$8 sps:$4 sm:$0xff]  }
  0x4b   :  { %2074 = vmatmul.mubr.bf16.gmra.mxu1 %v3572_v17  ;;  %2177 = vmatpush1.bf16.msra.mxu0 %v3576_v18  ;;  %v3681_v17 = vld [vmem:[%s5163_s1 + $0x3b0] ss:$8 sps:$4 sm:$0xff]   ;;  %v3692_v18 = vld [vmem:[%s5163_s1 + $0x2a4] ss:$8 sps:$4 sm:$0xff]  }
  0x4c   :  { %2318 = vmatpush1.bf16.msra.mxu1 %v3579_v19  ;;  %1942 = vmatprep.mubr.bf16.mxu0 %v3582_v20  ;;  %v3695_v19 = vld [vmem:[%s5163_s1 + $0x3a4] ss:$8 sps:$4 sm:$0xff]   ;;  %v3690_v20 = vld [vmem:[%s5163_s1 + $0x2a0] ss:$8 sps:$4 sm:$0xff]  }
  0x4d   :  { %2083 = vmatprep.mubr.bf16.mxu1 %v3584_v21  ;;  %2178 = vmatprep.subr.bf16.mxu0 %v3590_v22  ;;  %v3661_v21 = vld [vmem:[%s5164_s0 + $0x268] ss:$44 sps:$4 sm:$0xff]   ;;  %v3662_v22 = vld [vmem:[%s5164_s0 + $0x270] ss:$44 sps:$4 sm:$0xff]  }
  0x4e   :  { %2319 = vmatprep.subr.bf16.mxu1 %v3593_v23  ;;  %v3693_v23 = vld [vmem:[%s5163_s1 + $0x3a0] ss:$8 sps:$4 sm:$0xff]  }
  0x4f   :  { %2179 = vmatpush1.bf16.msra.mxu0 %v3588_v24  ;;  %v3698_v24 = vld [vmem:[%s5163_s1 + $0x294] ss:$8 sps:$4 sm:$0xff]  }
  0x50   :  { %2320 = vmatpush1.bf16.msra.mxu1 %v3591_v25  ;;  %2180 = vmatprep.subr.bf16.mxu0 %v3596_v26  ;;  %v3703_v25 = vld [vmem:[%s5163_s1 + $0x394] ss:$8 sps:$4 sm:$0xff]   ;;  %v3669_v26 = vld [vmem:[%s5164_s0 + $0x2c4] ss:$44 sps:$4 sm:$0xff]  }
  0x51   :  { %2321 = vmatprep.subr.bf16.mxu1 %v3605_v27  ;;  %v3671_v27 = vld [vmem:[%s5164_s0 + $0x2cc] ss:$44 sps:$4 sm:$0xff]  }
  0x52   :  { %1943 = vmatmul.mubr.bf16.gmra.mxu0 %v3586_v28  ;;  %v3696_v28 = vld [vmem:[%s5163_s1 + $0x290] ss:$8 sps:$4 sm:$0xff]  }
  0x53   :  { %2084 = vmatmul.mubr.bf16.gmra.mxu1 %v3587_v29  ;;  %1952 = vmatprep.mubr.bf16.mxu0 %v3597_v31  ;;  %v3701_v29 = vld [vmem:[%s5163_s1 + $0x390] ss:$8 sps:$4 sm:$0xff]   ;;  %v3711_v31 = vld [vmem:[%s5163_s1 + $0x384] ss:$8 sps:$4 sm:$0xff]  }
  0x54   :  { %2093 = vmatprep.mubr.bf16.mxu1 %v3599_v32  ;;  %2181 = vmatpush1.bf16.msra.mxu0 %v3594_v30  ;;  %v3708_v30 = vld [vmem:[%s5163_s1 + $0x284] ss:$8 sps:$4 sm:$0xff]   ;;  %v3706_v32 = vld [vmem:[%s5163_s1 + $0x280] ss:$8 sps:$4 sm:$0xff]  }
  0x55   :  { %2322 = vmatpush1.bf16.msra.mxu1 %v3603_v33  ;;  %2182 = vmatprep.subr.bf16.mxu0 %v3608_v34  ;;  %v3676_v33 = vld [vmem:[%s5164_s0 + $0x2c0] ss:$44 sps:$4 sm:$0xff]  }
  0x56   :  { %2323 = vmatprep.subr.bf16.mxu1 %v3611_v35  ;;  %v3709_v34 = vld [vmem:[%s5163_s1 + $0x380] ss:$8 sps:$4 sm:$0xff]   ;;  %v3720_v35 = vld [vmem:[%s5163_s1 + $0x474] ss:$8 sps:$4 sm:$0xff]  }
  0x58   :  { %2183 = vmatpush1.bf16.msra.mxu0 %v3606_v36  ;;  %v3723_v36 = vld [vmem:[%s5163_s1 + $0x574] ss:$8 sps:$4 sm:$0xff]  }
  0x59   :  { %2324 = vmatpush1.bf16.msra.mxu1 %v3609_v39  ;;  %2184 = vmatprep.subr.bf16.mxu0 %v3620_v41  ;;  %v3686_v39 = vld [vmem:[%s5164_s0 + $0x324] ss:$44 sps:$4 sm:$0xff]   ;;  %v225_v41 = vld [vmem:[%s5164_s0 + $0x378] sm:$0xff] }
  0x5a   :  { %2325 = vmatprep.subr.bf16.mxu1 %v3623_v42  ;;  %1953 = vmatmul.mubr.bf16.gmra.mxu0 %v3601_v37  ;;  %v3677_v37 = vld [vmem:[%s5164_s0 + $0x2c8] ss:$44 sps:$4 sm:$0xff]   ;;  %v3688_v42 = vld [vmem:[%s5164_s0 + $0x318] ss:$44 sps:$4 sm:$0xff]  }
  0x5b   :  { %2094 = vmatmul.mubr.bf16.gmra.mxu1 %v3602_v38  ;;  %1962 = vmatprep.mubr.bf16.mxu0 %v3612_v40  ;;  %v3684_v38 = vld [vmem:[%s5164_s0 + $0x31c] ss:$44 sps:$4 sm:$0xff]   ;;  %v224_v40 = vld [vmem:[%s5164_s0 + $0x370] sm:$0xff] }
  0x5c   :  { %2103 = vmatprep.mubr.bf16.mxu1 %v3614_v43  ;;  %2185 = vmatpush1.bf16.msra.mxu0 %v3618_v44  ;;  %v3689_v43 = vld [vmem:[%s5164_s0 + $0x320] ss:$44 sps:$4 sm:$0xff]   ;;  %v3227_v44 = vcombine.high %v224_v40, %v224_v40 }
  0x5d   :  { %2326 = vmatpush1.bf16.msra.mxu1 %v3621_v45  ;;  %2186 = vmatprep.subr.bf16.mxu0 %v3630_v46  ;;  %v3229_v45 = vcombine.high %v225_v41, %v225_v41  ;;  %v3226_v46 = vcombine.low %v224_v40, %v224_v40  ;;  %v3796_v40 = vld [vmem:[%s5163_s1 + $0x4e0] ss:$8 sps:$4 sm:$0xff]  }
  0x5e   :  { %2327 = vmatprep.subr.bf16.mxu1 %v3635_v47  ;;  %v3228_v47 = vcombine.low %v225_v41, %v225_v41  ;;  %v3805_v41 = vld [vmem:[%s5163_s1 + $0x4d4] ss:$8 sps:$4 sm:$0xff]  }
  0x60   :  { %2187 = vmatpush1.bf16.msra.mxu0 %v3628_v48  ;;  %v3714_v48 = vld [vmem:[%s5164_s0 + $0x14] ss:$44 sps:$4 sm:$0xff]  }
  0x61   :  { %2328 = vmatpush1.bf16.msra.mxu1 %v3633_v51  ;;  %2188 = vmatprep.subr.bf16.mxu0 %v3638_v52  ;;  %v3715_v51 = vld [vmem:[%s5164_s0 + $0x18] ss:$44 sps:$4 sm:$0xff]  }
  0x62   :  { %2329 = vmatprep.subr.bf16.mxu1 %v3641_v53  ;;  %1963 = vmatmul.mubr.bf16.gmra.mxu0 %v3616_v49  ;;  %v3717_v49 = vld [vmem:[%s5164_s0 + $0x1c] ss:$44 sps:$4 sm:$0xff]   ;;  %v3718_v52 = vld [vmem:[%s5163_s1 + $0x470] ss:$8 sps:$4 sm:$0xff]  }
  0x63   :  { %2104 = vmatmul.mubr.bf16.gmra.mxu1 %v3617_v50  ;;  %1972 = vmatprep.mubr.bf16.mxu0 %v3624_v54  ;;  %v3712_v50 = vld [vmem:[%s5164_s0 + $0x10] ss:$44 sps:$4 sm:$0xff]   ;;  %v3726_v54 = vld [vmem:[%s5163_s1 + $0x464] ss:$8 sps:$4 sm:$0xff]  }
  0x64   :  { %2113 = vmatprep.mubr.bf16.mxu1 %v3626_v55  ;;  %2189 = vmatpush2.bf16.msra.mxu0 %v3636_v56  ;;  %v3721_v53 = vld [vmem:[%s5163_s1 + $0x570] ss:$8 sps:$4 sm:$0xff]   ;;  %v3729_v56 = vld [vmem:[%s5164_s0 + $0x74] ss:$44 sps:$4 sm:$0xff]  }
  0x65   :  { %2330 = vmatpush2.bf16.msra.mxu1 %v3639_v57  ;;  %2190 = vmatprep.subr.bf16.mxu0 %v3650_v58  ;;  %v3727_v55 = vld [vmem:[%s5164_s0 + $0x6c] ss:$44 sps:$4 sm:$0xff]   ;;  %v3724_v58 = vld [vmem:[%s5163_s1 + $0x460] ss:$8 sps:$4 sm:$0xff]  }
  0x66   :  { %2331 = vmatprep.subr.bf16.mxu1 %v3653_v59  ;;  %v3738_v57 = vld [vmem:[%s5163_s1 + $0x564] ss:$8 sps:$4 sm:$0xff]   ;;  %v3736_v59 = vld [vmem:[%s5163_s1 + $0x560] ss:$8 sps:$4 sm:$0xff]  }
  0x68   :  { %2191 = vmatpush2.bf16.msra.mxu0 %v3648_v60  ;;  %v3735_v60 = vld [vmem:[%s5163_s1 + $0x454] ss:$8 sps:$4 sm:$0xff]  }
  0x69   :  { %2332 = vmatpush2.bf16.msra.mxu1 %v3651_v61  ;;  %2192 = vmatprep.subr.bf16.mxu0 %v3660_v63  ;;  %v3759_v61 = vld [vmem:[%s5163_s1 + $0x554] ss:$8 sps:$4 sm:$0xff]  }
  0x6a   :  { %2333 = vmatprep.subr.bf16.mxu1 %v3665_v0  ;;  %1973 = vmatmul.mubr.bf16.gmra.mxu0 %v3631_v62  ;;  %v3731_v62 = vld [vmem:[%s5164_s0 + $0x68] ss:$44 sps:$4 sm:$0xff]   ;;  %v3732_v63 = vld [vmem:[%s5164_s0 + $0x70] ss:$44 sps:$4 sm:$0xff]  }
  0x6b   :  { %2114 = vmatmul.mubr.bf16.gmra.mxu1 %v3632_v1  ;;  %1982 = vmatprep.mubr.bf16.mxu0 %v3642_v2  ;;  %v3733_v0 = vld [vmem:[%s5163_s1 + $0x450] ss:$8 sps:$4 sm:$0xff]  }
  0x6c   :  { %2123 = vmatprep.mubr.bf16.mxu1 %v3644_v3  ;;  %2193 = vmatpush2.bf16.msra.mxu0 %v3658_v4  ;;  %v3739_v1 = vld [vmem:[%s5164_s0 + $0xc4] ss:$44 sps:$4 sm:$0xff]   ;;  %v3741_v2 = vld [vmem:[%s5164_s0 + $0xcc] ss:$44 sps:$4 sm:$0xff]  }
  0x6d   :  { %2334 = vmatpush2.bf16.msra.mxu1 %v3663_v5  ;;  %2194 = vmatprep.subr.bf16.mxu0 %v3668_v6  ;;  %v3747_v3 = vld [vmem:[%s5163_s1 + $0x444] ss:$8 sps:$4 sm:$0xff]   ;;  %v3757_v4 = vld [vmem:[%s5163_s1 + $0x550] ss:$8 sps:$4 sm:$0xff]   ;;  %v3745_v6 = vld [vmem:[%s5163_s1 + $0x440] ss:$8 sps:$4 sm:$0xff]  }
  0x6e   :  { %2335 = vmatprep.subr.bf16.mxu1 %v3675_v7  ;;  %v3774_v5 = vld [vmem:[%s5163_s1 + $0x544] ss:$8 sps:$4 sm:$0xff]  }
  0x6f   :  { %v3743_v7 = vld [vmem:[%s5164_s0 + $0xc0] ss:$44 sps:$4 sm:$0xff]  }
  0x70   :  { %2195 = vmatpush2.bf16.msra.mxu0 %v3666_v8  ;;  %v3750_v8 = vld [vmem:[%s5163_s1 + $0x434] ss:$8 sps:$4 sm:$0xff]  }
  0x71   :  { %2336 = vmatpush2.bf16.msra.mxu1 %v3673_v11  ;;  %2196 = vmatprep.subr.bf16.mxu0 %v3680_v12  ;;  %v3748_v11 = vld [vmem:[%s5163_s1 + $0x430] ss:$8 sps:$4 sm:$0xff]   ;;  %v3751_v12 = vld [vmem:[%s5164_s0 + $0x11c] ss:$44 sps:$4 sm:$0xff]  }
  0x72   :  { %2337 = vmatprep.subr.bf16.mxu1 %v3683_v13  ;;  %1983 = vmatmul.mubr.bf16.gmra.mxu0 %v3646_v9  ;;  %v3772_v9 = vld [vmem:[%s5163_s1 + $0x540] ss:$8 sps:$4 sm:$0xff]   ;;  %v3753_v13 = vld [vmem:[%s5164_s0 + $0x124] ss:$44 sps:$4 sm:$0xff]  }
  0x73   :  { %2124 = vmatmul.mubr.bf16.gmra.mxu1 %v3647_v10  ;;  %1992 = vmatprep.mubr.bf16.mxu0 %v3654_v14  ;;  %v3744_v10 = vld [vmem:[%s5164_s0 + $0xc8] ss:$44 sps:$4 sm:$0xff]  }
  0x74   :  { %2133 = vmatprep.mubr.bf16.mxu1 %v3656_v15  ;;  %2197 = vmatpush2.bf16.msra.mxu0 %v3678_v16  ;;  %v3789_v14 = vld [vmem:[%s5163_s1 + $0x534] ss:$8 sps:$4 sm:$0xff]   ;;  %v3762_v15 = vld [vmem:[%s5163_s1 + $0x424] ss:$8 sps:$4 sm:$0xff]   ;;  %v3787_v16 = vld [vmem:[%s5163_s1 + $0x530] ss:$8 sps:$4 sm:$0xff]  }
  0x75   :  { %2338 = vmatpush2.bf16.msra.mxu1 %v3681_v17  ;;  %2198 = vmatprep.subr.bf16.mxu0 %v3692_v18  ;;  %v3810_v17 = vld [vmem:[%s5163_s1 + $0x524] ss:$8 sps:$4 sm:$0xff]   ;;  %v3760_v18 = vld [vmem:[%s5163_s1 + $0x420] ss:$8 sps:$4 sm:$0xff]  }
  0x76   :  { %2339 = vmatprep.subr.bf16.mxu1 %v3695_v19  ;;  %v3755_v19 = vld [vmem:[%s5164_s0 + $0x118] ss:$44 sps:$4 sm:$0xff]  }
  0x78   :  { %2199 = vmatpush2.bf16.msra.mxu0 %v3690_v20  ;;  %v3756_v20 = vld [vmem:[%s5164_s0 + $0x120] ss:$44 sps:$4 sm:$0xff]  }
  0x79   :  { %2340 = vmatpush2.bf16.msra.mxu1 %v3693_v23  ;;  %2200 = vmatprep.subr.bf16.mxu0 %v3698_v24  ;;  %v3763_v23 = vld [vmem:[%s5164_s0 + $0x174] ss:$44 sps:$4 sm:$0xff]   ;;  %v3765_v24 = vld [vmem:[%s5164_s0 + $0x17c] ss:$44 sps:$4 sm:$0xff]  }
  0x7a   :  { %2341 = vmatprep.subr.bf16.mxu1 %v3703_v25  ;;  %1993 = vmatmul.mubr.bf16.gmra.mxu0 %v3661_v21  ;;  %v3771_v21 = vld [vmem:[%s5163_s1 + $0x414] ss:$8 sps:$4 sm:$0xff]   ;;  %v3769_v25 = vld [vmem:[%s5163_s1 + $0x410] ss:$8 sps:$4 sm:$0xff]  }
  0x7b   :  { %2134 = vmatmul.mubr.bf16.gmra.mxu1 %v3662_v22  ;;  %2002 = vmatprep.mubr.bf16.mxu0 %v3669_v26  ;;  %v3808_v22 = vld [vmem:[%s5163_s1 + $0x520] ss:$8 sps:$4 sm:$0xff]   ;;  %v3781_v26 = vld [vmem:[%s5163_s1 + $0x404] ss:$8 sps:$4 sm:$0xff]  }
  0x7c   :  { %2143 = vmatprep.mubr.bf16.mxu1 %v3671_v27  ;;  %2201 = vmatpush2.bf16.msra.mxu0 %v3696_v28  ;;  %v3825_v27 = vld [vmem:[%s5163_s1 + $0x514] ss:$8 sps:$4 sm:$0xff]   ;;  %v3823_v28 = vld [vmem:[%s5163_s1 + $0x510] ss:$8 sps:$4 sm:$0xff]  }
  0x7d   :  { %2342 = vmatpush2.bf16.msra.mxu1 %v3701_v29  ;;  %2202 = vmatprep.subr.bf16.mxu0 %v3708_v30  ;;  %v3842_v29 = vld [vmem:[%s5163_s1 + $0x504] ss:$8 sps:$4 sm:$0xff]   ;;  %v3767_v30 = vld [vmem:[%s5164_s0 + $0x170] ss:$44 sps:$4 sm:$0xff]  }
  0x7e   :  { %2343 = vmatprep.subr.bf16.mxu1 %v3711_v31  ;;  %v3779_v31 = vld [vmem:[%s5163_s1 + $0x400] ss:$8 sps:$4 sm:$0xff]  }
  0x80   :  { %2203 = vmatpush2.bf16.msra.mxu0 %v3706_v32  ;;  %v3786_v32 = vld [vmem:[%s5163_s1 + $0x4f4] ss:$8 sps:$4 sm:$0xff]  }
  0x81   :  { %2344 = vmatpush2.bf16.msra.mxu1 %v3709_v34  ;;  %2454 = vmatprep.subr.bf16.mxu0 %v3720_v35  ;;  %v3768_v34 = vld [vmem:[%s5164_s0 + $0x178] ss:$44 sps:$4 sm:$0xff]  }
  0x82   :  { %2595 = vmatprep.subr.bf16.mxu1 %v3723_v36  ;;  %2003 = vmatmul.mubr.bf16.gmra.mxu0 %v3676_v33  ;;  %v3840_v33 = vld [vmem:[%s5163_s1 + $0x500] ss:$8 sps:$4 sm:$0xff]   ;;  %v3775_v35 = vld [vmem:[%s5164_s0 + $0x1cc] ss:$44 sps:$4 sm:$0xff]  }
  0x83   :  { %2144 = vmatmul.mubr.bf16.gmra.mxu1 %v3677_v37  ;;  %2012 = vmatprep.mubr.bf16.mxu0 %v3684_v38  ;;  %v3777_v36 = vld [vmem:[%s5164_s0 + $0x1d4] ss:$44 sps:$4 sm:$0xff]   ;;  %v3784_v37 = vld [vmem:[%s5163_s1 + $0x4f0] ss:$8 sps:$4 sm:$0xff]   ;;  %v3798_v38 = vld [vmem:[%s5163_s1 + $0x4e4] ss:$8 sps:$4 sm:$0xff]  }
  0x84   :  { %2153 = vmatprep.mubr.bf16.mxu1 %v3686_v39  ;;  %v3782_v39 = vld [vmem:[%s5164_s0 + $0x1c8] ss:$44 sps:$4 sm:$0xff]  }
  0x8a   :  { %2013 = vmatmul.mubr.bf16.gmra.mxu0 %v3688_v42  ;;  %v3783_v42 = vld [vmem:[%s5164_s0 + $0x1d0] ss:$44 sps:$4 sm:$0xff]  }
  0x8b   :  { %2154 = vmatmul.mubr.bf16.gmra.mxu1 %v3689_v43  ;;  %2022 = vmatprep.mubr.bf16.mxu0 %v3227_v44  ;;  %v3790_v43 = vld [vmem:[%s5164_s0 + $0x224] ss:$44 sps:$4 sm:$0xff]   ;;  %v3792_v44 = vld [vmem:[%s5164_s0 + $0x22c] ss:$44 sps:$4 sm:$0xff]  }
  0x8c   :  { %2163 = vmatprep.mubr.bf16.mxu1 %v3229_v45  ;;  %v3803_v45 = vld [vmem:[%s5163_s1 + $0x4d0] ss:$8 sps:$4 sm:$0xff]  }
  0x92   :  { %2023 = vmatmul.mubr.bf16.gmra.mxu0 %v3226_v46  ;;  %v3813_v46 = vld [vmem:[%s5163_s1 + $0x4c4] ss:$8 sps:$4 sm:$0xff]  }
  0x93   :  { %2164 = vmatmul.mubr.bf16.gmra.mxu1 %v3228_v47  ;;  %2204 = vmatprep.mubr.bf16.mxu0 %v3714_v48  ;;  %v3811_v47 = vld [vmem:[%s5163_s1 + $0x4c0] ss:$8 sps:$4 sm:$0xff]   ;;  %v3822_v48 = vld [vmem:[%s5163_s1 + $0x4b4] ss:$8 sps:$4 sm:$0xff]  }
  0x94   :  { %2345 = vmatprep.mubr.bf16.mxu1 %v3717_v49  ;;  %v3794_v49 = vld [vmem:[%s5164_s0 + $0x220] ss:$44 sps:$4 sm:$0xff]  }
  0x9a   :  { %2205 = vmatmul.mubr.bf16.vlgmr.msra.gmra.mxu0 %v3712_v50  ;;  %v3795_v50 = vld [vmem:[%s5164_s0 + $0x228] ss:$44 sps:$4 sm:$0xff]  }
  0x9b   :  { %2346 = vmatmul.mubr.bf16.vlgmr.msra.gmra.mxu1 %v3715_v51  ;;  %2455 = vmatpush1.bf16.msra.mxu0 %v3718_v52  ;;  %v3799_v51 = vld [vmem:[%s5164_s0 + $0x27c] ss:$44 sps:$4 sm:$0xff]   ;;  %v3801_v52 = vld [vmem:[%s5164_s0 + $0x284] ss:$44 sps:$4 sm:$0xff]  }
  0x9c   :  { %2596 = vmatpush1.bf16.msra.mxu1 %v3721_v53  ;;  %2456 = vmatprep.subr.bf16.mxu0 %v3726_v54  ;;  %v3820_v53 = vld [vmem:[%s5163_s1 + $0x4b0] ss:$8 sps:$4 sm:$0xff]   ;;  %v3834_v54 = vld [vmem:[%s5163_s1 + $0x4a4] ss:$8 sps:$4 sm:$0xff]  }
  0x9d   :  { %2214 = vmatprep.mubr.bf16.mxu0 %v3727_v55  ;;  %2355 = vmatprep.mubr.bf16.mxu1 %v3729_v56  ;;  %v3832_v55 = vld [vmem:[%s5163_s1 + $0x4a0] ss:$8 sps:$4 sm:$0xff]   ;;  %v3837_v56 = vld [vmem:[%s5163_s1 + $0x494] ss:$8 sps:$4 sm:$0xff]  }
  0x9e   :  { %2597 = vmatprep.subr.bf16.mxu1 %v3738_v57  ;;  %v3806_v57 = vld [vmem:[%s5164_s0 + $0x278] ss:$44 sps:$4 sm:$0xff]  }
  0x9f   :  { %2457 = vmatpush1.bf16.msra.mxu0 %v3724_v58  ;;  %v3807_v58 = vld [vmem:[%s5164_s0 + $0x280] ss:$44 sps:$4 sm:$0xff]  }
  0xa0   :  { %2598 = vmatpush1.bf16.msra.mxu1 %v3736_v59  ;;  %2458 = vmatprep.subr.bf16.mxu0 %v3735_v60  ;;  %v3814_v59 = vld [vmem:[%s5164_s0 + $0x2d4] ss:$44 sps:$4 sm:$0xff]   ;;  %v3816_v60 = vld [vmem:[%s5164_s0 + $0x2dc] ss:$44 sps:$4 sm:$0xff]  }
  0xa1   :  { %2599 = vmatprep.subr.bf16.mxu1 %v3759_v61  ;;  %v3835_v61 = vld [vmem:[%s5163_s1 + $0x490] ss:$8 sps:$4 sm:$0xff]  }
  0xa2   :  { %2215 = vmatmul.mubr.bf16.gmra.mxu0 %v3731_v62  ;;  %v3847_v62 = vld [vmem:[%s5163_s1 + $0x484] ss:$8 sps:$4 sm:$0xff]  }
  0xa3   :  { %2356 = vmatmul.mubr.bf16.gmra.mxu1 %v3732_v63  ;;  %2459 = vmatpush1.bf16.msra.mxu0 %v3733_v0  ;;  %v3845_v63 = vld [vmem:[%s5163_s1 + $0x480] ss:$8 sps:$4 sm:$0xff]   ;;  %v3818_v0 = vld [vmem:[%s5164_s0 + $0x2d0] ss:$44 sps:$4 sm:$0xff]  }
  0xa4   :  { %2224 = vmatprep.mubr.bf16.mxu0 %v3739_v1  ;;  %2365 = vmatprep.mubr.bf16.mxu1 %v3741_v2  ;;  %v3819_v1 = vld [vmem:[%s5164_s0 + $0x2d8] ss:$44 sps:$4 sm:$0xff]  }
  0xa5   :  { %2460 = vmatprep.subr.bf16.mxu0 %v3747_v3  ;;  %2600 = vmatpush1.bf16.msra.mxu1 %v3757_v4  ;;  %v3826_v2 = vld [vmem:[%s5164_s0 + $0x32c] ss:$44 sps:$4 sm:$0xff]   ;;  %v3828_v3 = vld [vmem:[%s5164_s0 + $0x334] ss:$44 sps:$4 sm:$0xff]  }
  0xa6   :  { %2601 = vmatprep.subr.bf16.mxu1 %v3774_v5  ;;  %v226_v4 = vld [vmem:[%s5164_s0 + $0x380] sm:$0xff]  ;;  %v227_v5 = vld [vmem:[%s5164_s0 + $0x388] sm:$0xff] }
  0xa7   :  { %2461 = vmatpush1.bf16.msra.mxu0 %v3745_v6  ;;  %v3830_v6 = vld [vmem:[%s5164_s0 + $0x328] ss:$44 sps:$4 sm:$0xff]  }
  0xa8   :  { %2462 = vmatprep.subr.bf16.mxu0 %v3750_v8  ;;  %v3231_v8 = vcombine.high %v226_v4, %v226_v4 }
  0xa9   :  { %2602 = vmatpush1.bf16.msra.mxu1 %v3772_v9  ;;  %v3233_v9 = vcombine.high %v227_v5, %v227_v5 }
  0xaa   :  { %2225 = vmatmul.mubr.bf16.gmra.mxu0 %v3743_v7  ;;  %2603 = vmatprep.subr.bf16.mxu1 %v3789_v14  ;;  %v3831_v7 = vld [vmem:[%s5164_s0 + $0x330] ss:$44 sps:$4 sm:$0xff]   ;;  %v3848_v14 = vld [vmem:[%s5164_s0 + $0x20] ss:$44 sps:$4 sm:$0xff]  }
  0xab   :  { %2366 = vmatmul.mubr.bf16.gmra.mxu1 %v3744_v10  ;;  %2234 = vmatprep.mubr.bf16.mxu0 %v3751_v12  ;;  %v3230_v10 = vcombine.low %v226_v4, %v226_v4  ;;  %v3850_v12 = vld [vmem:[%s5164_s0 + $0x24] ss:$44 sps:$4 sm:$0xff]  }
  0xac   :  { %2375 = vmatprep.mubr.bf16.mxu1 %v3753_v13  ;;  %2463 = vmatpush1.bf16.msra.mxu0 %v3748_v11  ;;  %v3232_v11 = vcombine.low %v227_v5, %v227_v5  ;;  %v3891_v13 = vmov 0  }
  0xad   :  { %2464 = vmatprep.subr.bf16.mxu0 %v3762_v15  ;;  %2604 = vmatpush1.bf16.msra.mxu1 %v3787_v16  ;;  %v3851_v15 = vld [vmem:[%s5164_s0 + $0x28] ss:$44 sps:$4 sm:$0xff]  }
  0xae   :  { %2605 = vmatprep.subr.bf16.mxu1 %v3810_v17  ;;  %v3852_v16 = vld [vmem:[%s5164_s0 + $0x7c] ss:$44 sps:$4 sm:$0xff]   ;;  %v3854_v17 = vld [vmem:[%s5164_s0 + $0x78] ss:$44 sps:$4 sm:$0xff]  }
  0xb0   :  { %2465 = vmatpush1.bf16.msra.mxu0 %v3760_v18  ;;  %v3855_v18 = vld [vmem:[%s5164_s0 + $0x80] ss:$44 sps:$4 sm:$0xff]  }
  0xb1   :  { %2466 = vmatprep.subr.bf16.mxu0 %v3771_v21  ;;  %2606 = vmatpush1.bf16.msra.mxu1 %v3808_v22  ;;  %v3859_v21 = vld [vmem:[%s5164_s0 + $0xd8] ss:$44 sps:$4 sm:$0xff]  }
  0xb2   :  { %2235 = vmatmul.mubr.bf16.gmra.mxu0 %v3755_v19  ;;  %2607 = vmatprep.subr.bf16.mxu1 %v3825_v27  ;;  %v3856_v19 = vld [vmem:[%s5164_s0 + $0xd4] ss:$44 sps:$4 sm:$0xff]   ;;  %v3860_v22 = vld [vmem:[%s5164_s0 + $0x12c] ss:$44 sps:$4 sm:$0xff]  }
  0xb3   :  { %2376 = vmatmul.mubr.bf16.gmra.mxu1 %v3756_v20  ;;  %2244 = vmatprep.mubr.bf16.mxu0 %v3763_v23  ;;  %v3858_v20 = vld [vmem:[%s5164_s0 + $0xd0] ss:$44 sps:$4 sm:$0xff]  }
  0xb4   :  { %2385 = vmatprep.mubr.bf16.mxu1 %v3765_v24  ;;  %2467 = vmatpush1.bf16.msra.mxu0 %v3769_v25 }
  0xb5   :  { %2468 = vmatprep.subr.bf16.mxu0 %v3781_v26  ;;  %2608 = vmatpush1.bf16.msra.mxu1 %v3823_v28 }
  0xb6   :  { %2609 = vmatprep.subr.bf16.mxu1 %v3842_v29 }
  0xb8   :  { %2469 = vmatpush1.bf16.msra.mxu0 %v3779_v31  ;;  %v3862_v31 = vld [vmem:[%s5164_s0 + $0x128] ss:$44 sps:$4 sm:$0xff]  }
  0xb9   :  { %2470 = vmatprep.subr.bf16.mxu0 %v3786_v32  ;;  %2610 = vmatpush1.bf16.msra.mxu1 %v3840_v33  ;;  %v3863_v32 = vld [vmem:[%s5164_s0 + $0x130] ss:$44 sps:$4 sm:$0xff]  }
  0xba   :  { %2245 = vmatmul.mubr.bf16.gmra.mxu0 %v3767_v30 }
  0xbb   :  { %2386 = vmatmul.mubr.bf16.gmra.mxu1 %v3768_v34  ;;  %2254 = vmatprep.mubr.bf16.mxu0 %v3775_v35  ;;  %v3864_v34 = vld [vmem:[%s5164_s0 + $0x184] ss:$44 sps:$4 sm:$0xff]  }
  0xbc   :  { %2395 = vmatprep.mubr.bf16.mxu1 %v3777_v36  ;;  %2471 = vmatpush2.bf16.msra.mxu0 %v3784_v37 }
  0xbd   :  { %2472 = vmatprep.subr.bf16.mxu0 %v3798_v38 }
  0xc0   :  { %2473 = vmatpush2.bf16.msra.mxu0 %v3796_v40 }
  0xc1   :  { %2474 = vmatprep.subr.bf16.mxu0 %v3805_v41 }
  0xc2   :  { %2255 = vmatmul.mubr.bf16.gmra.mxu0 %v3782_v39 }
  0xc3   :  { %2396 = vmatmul.mubr.bf16.gmra.mxu1 %v3783_v42  ;;  %2264 = vmatprep.mubr.bf16.mxu0 %v3790_v43 }
  0xc4   :  { %2405 = vmatprep.mubr.bf16.mxu1 %v3792_v44  ;;  %2475 = vmatpush2.bf16.msra.mxu0 %v3803_v45 }
  0xc5   :  { %2476 = vmatprep.subr.bf16.mxu0 %v3813_v46  ;;  %v3866_v46 = vld [vmem:[%s5164_s0 + $0x180] ss:$44 sps:$4 sm:$0xff]  }
  0xc8   :  { %2477 = vmatpush2.bf16.msra.mxu0 %v3811_v47  ;;  %v3867_v47 = vld [vmem:[%s5164_s0 + $0x188] ss:$44 sps:$4 sm:$0xff]  }
  0xc9   :  { %2478 = vmatprep.subr.bf16.mxu0 %v3822_v48 }
  0xca   :  { %2265 = vmatmul.mubr.bf16.gmra.mxu0 %v3794_v49  ;;  %v3868_v49 = vld [vmem:[%s5164_s0 + $0x1dc] ss:$44 sps:$4 sm:$0xff]  }
  0xcb   :  { %2406 = vmatmul.mubr.bf16.gmra.mxu1 %v3795_v50  ;;  %2274 = vmatprep.mubr.bf16.mxu0 %v3799_v51 }
  0xcc   :  { %2415 = vmatprep.mubr.bf16.mxu1 %v3801_v52  ;;  %2479 = vmatpush2.bf16.msra.mxu0 %v3820_v53 }
  0xcd   :  { %2480 = vmatprep.subr.bf16.mxu0 %v3834_v54 }
  0xd0   :  { %2481 = vmatpush2.bf16.msra.mxu0 %v3832_v55 }
  0xd1   :  { %2482 = vmatprep.subr.bf16.mxu0 %v3837_v56 }
  0xd2   :  { %2275 = vmatmul.mubr.bf16.gmra.mxu0 %v3806_v57 }
  0xd3   :  { %2416 = vmatmul.mubr.bf16.gmra.mxu1 %v3807_v58  ;;  %2284 = vmatprep.mubr.bf16.mxu0 %v3814_v59 }
  0xd4   :  { %2425 = vmatprep.mubr.bf16.mxu1 %v3816_v60  ;;  %2483 = vmatpush2.bf16.msra.mxu0 %v3835_v61  ;;  %v3870_v61 = vld [vmem:[%s5164_s0 + $0x1d8] ss:$44 sps:$4 sm:$0xff]  }
  0xd5   :  { %2484 = vmatprep.subr.bf16.mxu0 %v3847_v62  ;;  %v3871_v62 = vld [vmem:[%s5164_s0 + $0x1e0] ss:$44 sps:$4 sm:$0xff]  }
  0xd8   :  { %2485 = vmatpush2.bf16.msra.mxu0 %v3845_v63 }
  0xda   :  { %2285 = vmatmul.mubr.bf16.gmra.mxu0 %v3818_v0  ;;  %v3874_v0 = vld [vmem:[%s5164_s0 + $0x234] ss:$44 sps:$4 sm:$0xff]  }
  0xdb   :  { %2426 = vmatmul.mubr.bf16.gmra.mxu1 %v3819_v1  ;;  %2294 = vmatprep.mubr.bf16.mxu0 %v3826_v2 }
  0xdc   :  { %2435 = vmatprep.mubr.bf16.mxu1 %v3828_v3 }
  0xe2   :  { %2295 = vmatmul.mubr.bf16.gmra.mxu0 %v3830_v6 }
  0xe3   :  { %2436 = vmatmul.mubr.bf16.gmra.mxu1 %v3831_v7  ;;  %2304 = vmatprep.mubr.bf16.mxu0 %v3231_v8 }
  0xe4   :  { %2445 = vmatprep.mubr.bf16.mxu1 %v3233_v9 }
  0xea   :  { %2305 = vmatmul.mubr.bf16.gmra.mxu0 %v3230_v10 }
  0xeb   :  { %2446 = vmatmul.mubr.bf16.gmra.mxu1 %v3232_v11  ;;  %2486 = vmatprep.mubr.bf16.mxu0 %v3850_v12  ;;  %v3872_v12 = vld [vmem:[%s5164_s0 + $0x230] ss:$44 sps:$4 sm:$0xff]  }
  0xec   :  { %2627 = vmatprep.mubr.bf16.mxu1 %v3891_v13 }
  0xf2   :  { %2487 = vmatmul.mubr.bf16.vlgmr.msra.gmra.mxu0 %v3848_v14  ;;  %v3875_v14 = vld [vmem:[%s5164_s0 + $0x238] ss:$44 sps:$4 sm:$0xff]  }
  0xf3   :  { %2628 = vmatmul.mubr.bf16.vlgmr.msra.gmra.mxu1 %v3851_v15  ;;  %2496 = vmatprep.mubr.bf16.mxu0 %v3852_v16  ;;  %v3878_v16 = vld [vmem:[%s5164_s0 + $0x28c] ss:$44 sps:$4 sm:$0xff]  }
  0xf4   :  { %2637 = vmatprep.mubr.bf16.mxu1 %v3891_v13 }
  0xfa   :  { %2497 = vmatmul.mubr.bf16.gmra.mxu0 %v3854_v17 }
  0xfb   :  { %2638 = vmatmul.mubr.bf16.gmra.mxu1 %v3855_v18  ;;  %2506 = vmatprep.mubr.bf16.mxu0 %v3856_v19 }
  0xfc   :  { %2647 = vmatprep.mubr.bf16.mxu1 %v3891_v13 }
 0x102   :  { %v1924_v23 = vpop.f32.mrf.mxu0  ;;  %2507 = vmatmul.mubr.bf16.gmra.mxu0 %v3858_v20 }
 0x103   :  { %v2065_v24 = vpop.f32.mrf.mxu1  ;;  %2648 = vmatmul.mubr.bf16.gmra.mxu1 %v3859_v21  ;;  %2516 = vmatprep.mubr.bf16.mxu0 %v3860_v22 }
 0x104   :  { %v4725_v25 = vadd.f32 %v2065_v24, %v1924_v23  ;;  %2657 = vmatprep.mubr.bf16.mxu1 %v3891_v13  ;;  %v1926_v26 = vpop.f32.mrf.mxu0 }
 0x105   :  { %v2067_v27 = vpop.f32.mrf.mxu1 }
 0x106   :  { %v4728_v28 = vadd.f32 %v2067_v27, %v1926_v26  ;;  %v1928_v29 = vpop.f32.mrf.mxu0 }
 0x107   :  { %v2069_v30 = vpop.f32.mrf.mxu1 }
 0x108   :  { %v4736_v33 = vadd.f32 %v2069_v30, %v1928_v29  ;;  %v1930_v35 = vpop.f32.mrf.mxu0  ;;  %v3876_v30 = vld [vmem:[%s5164_s0 + $0x288] ss:$44 sps:$4 sm:$0xff]  }
 0x109   :  { %v2071_v36 = vpop.f32.mrf.mxu1 }
 0x10a   :  { %v4741_v37 = vadd.f32 %v2071_v36, %v1930_v35  ;;  %v1934_v38 = vpop.f32.mrf.mxu0  ;;  %2517 = vmatmul.mubr.bf16.gmra.mxu0 %v3862_v31  ;;  %v3879_v31 = vld [vmem:[%s5164_s0 + $0x290] ss:$44 sps:$4 sm:$0xff]  }
 0x10b   :  { %v2075_v39 = vpop.f32.mrf.mxu1  ;;  %2658 = vmatmul.mubr.bf16.gmra.mxu1 %v3863_v32  ;;  %2526 = vmatprep.mubr.bf16.mxu0 %v3864_v34  ;;  %v3882_v34 = vld [vmem:[%s5164_s0 + $0x2e4] ss:$44 sps:$4 sm:$0xff]  }
 0x10c   :  { %v4743_v40 = vadd.f32 %v2075_v39, %v1934_v38  ;;  %2667 = vmatprep.mubr.bf16.mxu1 %v3891_v13  ;;  %v1936_v41 = vpop.f32.mrf.mxu0 }
 0x10d   :  { %v2077_v42 = vpop.f32.mrf.mxu1 }
 0x10e   :  { %v4746_v43 = vadd.f32 %v2077_v42, %v1936_v41  ;;  %v1938_v44 = vpop.f32.mrf.mxu0 }
 0x10f   :  { %v2079_v45 = vpop.f32.mrf.mxu1 }
 0x110   :  { %v4754_v48 = vadd.f32 %v2079_v45, %v1938_v44  ;;  %v1940_v50 = vpop.f32.mrf.mxu0 }
 0x111   :  { %v2081_v51 = vpop.f32.mrf.mxu1 }
 0x112   :  { %v4759_v52 = vadd.f32 %v2081_v51, %v1940_v50  ;;  %v1944_v53 = vpop.f32.mrf.mxu0  ;;  %2527 = vmatmul.mubr.bf16.gmra.mxu0 %v3866_v46  ;;  %v3880_v50 = vld [vmem:[%s5164_s0 + $0x2e0] ss:$44 sps:$4 sm:$0xff]   ;;  %v3883_v51 = vld [vmem:[%s5164_s0 + $0x2e8] ss:$44 sps:$4 sm:$0xff]  }
 0x113   :  { %v2085_v54 = vpop.f32.mrf.mxu1  ;;  %2668 = vmatmul.mubr.bf16.gmra.mxu1 %v3867_v47  ;;  %2536 = vmatprep.mubr.bf16.mxu0 %v3868_v49 }
 0x114   :  { %v4761_v55 = vadd.f32 %v2085_v54, %v1944_v53  ;;  %2677 = vmatprep.mubr.bf16.mxu1 %v3891_v13  ;;  %v1946_v56 = vpop.f32.mrf.mxu0  ;;  %v3886_v54 = vld [vmem:[%s5164_s0 + $0x33c] ss:$44 sps:$4 sm:$0xff]  }
 0x115   :  { %v2087_v57 = vpop.f32.mrf.mxu1 }
 0x116   :  { %v4764_v58 = vadd.f32 %v2087_v57, %v1946_v56  ;;  %v1948_v59 = vpop.f32.mrf.mxu0 }
 0x117   :  { %v2089_v60 = vpop.f32.mrf.mxu1 }
 0x118   :  { %v4772_v63 = vadd.f32 %v2089_v60, %v1948_v59  ;;  %v1950_v1 = vpop.f32.mrf.mxu0 }
 0x119   :  { %v2091_v2 = vpop.f32.mrf.mxu1 }
 0x11a   :  { %v4777_v3 = vadd.f32 %v2091_v2, %v1950_v1  ;;  %v1954_v4 = vpop.f32.mrf.mxu0  ;;  %2537 = vmatmul.mubr.bf16.gmra.mxu0 %v3870_v61  ;;  %v228_v2 = vld [vmem:[%s5164_s0 + $0x390] sm:$0xff] }
 0x11b   :  { %v2095_v5 = vpop.f32.mrf.mxu1  ;;  %2678 = vmatmul.mubr.bf16.gmra.mxu1 %v3871_v62  ;;  %2546 = vmatprep.mubr.bf16.mxu0 %v3874_v0 }
 0x11c   :  { %v4779_v6 = vadd.f32 %v2095_v5, %v1954_v4  ;;  %2687 = vmatprep.mubr.bf16.mxu1 %v3891_v13  ;;  %v1956_v7 = vpop.f32.mrf.mxu0 }
 0x11d   :  { %v2097_v8 = vpop.f32.mrf.mxu1 }
 0x11e   :  { %v4782_v9 = vadd.f32 %v2097_v8, %v1956_v7  ;;  %v1958_v10 = vpop.f32.mrf.mxu0  ;;  %v3884_v8 = vld [vmem:[%s5164_s0 + $0x338] ss:$44 sps:$4 sm:$0xff]  }
 0x11f   :  { %v2099_v11 = vpop.f32.mrf.mxu1 }
 0x120   :  { %v4790_v15 = vadd.f32 %v2099_v11, %v1958_v10  ;;  %v1960_v17 = vpop.f32.mrf.mxu0  ;;  %v3887_v10 = vld [vmem:[%s5164_s0 + $0x340] ss:$44 sps:$4 sm:$0xff]  }
 0x121   :  { %v2101_v18 = vpop.f32.mrf.mxu1 }
 0x122   :  { %v4795_v19 = vadd.f32 %v2101_v18, %v1960_v17  ;;  %v1964_v20 = vpop.f32.mrf.mxu0  ;;  %2547 = vmatmul.mubr.bf16.gmra.mxu0 %v3872_v12  ;;  %v3235_v12 = vcombine.high %v228_v2, %v228_v2 }
 0x123   :  { %v2105_v21 = vpop.f32.mrf.mxu1  ;;  %2688 = vmatmul.mubr.bf16.gmra.mxu1 %v3875_v14  ;;  %2556 = vmatprep.mubr.bf16.mxu0 %v3878_v16 }
 0x124   :  { %v4797_v22 = vadd.f32 %v2105_v21, %v1964_v20  ;;  %2697 = vmatprep.mubr.bf16.mxu1 %v3891_v13  ;;  %v1966_v23 = vpop.f32.mrf.mxu0 }
 0x125   :  { %v2107_v24 = vpop.f32.mrf.mxu1 }
 0x126   :  { %v4800_v26 = vadd.f32 %v2107_v24, %v1966_v23  ;;  %v1968_v27 = vpop.f32.mrf.mxu0 }
 0x127   :  { %v2109_v29 = vpop.f32.mrf.mxu1 }
 0x128   :  { %v4808_v32 = vadd.f32 %v2109_v29, %v1968_v27  ;;  %v1970_v35 = vpop.f32.mrf.mxu0 }
 0x129   :  { %v2111_v36 = vpop.f32.mrf.mxu1 }
 0x12a   :  { %v4813_v38 = vadd.f32 %v2111_v36, %v1970_v35  ;;  %v1974_v39 = vpop.f32.mrf.mxu0  ;;  %2557 = vmatmul.mubr.bf16.gmra.mxu0 %v3876_v30 }
 0x12b   :  { %v2115_v41 = vpop.f32.mrf.mxu1  ;;  %2698 = vmatmul.mubr.bf16.gmra.mxu1 %v3879_v31  ;;  %2566 = vmatprep.mubr.bf16.mxu0 %v3882_v34  ;;  %v3234_v31 = vcombine.low %v228_v2, %v228_v2  ;;  %v3890_v34 = vld [vmem:[%s5164_s0 + $0x398] ss:$0 sps:$4 sm:$0xff]  }
 0x12c   :  { %v4815_v42 = vadd.f32 %v2115_v41, %v1974_v39  ;;  %2707 = vmatprep.mubr.bf16.mxu1 %v3891_v13  ;;  %v1976_v44 = vpop.f32.mrf.mxu0 }
 0x12d   :  { %v2117_v45 = vpop.f32.mrf.mxu1 }
 0x12e   :  { %v4818_v46 = vadd.f32 %v2117_v45, %v1976_v44  ;;  %v1978_v47 = vpop.f32.mrf.mxu0 }
 0x12f   :  { %v2119_v49 = vpop.f32.mrf.mxu1 }
 0x130   :  { %v4826_v53 = vadd.f32 %v2119_v49, %v1978_v47  ;;  %v1980_v56 = vpop.f32.mrf.mxu0 }
 0x131   :  { %v2121_v57 = vpop.f32.mrf.mxu1 }
 0x132   :  { %v4831_v59 = vadd.f32 %v2121_v57, %v1980_v56  ;;  %v1984_v60 = vpop.f32.mrf.mxu0  ;;  %2567 = vmatmul.mubr.bf16.gmra.mxu0 %v3880_v50 }
 0x133   :  { %v2125_v61 = vpop.f32.mrf.mxu1  ;;  %2708 = vmatmul.mubr.bf16.gmra.mxu1 %v3883_v51  ;;  %2576 = vmatprep.mubr.bf16.mxu0 %v3886_v54 }
 0x134   :  { %v4833_v62 = vadd.f32 %v2125_v61, %v1984_v60  ;;  %2717 = vmatprep.mubr.bf16.mxu1 %v3891_v13  ;;  %v1986_v0 = vpop.f32.mrf.mxu0 }
 0x135   :  { %v2127_v1 = vpop.f32.mrf.mxu1 }
 0x136   :  { %v4839_v4 = vadd.f32 %v2127_v1, %v1986_v0  ;;  %v1988_v5 = vpop.f32.mrf.mxu0 }
 0x137   :  { %v2129_v7 = vpop.f32.mrf.mxu1 }
 0x138   :  { %v4847_v11 = vadd.f32 %v2129_v7, %v1988_v5  ;;  %v1990_v14 = vpop.f32.mrf.mxu0 }
 0x139   :  { %v2131_v16 = vpop.f32.mrf.mxu1 }
 0x13a   :  { %v4849_v17 = vadd.f32 %v2131_v16, %v1990_v14  ;;  %v1994_v18 = vpop.f32.mrf.mxu0  ;;  %2577 = vmatmul.mubr.bf16.gmra.mxu0 %v3884_v8 }
 0x13b   :  { %v2135_v20 = vpop.f32.mrf.mxu1  ;;  %2718 = vmatmul.mubr.bf16.gmra.mxu1 %v3887_v10  ;;  %2586 = vmatprep.mubr.bf16.mxu0 %v3235_v12 }
 0x13c   :  { %v4851_v21 = vadd.f32 %v2135_v20, %v1994_v18  ;;  %2727 = vmatprep.mubr.bf16.mxu1 %v3891_v13  ;;  %v1996_v23 = vpop.f32.mrf.mxu0 }
 0x13d   :  { %v2137_v24 = vpop.f32.mrf.mxu1 }
 0x13e   :  { %v4854_v27 = vadd.f32 %v2137_v24, %v1996_v23  ;;  %v1998_v29 = vpop.f32.mrf.mxu0 }
 0x13f   :  { %v2139_v30 = vpop.f32.mrf.mxu1 }
 0x140   :  { %v4859_v35 = vadd.f32 %v2139_v30, %v1998_v29  ;;  %v2000_v36 = vpop.f32.mrf.mxu0 }
 0x141   :  { %v2141_v39 = vpop.f32.mrf.mxu1 }
 0x142   :  { %v4861_v41 = vadd.f32 %v2141_v39, %v2000_v36  ;;  %v2004_v44 = vpop.f32.mrf.mxu0  ;;  %2587 = vmatmul.mubr.bf16.gmra.mxu0 %v3234_v31 }
 0x143   :  { %v2145_v45 = vpop.f32.mrf.mxu1  ;;  %2728 = vmatmul.mubr.bf16.gmra.mxu1 %v3890_v34 }
 0x144   :  { %v4863_v13 = vadd.f32 %v2145_v45, %v2004_v44  ;;  %v2006_v47 = vpop.f32.mrf.mxu0 }
 0x145   :  { %v2147_v49 = vpop.f32.mrf.mxu1 }
 0x146   :  { %v4865_v50 = vadd.f32 %v2147_v49, %v2006_v47  ;;  %v2008_v51 = vpop.f32.mrf.mxu0 }
 0x147   :  { %v2149_v54 = vpop.f32.mrf.mxu1 }
 0x148   :  { %v4867_v56 = vadd.f32 %v2149_v54, %v2008_v51  ;;  %v2010_v57 = vpop.f32.mrf.mxu0 }
 0x149   :  { %v2151_v60 = vpop.f32.mrf.mxu1 }
 0x14a   :  { %v4869_v61 = vadd.f32 %v2151_v60, %v2010_v57  ;;  %v2014_v0 = vpop.f32.mrf.mxu0 }
 0x14b   :  { %v2155_v1 = vpop.f32.mrf.mxu1 }
 0x14c   :  { %v4871_v2 = vadd.f32 %v2155_v1, %v2014_v0  ;;  %v2016_v5 = vpop.f32.mrf.mxu0 }
 0x14d   :  { %v2157_v7 = vpop.f32.mrf.mxu1 }
 0x14e   :  { %v4873_v8 = vadd.f32 %v2157_v7, %v2016_v5  ;;  %v2018_v10 = vpop.f32.mrf.mxu0 }
 0x14f   :  { %v2159_v12 = vpop.f32.mrf.mxu1 }
 0x150   :  { %v4875_v14 = vadd.f32 %v2159_v12, %v2018_v10  ;;  %v2020_v16 = vpop.f32.mrf.mxu0 }
 0x151   :  { %v2161_v18 = vpop.f32.mrf.mxu1 }
 0x152   :  { %v4877_v20 = vadd.f32 %v2161_v18, %v2020_v16  ;;  %v2024_v23 = vpop.f32.mrf.mxu0 }
 0x153   :  { %v2165_v24 = vpop.f32.mrf.mxu1 }
 0x154   :  { %v4879_v29 = vadd.f32 %v2165_v24, %v2024_v23  ;;  %v2026_v30 = vpop.f32.mrf.mxu0 }
 0x155   :  { %v2167_v31 = vpop.f32.mrf.mxu1 }
 0x156   :  { %v4881_v34 = vadd.f32 %v2167_v31, %v2026_v30  ;;  %v2028_v36 = vpop.f32.mrf.mxu0 }
 0x157   :  { %v2169_v39 = vpop.f32.mrf.mxu1 }
 0x158   :  { %v2029_v44 = vpop.f32.mrf.mxu0 }
 0x159   :  { %v2170_v45 = vpop.f32.mrf.mxu1 }
 0x15a   :  { %v2206_v47 = vpop.f32.mrf.mxu0 }
 0x15b   :  { %v2347_v49 = vpop.f32.mrf.mxu1  ;;  %v2207_v51 = vadd.f32 %v2206_v47, %v4725_v25 }
 0x15c   :  { %v2208_v54 = vpop.f32.mrf.mxu0 }
 0x15d   :  { %v2349_v57 = vpop.f32.mrf.mxu1  ;;  %v4884_v60 = vadd.f32 %v2347_v49, %v2207_v51  ;;  %v2209_v0 = vadd.f32 %v2208_v54, %v4728_v28 }
 0x15e   :  { %v2210_v1 = vpop.f32.mrf.mxu0 }
 0x15f   :  { %v2351_v5 = vpop.f32.mrf.mxu1  ;;  %v4887_v7 = vadd.f32 %v2349_v57, %v2209_v0  ;;  %v2211_v10 = vadd.f32 %v2210_v1, %v4736_v33 }
 0x160   :  { %v2212_v12 = vpop.f32.mrf.mxu0 }
 0x161   :  { %v2353_v16 = vpop.f32.mrf.mxu1  ;;  %v4890_v18 = vadd.f32 %v2351_v5, %v2211_v10  ;;  %v2213_v23 = vadd.f32 %v2212_v12, %v4741_v37 }
 0x162   :  { %v2216_v24 = vpop.f32.mrf.mxu0 }
 0x163   :  { %v2357_v25 = vpop.f32.mrf.mxu1  ;;  %v4893_v30 = vadd.f32 %v2353_v16, %v2213_v23  ;;  %v2217_v31 = vadd.f32 %v2216_v24, %v4743_v40 }
 0x164   :  { %v2218_v36 = vpop.f32.mrf.mxu0 }
 0x165   :  { %v2359_v28 = vpop.f32.mrf.mxu1  ;;  %v4896_v39 = vadd.f32 %v2357_v25, %v2217_v31  ;;  %v2219_v44 = vadd.f32 %v2218_v36, %v4746_v43 }
 0x166   :  { %v2220_v45 = vpop.f32.mrf.mxu0 }
 0x167   :  { %v2361_v33 = vpop.f32.mrf.mxu1  ;;  %v4899_v47 = vadd.f32 %v2359_v28, %v2219_v44  ;;  %v2221_v49 = vadd.f32 %v2220_v45, %v4754_v48 }
 0x168   :  { %v2222_v51 = vpop.f32.mrf.mxu0 }
 0x169   :  { %v2363_v37 = vpop.f32.mrf.mxu1  ;;  %v4902_v54 = vadd.f32 %v2361_v33, %v2221_v49  ;;  %v2223_v57 = vadd.f32 %v2222_v51, %v4759_v52 }
 0x16a   :  { %v2226_v0 = vpop.f32.mrf.mxu0 }
 0x16b   :  { %v2367_v40 = vpop.f32.mrf.mxu1  ;;  %v4905_v1 = vadd.f32 %v2363_v37, %v2223_v57  ;;  %v2227_v5 = vadd.f32 %v2226_v0, %v4761_v55 }
 0x16c   :  { %v2228_v10 = vpop.f32.mrf.mxu0 }
 0x16d   :  { %v2369_v43 = vpop.f32.mrf.mxu1  ;;  %v4908_v12 = vadd.f32 %v2367_v40, %v2227_v5  ;;  %v2229_v16 = vadd.f32 %v2228_v10, %v4764_v58 }
 0x16e   :  { %v2230_v23 = vpop.f32.mrf.mxu0 }
 0x16f   :  { %v2371_v48 = vpop.f32.mrf.mxu1  ;;  %v4911_v24 = vadd.f32 %v2369_v43, %v2229_v16  ;;  %v2231_v25 = vadd.f32 %v2230_v23, %v4772_v63 }
 0x170   :  { %v2232_v31 = vpop.f32.mrf.mxu0 }
 0x171   :  { %v2373_v52 = vpop.f32.mrf.mxu1  ;;  %v4914_v36 = vadd.f32 %v2371_v48, %v2231_v25  ;;  %v2233_v28 = vadd.f32 %v2232_v31, %v4777_v3 }
 0x172   :  { %v2236_v44 = vpop.f32.mrf.mxu0 }
 0x173   :  { %v2377_v55 = vpop.f32.mrf.mxu1  ;;  %v4917_v45 = vadd.f32 %v2373_v52, %v2233_v28  ;;  %v2237_v33 = vadd.f32 %v2236_v44, %v4779_v6 }
 0x174   :  { %v2238_v49 = vpop.f32.mrf.mxu0 }
 0x175   :  { %v2379_v58 = vpop.f32.mrf.mxu1  ;;  %v4920_v51 = vadd.f32 %v2377_v55, %v2237_v33  ;;  %v2239_v37 = vadd.f32 %v2238_v49, %v4782_v9 }
 0x176   :  { %v2240_v57 = vpop.f32.mrf.mxu0 }
 0x177   :  { %v2381_v63 = vpop.f32.mrf.mxu1  ;;  %v4923_v0 = vadd.f32 %v2379_v58, %v2239_v37  ;;  %v2241_v40 = vadd.f32 %v2240_v57, %v4790_v15 }
 0x178   :  { %v2242_v5 = vpop.f32.mrf.mxu0 }
 0x179   :  { %v2383_v3 = vpop.f32.mrf.mxu1  ;;  %v4926_v10 = vadd.f32 %v2381_v63, %v2241_v40  ;;  %v2243_v43 = vadd.f32 %v2242_v5, %v4795_v19 }
 0x17a   :  { %v2246_v16 = vpop.f32.mrf.mxu0 }
 0x17b   :  { %v2387_v6 = vpop.f32.mrf.mxu1  ;;  %v4929_v23 = vadd.f32 %v2383_v3, %v2243_v43  ;;  %v2247_v48 = vadd.f32 %v2246_v16, %v4797_v22 }
 0x17c   :  { %v2248_v25 = vpop.f32.mrf.mxu0 }
 0x17d   :  { %v2389_v9 = vpop.f32.mrf.mxu1  ;;  %v4932_v31 = vadd.f32 %v2387_v6, %v2247_v48  ;;  %v2249_v52 = vadd.f32 %v2248_v25, %v4800_v26 }
 0x17e   :  { %v2250_v28 = vpop.f32.mrf.mxu0 }
 0x17f   :  { %v2391_v15 = vpop.f32.mrf.mxu1  ;;  %v4935_v44 = vadd.f32 %v2389_v9, %v2249_v52  ;;  %v2251_v55 = vadd.f32 %v2250_v28, %v4808_v32 }
 0x180   :  { %v2252_v33 = vpop.f32.mrf.mxu0 }
 0x181   :  { %v2393_v19 = vpop.f32.mrf.mxu1  ;;  %v4938_v49 = vadd.f32 %v2391_v15, %v2251_v55  ;;  %v2253_v58 = vadd.f32 %v2252_v33, %v4813_v38 }
 0x182   :  { %v2256_v37 = vpop.f32.mrf.mxu0 }
 0x183   :  { %v2397_v22 = vpop.f32.mrf.mxu1  ;;  %v4941_v57 = vadd.f32 %v2393_v19, %v2253_v58  ;;  %v2257_v63 = vadd.f32 %v2256_v37, %v4815_v42 }
 0x184   :  { %v2258_v40 = vpop.f32.mrf.mxu0 }
 0x185   :  { %v2399_v26 = vpop.f32.mrf.mxu1  ;;  %v4944_v5 = vadd.f32 %v2397_v22, %v2257_v63  ;;  %v2259_v3 = vadd.f32 %v2258_v40, %v4818_v46 }
 0x186   :  { %v2260_v43 = vpop.f32.mrf.mxu0 }
 0x187   :  { %v2401_v32 = vpop.f32.mrf.mxu1  ;;  %v4947_v16 = vadd.f32 %v2399_v26, %v2259_v3  ;;  %v2261_v6 = vadd.f32 %v2260_v43, %v4826_v53 }
 0x188   :  { %v2262_v48 = vpop.f32.mrf.mxu0 }
 0x189   :  { %v2403_v38 = vpop.f32.mrf.mxu1  ;;  %v4950_v25 = vadd.f32 %v2401_v32, %v2261_v6  ;;  %v2263_v9 = vadd.f32 %v2262_v48, %v4831_v59 }
 0x18a   :  { %v2266_v52 = vpop.f32.mrf.mxu0 }
 0x18b   :  { %v2407_v42 = vpop.f32.mrf.mxu1  ;;  %v4953_v28 = vadd.f32 %v2403_v38, %v2263_v9  ;;  %v2267_v15 = vadd.f32 %v2266_v52, %v4833_v62 }
 0x18c   :  { %v2268_v55 = vpop.f32.mrf.mxu0 }
 0x18d   :  { %v2409_v46 = vpop.f32.mrf.mxu1  ;;  %v4956_v33 = vadd.f32 %v2407_v42, %v2267_v15  ;;  %v2269_v19 = vadd.f32 %v2268_v55, %v4839_v4 }
 0x18e   :  { %v2270_v58 = vpop.f32.mrf.mxu0 }
 0x18f   :  { %v2411_v53 = vpop.f32.mrf.mxu1  ;;  %v4959_v37 = vadd.f32 %v2409_v46, %v2269_v19  ;;  %v2271_v22 = vadd.f32 %v2270_v58, %v4847_v11 }
 0x190   :  { %v2272_v63 = vpop.f32.mrf.mxu0 }
 0x191   :  { %v2413_v59 = vpop.f32.mrf.mxu1  ;;  %v4962_v40 = vadd.f32 %v2411_v53, %v2271_v22  ;;  %v2273_v26 = vadd.f32 %v2272_v63, %v4849_v17 }
 0x192   :  { %v2276_v3 = vpop.f32.mrf.mxu0 }
 0x193   :  { %v2417_v62 = vpop.f32.mrf.mxu1  ;;  %v4965_v43 = vadd.f32 %v2413_v59, %v2273_v26  ;;  %v2277_v32 = vadd.f32 %v2276_v3, %v4851_v21 }
 0x194   :  { %v2278_v6 = vpop.f32.mrf.mxu0 }
 0x195   :  { %v2419_v4 = vpop.f32.mrf.mxu1  ;;  %v4968_v48 = vadd.f32 %v2417_v62, %v2277_v32  ;;  %v2279_v38 = vadd.f32 %v2278_v6, %v4854_v27 }
 0x196   :  { %v2280_v9 = vpop.f32.mrf.mxu0 }
 0x197   :  { %v2421_v11 = vpop.f32.mrf.mxu1  ;;  %v4971_v52 = vadd.f32 %v2419_v4, %v2279_v38  ;;  %v2281_v42 = vadd.f32 %v2280_v9, %v4859_v35 }
 0x198   :  { %v2282_v15 = vpop.f32.mrf.mxu0 }
 0x199   :  { %v2423_v17 = vpop.f32.mrf.mxu1  ;;  %v4974_v55 = vadd.f32 %v2421_v11, %v2281_v42  ;;  %v2283_v46 = vadd.f32 %v2282_v15, %v4861_v41 }
 0x19a   :  { %v2286_v19 = vpop.f32.mrf.mxu0 }
 0x19b   :  { %v2427_v21 = vpop.f32.mrf.mxu1  ;;  %v4977_v58 = vadd.f32 %v2423_v17, %v2283_v46  ;;  %v2287_v53 = vadd.f32 %v2286_v19, %v4863_v13 }
 0x19c   :  { %v2288_v22 = vpop.f32.mrf.mxu0 }
 0x19d   :  { %v2429_v27 = vpop.f32.mrf.mxu1  ;;  %v4980_v63 = vadd.f32 %v2427_v21, %v2287_v53  ;;  %v2289_v59 = vadd.f32 %v2288_v22, %v4865_v50  ;;  %v2867_v53 = vlaneseq }
 0x19e   :  { %v2290_v26 = vpop.f32.mrf.mxu0 }
 0x19f   :  { %v2431_v35 = vpop.f32.mrf.mxu1  ;;  %v4983_v3 = vadd.f32 %v2429_v27, %v2289_v59  ;;  %v2291_v62 = vadd.f32 %v2290_v26, %v4867_v56 }
 0x1a0   :  { %v2292_v32 = vpop.f32.mrf.mxu0 }
 0x1a1   :  { %v2433_v41 = vpop.f32.mrf.mxu1  ;;  %v4986_v6 = vadd.f32 %v2431_v35, %v2291_v62  ;;  %v2293_v4 = vadd.f32 %v2292_v32, %v4869_v61 }
 0x1a2   :  { %v2296_v38 = vpop.f32.mrf.mxu0 }
 0x1a3   :  { %v2437_v13 = vpop.f32.mrf.mxu1  ;;  %v4989_v9 = vadd.f32 %v2433_v41, %v2293_v4  ;;  %v2297_v11 = vadd.f32 %v2296_v38, %v4871_v2 }
 0x1a4   :  { %v2298_v42 = vpop.f32.mrf.mxu0 }
 0x1a5   :  { %v2439_v50 = vpop.f32.mrf.mxu1  ;;  %v4992_v15 = vadd.f32 %v2437_v13, %v2297_v11  ;;  %v2299_v17 = vadd.f32 %v2298_v42, %v4873_v8  ;;  %v2868_v8 = vshrl.u32 %v2867_v53, 7 }
 0x1a6   :  { %v2300_v46 = vpop.f32.mrf.mxu0 }
 0x1a7   :  { %v2441_v56 = vpop.f32.mrf.mxu1  ;;  %v4995_v19 = vadd.f32 %v2439_v50, %v2299_v17  ;;  %v2301_v21 = vadd.f32 %v2300_v46, %v4875_v14  ;;  %v2869_v42 = vsub.s32 0, %v2868_v8  ;;  %v2865_v17 = vld [vmem:[%s5165_s2] sm:$0x3]  ;;  %v2873_v46 = vsub.s32 1, %v2868_v8 }
 0x1a8   :  { %v2302_v61 = vpop.f32.mrf.mxu0 }
 0x1a9   :  { %v2443_v22 = vpop.f32.mrf.mxu1  ;;  %v4998_v27 = vadd.f32 %v2441_v56, %v2301_v21  ;;  %v2303_v59 = vadd.f32 %v2302_v61, %v4877_v20  ;;  %v5013_v53 = vrot.slane %v2865_v17, %v2869_v42 }
 0x1aa   :  { %v2306_v2 = vpop.f32.mrf.mxu0 }
 0x1ab   :  { %v2447_v26 = vpop.f32.mrf.mxu1  ;;  %v5001_v35 = vadd.f32 %v2443_v22, %v2303_v59  ;;  %v2307_v62 = vadd.f32 %v2306_v2, %v4879_v29  ;;  %v5016_v2 = vrot.slane %v2865_v17, %v2873_v46 }
 0x1ac   :  { %v2308_v32 = vpop.f32.mrf.mxu0 }
 0x1ad   :  { %v2449_v41 = vpop.f32.mrf.mxu1  ;;  %v5004_v4 = vadd.f32 %v2447_v26, %v2307_v62  ;;  %v2309_v14 = vadd.f32 %v2308_v32, %v4881_v34 }
 0x1ae   :  { %v2310_v38 = vpop.f32.mrf.mxu0 }
 0x1af   :  { %v2451_v13 = vpop.f32.mrf.mxu1  ;;  %v5007_v11 = vadd.f32 %v2449_v41, %v2309_v14 }
 0x1b0   :  { %v2311_v50 = vpop.f32.mrf.mxu0 }
 0x1b1   :  { %v2452_v20 = vpop.f32.mrf.mxu1 }
 0x1b2   :  { %v2488_v29 = vpop.f32.mrf.mxu0 }
 0x1b3   :  { %v2629_v56 = vpop.f32.mrf.mxu1  ;;  %v2489_v21 = vadd.f32 %v2488_v29, %v4884_v60 }
 0x1b4   :  { %v2490_v61 = vpop.f32.mrf.mxu0 }
 0x1b5   :  { %v2631_v34 = vpop.f32.mrf.mxu1  ;;  %v2630_v22 = vadd.f32 %v2629_v56, %v2489_v21  ;;  %v2491_v59 = vadd.f32 %v2490_v61, %v4887_v7 }
 0x1b6   :  { %v2492_v26 = vpop.f32.mrf.mxu0 }
 0x1b7   :  { %v2633_v62 = vpop.f32.mrf.mxu1  ;;  %v2877_v32 = vadd.f32 %v5013_v53, %v2630_v22  ;;  %v2632_v41 = vadd.f32 %v2631_v34, %v2491_v59  ;;  %v2493_v8 = vadd.f32 %v2492_v26, %v4890_v18 }
 0x1b8   :  { %v2494_v14 = vpop.f32.mrf.mxu0 }
 0x1b9   :  { %v2635_v38 = vpop.f32.mrf.mxu1  ;;  %v2878_v60 = vadd.f32 %v5016_v2, %v2632_v41  ;;  %v2634_v13 = vadd.f32 %v2633_v62, %v2493_v8  ;;  %v2495_v42 = vadd.f32 %v2494_v14, %v4893_v30  ;;  %v2919_v50 = vmax.f32 %v2877_v32, 0.0 }
 0x1ba   :  { %v2498_v20 = vpop.f32.mrf.mxu0 }
 0x1bb   :  { %v2639_v29 = vpop.f32.mrf.mxu1  ;;  %v2920_v7 = vmax.f32 %v2878_v60, 0.0  ;;  %v2879_v17 = vadd.f32 %v5013_v53, %v2634_v13  ;;  %v2636_v46 = vadd.f32 %v2635_v38, %v2495_v42  ;;  %v2499_v56 = vadd.f32 %v2498_v20, %v4896_v39 }
 0x1bc   :  { %v2500_v21 = vpop.f32.mrf.mxu0 }
 0x1bd   :  { %v2641_v61 = vpop.f32.mrf.mxu1  ;;  %v3434_v34 = vpack.c.bf16 %v2920_v7, %v2919_v50  ;;  %v2880_v18 = vadd.f32 %v5016_v2, %v2636_v46  ;;  %v2640_v22 = vadd.f32 %v2639_v29, %v2499_v56  ;;  %v2501_v59 = vadd.f32 %v2500_v21, %v4899_v47 }
 0x1be   :  { %v2502_v26 = vpop.f32.mrf.mxu0  ;;  %v2921_v30 = vmax.f32 %v2879_v17, 0.0 }
 0x1bf   :  { %v2643_v62 = vpop.f32.mrf.mxu1  ;;  %3089 = vst [vmem:[%s5166_s3] sm:$0xff] %v3434_v34  ;;  %v2922_v32 = vmax.f32 %v2880_v18, 0.0  ;;  %v2503_v41 = vadd.f32 %v2502_v26, %v4902_v54  ;;  %v2881_v39 = vadd.f32 %v5013_v53, %v2640_v22  ;;  %v2642_v8 = vadd.f32 %v2641_v61, %v2501_v59 }
 0x1c0   :  { %v2504_v14 = vpop.f32.mrf.mxu0 }
 0x1c1   :  { %v2645_v38 = vpop.f32.mrf.mxu1  ;;  %v3435_v60 = vpack.c.bf16 %v2922_v32, %v2921_v30  ;;  %v2644_v13 = vadd.f32 %v2643_v62, %v2503_v41  ;;  %v2505_v42 = vadd.f32 %v2504_v14, %v4905_v1  ;;  %v2882_v47 = vadd.f32 %v5016_v2, %v2642_v8 }
 0x1c2   :  { %v2508_v50 = vpop.f32.mrf.mxu0  ;;  %v2923_v17 = vmax.f32 %v2881_v39, 0.0 }
 0x1c3   :  { %v2649_v20 = vpop.f32.mrf.mxu1  ;;  %3090 = vst [vmem:[%s5166_s3 + $0x8] sm:$0xff] %v3435_v60  ;;  %v2883_v29 = vadd.f32 %v5013_v53, %v2644_v13  ;;  %v2646_v54 = vadd.f32 %v2645_v38, %v2505_v42  ;;  %v2509_v7 = vadd.f32 %v2508_v50, %v4908_v12  ;;  %v2924_v46 = vmax.f32 %v2882_v47, 0.0 }
 0x1c4   :  { %v2510_v56 = vpop.f32.mrf.mxu0 }
 0x1c5   :  { %v2651_v21 = vpop.f32.mrf.mxu1  ;;  %v2884_v61 = vadd.f32 %v5016_v2, %v2646_v54  ;;  %v2650_v1 = vadd.f32 %v2649_v20, %v2509_v7  ;;  %v2511_v34 = vadd.f32 %v2510_v56, %v4911_v24  ;;  %v3436_v18 = vpack.c.bf16 %v2924_v46, %v2923_v17 }
 0x1c6   :  { %v2925_v22 = vmax.f32 %v2883_v29, 0.0  ;;  %v2512_v59 = vpop.f32.mrf.mxu0 }
 0x1c7   :  { %v2653_v26 = vpop.f32.mrf.mxu1  ;;  %v2926_v62 = vmax.f32 %v2884_v61, 0.0  ;;  %v2885_v30 = vadd.f32 %v5013_v53, %v2650_v1  ;;  %v2652_v32 = vadd.f32 %v2651_v21, %v2511_v34  ;;  %v2513_v41 = vadd.f32 %v2512_v59, %v4914_v36  ;;  %3091 = vst [vmem:[%s5166_s3 + $0x10] sm:$0xff] %v3436_v18 }
 0x1c8   :  { %v2514_v12 = vpop.f32.mrf.mxu0 }
 0x1c9   :  { %v2655_v39 = vpop.f32.mrf.mxu1  ;;  %v3437_v8 = vpack.c.bf16 %v2926_v62, %v2925_v22  ;;  %v2886_v14 = vadd.f32 %v5016_v2, %v2652_v32  ;;  %v2654_v24 = vadd.f32 %v2653_v26, %v2513_v41  ;;  %v2515_v38 = vadd.f32 %v2514_v12, %v4917_v45 }
 0x1ca   :  { %v2518_v60 = vpop.f32.mrf.mxu0  ;;  %v2927_v42 = vmax.f32 %v2885_v30, 0.0 }
 0x1cb   :  { %v2659_v13 = vpop.f32.mrf.mxu1  ;;  %3092 = vst [vmem:[%s5166_s3 + $0x18] sm:$0xff] %v3437_v8  ;;  %v2928_v36 = vmax.f32 %v2886_v14, 0.0  ;;  %v2519_v47 = vadd.f32 %v2518_v60, %v4920_v51  ;;  %v2887_v50 = vadd.f32 %v5013_v53, %v2654_v24  ;;  %v2656_v20 = vadd.f32 %v2655_v39, %v2515_v38 }
 0x1cc   :  { %v2520_v29 = vpop.f32.mrf.mxu0 }
 0x1cd   :  { %v2661_v54 = vpop.f32.mrf.mxu1  ;;  %v3438_v7 = vpack.c.bf16 %v2928_v36, %v2927_v42  ;;  %v2660_v17 = vadd.f32 %v2659_v13, %v2519_v47  ;;  %v2521_v46 = vadd.f32 %v2520_v29, %v4923_v0  ;;  %v2888_v45 = vadd.f32 %v5016_v2, %v2656_v20 }
 0x1ce   :  { %v2522_v56 = vpop.f32.mrf.mxu0  ;;  %v2929_v34 = vmax.f32 %v2887_v50, 0.0 }
 0x1cf   :  { %v2663_v21 = vpop.f32.mrf.mxu1  ;;  %3093 = vst [vmem:[%s5166_s3 + $0x20] sm:$0xff] %v3438_v7  ;;  %v2889_v61 = vadd.f32 %v5013_v53, %v2660_v17  ;;  %v2662_v51 = vadd.f32 %v2661_v54, %v2521_v46  ;;  %v2523_v1 = vadd.f32 %v2522_v56, %v4926_v10  ;;  %v2930_v18 = vmax.f32 %v2888_v45, 0.0 }
 0x1d0   :  { %v2524_v22 = vpop.f32.mrf.mxu0 }
 0x1d1   :  { %v2665_v59 = vpop.f32.mrf.mxu1  ;;  %v2890_v26 = vadd.f32 %v5016_v2, %v2662_v51  ;;  %v2664_v0 = vadd.f32 %v2663_v21, %v2523_v1  ;;  %v2525_v62 = vadd.f32 %v2524_v22, %v4929_v23  ;;  %v3439_v30 = vpack.c.bf16 %v2930_v18, %v2929_v34 }
 0x1d2   :  { %v2931_v32 = vmax.f32 %v2889_v61, 0.0  ;;  %v2528_v41 = vpop.f32.mrf.mxu0 }
 0x1d3   :  { %v2669_v12 = vpop.f32.mrf.mxu1  ;;  %v2932_v39 = vmax.f32 %v2890_v26, 0.0  ;;  %v2891_v8 = vadd.f32 %v5013_v53, %v2664_v0  ;;  %v2666_v14 = vadd.f32 %v2665_v59, %v2525_v62  ;;  %v2529_v24 = vadd.f32 %v2528_v41, %v4932_v31  ;;  %3094 = vst [vmem:[%s5166_s3 + $0x28] sm:$0xff] %v3439_v30 }
 0x1d4   :  { %v2530_v10 = vpop.f32.mrf.mxu0 }
 0x1d5   :  { %v2671_v38 = vpop.f32.mrf.mxu1  ;;  %v3440_v60 = vpack.c.bf16 %v2932_v39, %v2931_v32  ;;  %v2892_v13 = vadd.f32 %v5016_v2, %v2666_v14  ;;  %v2670_v23 = vadd.f32 %v2669_v12, %v2529_v24  ;;  %v2531_v42 = vadd.f32 %v2530_v10, %v4935_v44 }
 0x1d6   :  { %v2532_v36 = vpop.f32.mrf.mxu0  ;;  %v2933_v50 = vmax.f32 %v2891_v8, 0.0 }
 0x1d7   :  { %v2673_v47 = vpop.f32.mrf.mxu1  ;;  %3095 = vst [vmem:[%s5166_s3 + $0x30] sm:$0xff] %v3440_v60  ;;  %v2934_v31 = vmax.f32 %v2892_v13, 0.0  ;;  %v2533_v20 = vadd.f32 %v2532_v36, %v4938_v49  ;;  %v2893_v29 = vadd.f32 %v5013_v53, %v2670_v23  ;;  %v2672_v54 = vadd.f32 %v2671_v38, %v2531_v42 }
 0x1d8   :  { %v2534_v7 = vpop.f32.mrf.mxu0 }
 0x1d9   :  { %v2675_v17 = vpop.f32.mrf.mxu1  ;;  %v3441_v46 = vpack.c.bf16 %v2934_v31, %v2933_v50  ;;  %v2674_v45 = vadd.f32 %v2673_v47, %v2533_v20  ;;  %v2535_v56 = vadd.f32 %v2534_v7, %v4941_v57  ;;  %v2894_v44 = vadd.f32 %v5016_v2, %v2672_v54 }
 0x1da   :  { %v2538_v21 = vpop.f32.mrf.mxu0  ;;  %v2935_v34 = vmax.f32 %v2893_v29, 0.0 }
 0x1db   :  { %v2679_v61 = vpop.f32.mrf.mxu1  ;;  %3096 = vst [vmem:[%s5166_s3 + $0x38] sm:$0xff] %v3441_v46  ;;  %v2895_v51 = vadd.f32 %v5013_v53, %v2674_v45  ;;  %v2676_v49 = vadd.f32 %v2675_v17, %v2535_v56  ;;  %v2539_v1 = vadd.f32 %v2538_v21, %v4944_v5  ;;  %v2936_v18 = vmax.f32 %v2894_v44, 0.0 }
 0x1dc   :  { %v2540_v22 = vpop.f32.mrf.mxu0 }
 0x1dd   :  { %v2681_v59 = vpop.f32.mrf.mxu1  ;;  %v2896_v26 = vadd.f32 %v5016_v2, %v2676_v49  ;;  %v2680_v57 = vadd.f32 %v2679_v61, %v2539_v1  ;;  %v2541_v0 = vadd.f32 %v2540_v22, %v4947_v16  ;;  %v3442_v62 = vpack.c.bf16 %v2936_v18, %v2935_v34 }
 0x1de   :  { %v2937_v30 = vmax.f32 %v2895_v51, 0.0  ;;  %v2542_v32 = vpop.f32.mrf.mxu0 }
 0x1df   :  { %v2683_v41 = vpop.f32.mrf.mxu1  ;;  %v2938_v12 = vmax.f32 %v2896_v26, 0.0  ;;  %v2897_v39 = vadd.f32 %v5013_v53, %v2680_v57  ;;  %v2682_v8 = vadd.f32 %v2681_v59, %v2541_v0  ;;  %v2543_v14 = vadd.f32 %v2542_v32, %v4950_v25  ;;  %3097 = vst [vmem:[%s5166_s3 + $0x40] sm:$0xff] %v3442_v62 }
 0x1e0   :  { %v2544_v5 = vpop.f32.mrf.mxu0 }
 0x1e1   :  { %v2685_v24 = vpop.f32.mrf.mxu1  ;;  %v3443_v10 = vpack.c.bf16 %v2938_v12, %v2937_v30  ;;  %v2898_v38 = vadd.f32 %v5016_v2, %v2682_v8  ;;  %v2684_v16 = vadd.f32 %v2683_v41, %v2543_v14  ;;  %v2545_v60 = vadd.f32 %v2544_v5, %v4953_v28 }
 0x1e2   :  { %v2548_v13 = vpop.f32.mrf.mxu0  ;;  %v2939_v42 = vmax.f32 %v2897_v39, 0.0 }
 0x1e3   :  { %v2689_v23 = vpop.f32.mrf.mxu1  ;;  %3098 = vst [vmem:[%s5166_s3 + $0x48] sm:$0xff] %v3443_v10  ;;  %v2940_v25 = vmax.f32 %v2898_v38, 0.0  ;;  %v2549_v36 = vadd.f32 %v2548_v13, %v4956_v33  ;;  %v2899_v47 = vadd.f32 %v5013_v53, %v2684_v16  ;;  %v2686_v50 = vadd.f32 %v2685_v24, %v2545_v60 }
 0x1e4   :  { %v2550_v31 = vpop.f32.mrf.mxu0 }
 0x1e5   :  { %v2691_v20 = vpop.f32.mrf.mxu1  ;;  %v3444_v29 = vpack.c.bf16 %v2940_v25, %v2939_v42  ;;  %v2690_v54 = vadd.f32 %v2689_v23, %v2549_v36  ;;  %v2551_v7 = vadd.f32 %v2550_v31, %v4959_v37  ;;  %v2900_v28 = vadd.f32 %v5016_v2, %v2686_v50 }
 0x1e6   :  { %v2552_v17 = vpop.f32.mrf.mxu0  ;;  %v2941_v44 = vmax.f32 %v2899_v47, 0.0 }
 0x1e7   :  { %v2693_v46 = vpop.f32.mrf.mxu1  ;;  %3099 = vst [vmem:[%s5166_s3 + $0x50] sm:$0xff] %v3444_v29  ;;  %v2901_v45 = vadd.f32 %v5013_v53, %v2690_v54  ;;  %v2692_v33 = vadd.f32 %v2691_v20, %v2551_v7  ;;  %v2553_v56 = vadd.f32 %v2552_v17, %v4962_v40  ;;  %v2942_v21 = vmax.f32 %v2900_v28, 0.0 }
 0x1e8   :  { %v2554_v61 = vpop.f32.mrf.mxu0 }
 0x1e9   :  { %v2695_v51 = vpop.f32.mrf.mxu1  ;;  %v2902_v49 = vadd.f32 %v5016_v2, %v2692_v33  ;;  %v2694_v37 = vadd.f32 %v2693_v46, %v2553_v56  ;;  %v2555_v1 = vadd.f32 %v2554_v61, %v4965_v43  ;;  %v3445_v34 = vpack.c.bf16 %v2942_v21, %v2941_v44 }
 0x1ea   :  { %v2943_v18 = vmax.f32 %v2901_v45, 0.0  ;;  %v2558_v22 = vpop.f32.mrf.mxu0 }
 0x1eb   :  { %v2699_v59 = vpop.f32.mrf.mxu1  ;;  %v2944_v26 = vmax.f32 %v2902_v49, 0.0  ;;  %v2903_v57 = vadd.f32 %v5013_v53, %v2694_v37  ;;  %v2696_v0 = vadd.f32 %v2695_v51, %v2555_v1  ;;  %v2559_v62 = vadd.f32 %v2558_v22, %v4968_v48  ;;  %3100 = vst [vmem:[%s5166_s3 + $0x58] sm:$0xff] %v3445_v34 }
 0x1ec   :  { %v2560_v40 = vpop.f32.mrf.mxu0 }
 0x1ed   :  { %v2701_v30 = vpop.f32.mrf.mxu1  ;;  %v3446_v32 = vpack.c.bf16 %v2944_v26, %v2943_v18  ;;  %v2904_v41 = vadd.f32 %v5016_v2, %v2696_v0  ;;  %v2700_v43 = vadd.f32 %v2699_v59, %v2559_v62  ;;  %v2561_v12 = vadd.f32 %v2560_v40, %v4971_v52 }
 0x1ee   :  { %v2562_v39 = vpop.f32.mrf.mxu0  ;;  %v2945_v14 = vmax.f32 %v2903_v57, 0.0 }
 0x1ef   :  { %v2703_v8 = vpop.f32.mrf.mxu1  ;;  %3101 = vst [vmem:[%s5166_s3 + $0x60] sm:$0xff] %v3446_v32  ;;  %v2946_v48 = vmax.f32 %v2904_v41, 0.0  ;;  %v2563_v5 = vadd.f32 %v2562_v39, %v4974_v55  ;;  %v2905_v24 = vadd.f32 %v5013_v53, %v2700_v43  ;;  %v2702_v10 = vadd.f32 %v2701_v30, %v2561_v12 }
 0x1f0   :  { %v2564_v38 = vpop.f32.mrf.mxu0 }
 0x1f1   :  { %v2705_v16 = vpop.f32.mrf.mxu1  ;;  %v3447_v60 = vpack.c.bf16 %v2946_v48, %v2945_v14  ;;  %v2704_v13 = vadd.f32 %v2703_v8, %v2563_v5  ;;  %v2565_v23 = vadd.f32 %v2564_v38, %v4977_v58  ;;  %v2906_v52 = vadd.f32 %v5016_v2, %v2702_v10 }
 0x1f2   :  { %v2568_v42 = vpop.f32.mrf.mxu0  ;;  %v2947_v50 = vmax.f32 %v2905_v24, 0.0 }
 0x1f3   :  { %v2709_v25 = vpop.f32.mrf.mxu1  ;;  %3102 = vst [vmem:[%s5166_s3 + $0x68] sm:$0xff] %v3447_v60  ;;  %v2907_v36 = vadd.f32 %v5013_v53, %v2704_v13  ;;  %v2706_v55 = vadd.f32 %v2705_v16, %v2565_v23  ;;  %v2569_v47 = vadd.f32 %v2568_v42, %v4980_v63  ;;  %v2948_v31 = vmax.f32 %v2906_v52, 0.0 }
 0x1f4   :  { %v2570_v20 = vpop.f32.mrf.mxu0 }
 0x1f5   :  { %v2711_v29 = vpop.f32.mrf.mxu1  ;;  %v2908_v54 = vadd.f32 %v5016_v2, %v2706_v55  ;;  %v2710_v58 = vadd.f32 %v2709_v25, %v2569_v47  ;;  %v2571_v7 = vadd.f32 %v2570_v20, %v4983_v3  ;;  %v3448_v28 = vpack.c.bf16 %v2948_v31, %v2947_v50 }
 0x1f6   :  { %v2949_v17 = vmax.f32 %v2907_v36, 0.0  ;;  %v2572_v46 = vpop.f32.mrf.mxu0 }
 0x1f7   :  { %v2713_v45 = vpop.f32.mrf.mxu1  ;;  %v2950_v33 = vmax.f32 %v2908_v54, 0.0  ;;  %v2909_v56 = vadd.f32 %v5013_v53, %v2710_v58  ;;  %v2712_v44 = vadd.f32 %v2711_v29, %v2571_v7  ;;  %v2573_v21 = vadd.f32 %v2572_v46, %v4986_v6  ;;  %3103 = vst [vmem:[%s5166_s3 + $0x70] sm:$0xff] %v3448_v28 }
 0x1f8   :  { %v2574_v63 = vpop.f32.mrf.mxu0 }
 0x1f9   :  { %v2715_v61 = vpop.f32.mrf.mxu1  ;;  %v3449_v51 = vpack.c.bf16 %v2950_v33, %v2949_v17  ;;  %v2910_v49 = vadd.f32 %v5016_v2, %v2712_v44  ;;  %v2714_v3 = vadd.f32 %v2713_v45, %v2573_v21  ;;  %v2575_v37 = vadd.f32 %v2574_v63, %v4989_v9 }
 0x1fa   :  { %v2578_v1 = vpop.f32.mrf.mxu0  ;;  %v2951_v18 = vmax.f32 %v2909_v56, 0.0 }
 0x1fb   :  { %v2719_v34 = vpop.f32.mrf.mxu1  ;;  %3104 = vst [vmem:[%s5166_s3 + $0x78] sm:$0xff] %v3449_v51  ;;  %v2952_v6 = vmax.f32 %v2910_v49, 0.0  ;;  %v2579_v22 = vadd.f32 %v2578_v1, %v4992_v15  ;;  %v2911_v59 = vadd.f32 %v5013_v53, %v2714_v3  ;;  %v2716_v26 = vadd.f32 %v2715_v61, %v2575_v37 }
 0x1fc   :  { %v2580_v57 = vpop.f32.mrf.mxu0 }
 0x1fd   :  { %v2721_v0 = vpop.f32.mrf.mxu1  ;;  %v3450_v62 = vpack.c.bf16 %v2952_v6, %v2951_v18  ;;  %v2720_v40 = vadd.f32 %v2719_v34, %v2579_v22  ;;  %v2581_v30 = vadd.f32 %v2580_v57, %v4995_v19  ;;  %v2912_v9 = vadd.f32 %v5016_v2, %v2716_v26 }
 0x1fe   :  { %v2582_v32 = vpop.f32.mrf.mxu0  ;;  %v2953_v39 = vmax.f32 %v2911_v59, 0.0 }
 0x1ff   :  { %v2723_v41 = vpop.f32.mrf.mxu1  ;;  %3105 = vst [vmem:[%s5166_s3 + $0x80] sm:$0xff] %v3450_v62  ;;  %v2913_v43 = vadd.f32 %v5013_v53, %v2720_v40  ;;  %v2722_v15 = vadd.f32 %v2721_v0, %v2581_v30  ;;  %v2583_v12 = vadd.f32 %v2582_v32, %v4998_v27  ;;  %v2954_v8 = vmax.f32 %v2912_v9, 0.0 }
 0x200   :  { %v2584_v14 = vpop.f32.mrf.mxu0 }
 0x201   :  { %v2725_v48 = vpop.f32.mrf.mxu1  ;;  %v2914_v5 = vadd.f32 %v5016_v2, %v2722_v15  ;;  %v2724_v19 = vadd.f32 %v2723_v41, %v2583_v12  ;;  %v2585_v24 = vadd.f32 %v2584_v14, %v5001_v35  ;;  %v3451_v10 = vpack.c.bf16 %v2954_v8, %v2953_v39 }
 0x202   :  { %v2955_v38 = vmax.f32 %v2913_v43, 0.0  ;;  %v2588_v16 = vpop.f32.mrf.mxu0 }
 0x203   :  { %v2729_v60 = vpop.f32.mrf.mxu1  ;;  %v2956_v13 = vmax.f32 %v2914_v5, 0.0  ;;  %v2915_v23 = vadd.f32 %v5013_v53, %v2724_v19  ;;  %v2726_v52 = vadd.f32 %v2725_v48, %v2585_v24  ;;  %v2589_v42 = vadd.f32 %v2588_v16, %v5004_v4  ;;  %3106 = vst [vmem:[%s5166_s3 + $0x88] sm:$0xff] %v3451_v10 }
 0x204   :  { %v2590_v27 = vpop.f32.mrf.mxu0 }
 0x205   :  { %v2731_v25 = vpop.f32.mrf.mxu1  ;;  %v3452_v36 = vpack.c.bf16 %v2956_v13, %v2955_v38  ;;  %v2916_v55 = vadd.f32 %v5016_v2, %v2726_v52  ;;  %v2730_v35 = vadd.f32 %v2729_v60, %v2589_v42  ;;  %v2591_v47 = vadd.f32 %v2590_v27, %v5007_v11 }
 0x206   :  { %v2592_v50 = vpop.f32.mrf.mxu0  ;;  %v2957_v20 = vmax.f32 %v2915_v23, 0.0 }
 0x207   :  { %v2733_v31 = vpop.f32.mrf.mxu1  ;;  %3107 = vst [vmem:[%s5166_s3 + $0x90] sm:$0xff] %v3452_v36  ;;  %v2958_v4 = vmax.f32 %v2916_v55, 0.0  ;;  %v2917_v29 = vadd.f32 %v5013_v53, %v2730_v35  ;;  %v2732_v54 = vadd.f32 %v2731_v25, %v2591_v47 }
 0x208   :  { %v2593_v58 = vpop.f32.mrf.mxu0 }
 0x209   :  { %v2734_v7 = vpop.f32.mrf.mxu1  ;;  %v3453_v28 = vpack.c.bf16 %v2958_v4, %v2957_v20  ;;  %v2918_v17 = vadd.f32 %v5016_v2, %v2732_v54  ;;  %v2959_v11 = vmax.f32 %v2917_v29, 0.0 }
 0x20b   :  { %3108 = vst [vmem:[%s5166_s3 + $0x98] sm:$0xff] %v3453_v28  ;;  %v2960_v46 = vmax.f32 %v2918_v17, 0.0 }
 0x20d   :  { %v3454_v45 = vpack.c.bf16 %v2960_v46, %v2959_v11 }
 0x20f   :  { %3109 = vst [vmem:[%s5166_s3 + $0xa0] sm:$0xff] %v3454_v45 }

// kernel: inception_d_forward.7
= control target key start
LH: loop header
LB: loop body
LE: loop exit
PB: predicated region body
PF: predicated region fallthrough
CT: control target
= control target key end

     0   :  { %s3416_s12 = smov 0   ;;  %s3418_s13 = smov 0   ;;  %s4150_s0 = inlined_call_operand.vmem [shape: bf16[32,1792], index: 0, kind: input, shape index: {}]   ;;  %s4151_s1 = inlined_call_operand.vmem [shape: bf16[1792,384], index: 1, kind: input, shape index: {}]   ;;  %s4152_s2 = inlined_call_operand.vmem [shape: f32[1,384], index: 2, kind: input, shape index: {}]   ;;  %s4153_s3 = inlined_call_operand.vmem [shape: f32[32,384], index: 3, kind: output, shape index: {}]  }
   0x1   :  { %s3420_s14 = smov 0   ;;  %s3422_s15 = smov 0  }
   0x2   :  { %s3424_s16 = smov 0  }
   0x3 LB: > { %s32_s17 = sadd.s32 1, %s3390_s15  ;;  %s2795_s18 = sadd.s32 4294967295, %s3394_s16   ;;  %s3394_s16 = sphi %s3424_s16, %s13_s16   ;;  %s3390_s15 = sphi %s3422_s15, %s4158_s15   ;;  %s3386_s14 = sphi %s3420_s14, %s4157_s14   ;;  %s3382_s13 = sphi %s3418_s13, %s4156_s13   ;;  %s3378_s12 = sphi %s3416_s12, %s4155_s12  }
   0x4   : > { %p34_p0 = scmp.ge.s32.totalorder %s32_s17, 3  ;;  %p74_p1 = scmp.ne.s32.totalorder %s3382_s13, %s3378_s12 }
   0x5   : > { %p75_p2 = scmp.eq.s32.totalorder %s3394_s16, 0  ;;  %p132_p4 = scmp.eq.s32.totalorder %s2795_s18, 2 }
   0x6   : > { %s4160_s17 = smov (%p34_p0, %s32_s17), 0  ;;  %s67_s20 = sadd.s32 1, %s3382_s13 }
   0x7   : > { %p76_p3 = por %p75_p2, %p74_p1  ;;  %s64_s19 = ssub.s32 %s3390_s15, %s4160_s17 }
   0x8   : > { %p65_p5 = scmp.eq.s32.totalorder %s64_s19, 0  ;;  %p3451_p6 = por %p132_p4, %p74_p1 }
   0x9   : > { %p2799_p7 = scmp.ge.s32.totalorder %s3394_s16, 3 }
   0xa   : > { %s3456_s22 = scalar_select %p65_p5, %s3382_s13, %s67_s20  }
   0xb   : > { %169 = sbr.rel (%p2799_p7) target bundleno = 169 (0xa9), region = 20 }
  0x10   : > { %172 = sbr.rel (!%p76_p3) target bundleno = 169 (0xa9), region = 24  ;;  %s174_s23 = sand.u32 (%p76_p3), 1, %s3382_s13  }
  0x11   : > { %s2800_s24 = sshll.u32 (%p76_p3), %s3390_s15, 2  ;;  %s3160_s25 = smul.u32 (%p76_p3), 896, %s174_s23 }
  0x12   : > { %s3464_s28 = scalar_lea.vmem (%p76_p3), %s4151_s1, %s2800_s24 }
  0x13   : > { %v195_v0 = vld [vmem:[%s3464_s28] sm:$0xf] (%p76_p3)  ;;  %v197_v1 = vld [vmem:[%s3464_s28 + $0xc] sm:$0xf] (%p76_p3)  ;;  %v199_v2 = vld [vmem:[%s3464_s28 + $0x18] sm:$0xf] (%p76_p3) }
  0x14   : > { %v201_v3 = vld [vmem:[%s3464_s28 + $0x24] sm:$0xf] (%p76_p3)  ;;  %v203_v4 = vld [vmem:[%s3464_s28 + $0x30] sm:$0xf] (%p76_p3)  ;;  %s3471_s29 = scalar_lea.vmem (%p76_p3), [#allocation3], %s3160_s25 }
  0x15   : > { %196 = vst [vmem:[%s3471_s29] sm:$0xf] %v195_v0  ;;  %198 = vst [vmem:[%s3471_s29 + $0x4] sm:$0xf] %v197_v1  ;;  %v205_v5 = vld [vmem:[%s3464_s28 + $0x3c] sm:$0xf] }
  0x16   : > { %200 = vst [vmem:[%s3471_s29 + $0x8] sm:$0xf] %v199_v2  ;;  %202 = vst [vmem:[%s3471_s29 + $0xc] sm:$0xf] %v201_v3  ;;  %v207_v6 = vld [vmem:[%s3464_s28 + $0x48] sm:$0xf] }
  0x17   : > { %204 = vst [vmem:[%s3471_s29 + $0x10] sm:$0xf] %v203_v4  ;;  %v209_v7 = vld [vmem:[%s3464_s28 + $0x54] sm:$0xf]  ;;  %206 = vst [vmem:[%s3471_s29 + $0x14] sm:$0xf] %v205_v5 }
  0x18   : > { %208 = vst [vmem:[%s3471_s29 + $0x18] sm:$0xf] %v207_v6  ;;  %210 = vst [vmem:[%s3471_s29 + $0x1c] sm:$0xf] %v209_v7  ;;  %v211_v8 = vld [vmem:[%s3464_s28 + $0x60] sm:$0xf] }
  0x19   : > { %v213_v9 = vld [vmem:[%s3464_s28 + $0x6c] sm:$0xf]  ;;  %v215_v10 = vld [vmem:[%s3464_s28 + $0x78] sm:$0xf]  ;;  %212 = vst [vmem:[%s3471_s29 + $0x20] sm:$0xf] %v211_v8 }
  0x1a   : > { %214 = vst [vmem:[%s3471_s29 + $0x24] sm:$0xf] %v213_v9  ;;  %216 = vst [vmem:[%s3471_s29 + $0x28] sm:$0xf] %v215_v10  ;;  %v217_v11 = vld [vmem:[%s3464_s28 + $0x84] sm:$0xf] }
  0x1b   : > { %v219_v12 = vld [vmem:[%s3464_s28 + $0x90] sm:$0xf]  ;;  %v221_v13 = vld [vmem:[%s3464_s28 + $0x9c] sm:$0xf]  ;;  %218 = vst [vmem:[%s3471_s29 + $0x2c] sm:$0xf] %v217_v11 }
  0x1c   : > { %220 = vst [vmem:[%s3471_s29 + $0x30] sm:$0xf] %v219_v12  ;;  %222 = vst [vmem:[%s3471_s29 + $0x34] sm:$0xf] %v221_v13  ;;  %v223_v14 = vld [vmem:[%s3464_s28 + $0xa8] sm:$0xf] }
  0x1d   : > { %v225_v15 = vld [vmem:[%s3464_s28 + $0xb4] sm:$0xf]  ;;  %v227_v16 = vld [vmem:[%s3464_s28 + $0xc0] sm:$0xf]  ;;  %224 = vst [vmem:[%s3471_s29 + $0x38] sm:$0xf] %v223_v14 }
  0x1e   : > { %226 = vst [vmem:[%s3471_s29 + $0x3c] sm:$0xf] %v225_v15  ;;  %228 = vst [vmem:[%s3471_s29 + $0x40] sm:$0xf] %v227_v16  ;;  %v229_v17 = vld [vmem:[%s3464_s28 + $0xcc] sm:$0xf] }
  0x1f   : > { %v231_v18 = vld [vmem:[%s3464_s28 + $0xd8] sm:$0xf]  ;;  %v233_v19 = vld [vmem:[%s3464_s28 + $0xe4] sm:$0xf]  ;;  %230 = vst [vmem:[%s3471_s29 + $0x44] sm:$0xf] %v229_v17 }
  0x20   : > { %232 = vst [vmem:[%s3471_s29 + $0x48] sm:$0xf] %v231_v18  ;;  %234 = vst [vmem:[%s3471_s29 + $0x4c] sm:$0xf] %v233_v19  ;;  %v235_v20 = vld [vmem:[%s3464_s28 + $0xf0] sm:$0xf] }
  0x21   : > { %v237_v21 = vld [vmem:[%s3464_s28 + $0xfc] sm:$0xf]  ;;  %v239_v22 = vld [vmem:[%s3464_s28 + $0x108] sm:$0xf]  ;;  %236 = vst [vmem:[%s3471_s29 + $0x50] sm:$0xf] %v235_v20 }
  0x22   : > { %238 = vst [vmem:[%s3471_s29 + $0x54] sm:$0xf] %v237_v21  ;;  %240 = vst [vmem:[%s3471_s29 + $0x58] sm:$0xf] %v239_v22  ;;  %v241_v23 = vld [vmem:[%s3464_s28 + $0x114] sm:$0xf] }
  0x23   : > { %v243_v24 = vld [vmem:[%s3464_s28 + $0x120] sm:$0xf]  ;;  %v245_v25 = vld [vmem:[%s3464_s28 + $0x12c] sm:$0xf]  ;;  %242 = vst [vmem:[%s3471_s29 + $0x5c] sm:$0xf] %v241_v23 }
  0x24   : > { %244 = vst [vmem:[%s3471_s29 + $0x60] sm:$0xf] %v243_v24  ;;  %246 = vst [vmem:[%s3471_s29 + $0x64] sm:$0xf] %v245_v25  ;;  %v247_v26 = vld [vmem:[%s3464_s28 + $0x138] sm:$0xf] }
  0x25   : > { %v249_v27 = vld [vmem:[%s3464_s28 + $0x144] sm:$0xf]  ;;  %v251_v28 = vld [vmem:[%s3464_s28 + $0x150] sm:$0xf]  ;;  %248 = vst [vmem:[%s3471_s29 + $0x68] sm:$0xf] %v247_v26 }
  0x26   : > { %250 = vst [vmem:[%s3471_s29 + $0x6c] sm:$0xf] %v249_v27  ;;  %252 = vst [vmem:[%s3471_s29 + $0x70] sm:$0xf] %v251_v28  ;;  %v253_v29 = vld [vmem:[%s3464_s28 + $0x15c] sm:$0xf] }
  0x27   : > { %v255_v30 = vld [vmem:[%s3464_s28 + $0x168] sm:$0xf]  ;;  %v257_v31 = vld [vmem:[%s3464_s28 + $0x174] sm:$0xf]  ;;  %254 = vst [vmem:[%s3471_s29 + $0x74] sm:$0xf] %v253_v29 }
  0x28   : > { %256 = vst [vmem:[%s3471_s29 + $0x78] sm:$0xf] %v255_v30  ;;  %258 = vst [vmem:[%s3471_s29 + $0x7c] sm:$0xf] %v257_v31  ;;  %v259_v32 = vld [vmem:[%s3464_s28 + $0x180] sm:$0xf] }
  0x29   : > { %v261_v33 = vld [vmem:[%s3464_s28 + $0x18c] sm:$0xf]  ;;  %v263_v34 = vld [vmem:[%s3464_s28 + $0x198] sm:$0xf]  ;;  %260 = vst [vmem:[%s3471_s29 + $0x80] sm:$0xf] %v259_v32 }
  0x2a   : > { %262 = vst [vmem:[%s3471_s29 + $0x84] sm:$0xf] %v261_v33  ;;  %264 = vst [vmem:[%s3471_s29 + $0x88] sm:$0xf] %v263_v34  ;;  %v265_v35 = vld [vmem:[%s3464_s28 + $0x1a4] sm:$0xf] }
  0x2b   : > { %v267_v36 = vld [vmem:[%s3464_s28 + $0x1b0] sm:$0xf]  ;;  %v269_v37 = vld [vmem:[%s3464_s28 + $0x1bc] sm:$0xf]  ;;  %266 = vst [vmem:[%s3471_s29 + $0x8c] sm:$0xf] %v265_v35 }
  0x2c   : > { %268 = vst [vmem:[%s3471_s29 + $0x90] sm:$0xf] %v267_v36  ;;  %270 = vst [vmem:[%s3471_s29 + $0x94] sm:$0xf] %v269_v37  ;;  %v271_v38 = vld [vmem:[%s3464_s28 + $0x1c8] sm:$0xf] }
  0x2d   : > { %v273_v39 = vld [vmem:[%s3464_s28 + $0x1d4] sm:$0xf]  ;;  %v275_v40 = vld [vmem:[%s3464_s28 + $0x1e0] sm:$0xf]  ;;  %272 = vst [vmem:[%s3471_s29 + $0x98] sm:$0xf] %v271_v38 }
  0x2e   : > { %274 = vst [vmem:[%s3471_s29 + $0x9c] sm:$0xf] %v273_v39  ;;  %276 = vst [vmem:[%s3471_s29 + $0xa0] sm:$0xf] %v275_v40  ;;  %v277_v41 = vld [vmem:[%s3464_s28 + $0x1ec] sm:$0xf] }
  0x2f   : > { %v279_v42 = vld [vmem:[%s3464_s28 + $0x1f8] sm:$0xf]  ;;  %v281_v43 = vld [vmem:[%s3464_s28 + $0x204] sm:$0xf]  ;;  %278 = vst [vmem:[%s3471_s29 + $0xa4] sm:$0xf] %v277_v41 }
  0x30   : > { %280 = vst [vmem:[%s3471_s29 + $0xa8] sm:$0xf] %v279_v42  ;;  %282 = vst [vmem:[%s3471_s29 + $0xac] sm:$0xf] %v281_v43  ;;  %v283_v44 = vld [vmem:[%s3464_s28 + $0x210] sm:$0xf] }
  0x31   : > { %v285_v45 = vld [vmem:[%s3464_s28 + $0x21c] sm:$0xf]  ;;  %v287_v46 = vld [vmem:[%s3464_s28 + $0x228] sm:$0xf]  ;;  %284 = vst [vmem:[%s3471_s29 + $0xb0] sm:$0xf] %v283_v44 }
  0x32   : > { %286 = vst [vmem:[%s3471_s29 + $0xb4] sm:$0xf] %v285_v45  ;;  %288 = vst [vmem:[%s3471_s29 + $0xb8] sm:$0xf] %v287_v46  ;;  %v289_v47 = vld [vmem:[%s3464_s28 + $0x234] sm:$0xf] }
  0x33   : > { %v291_v48 = vld [vmem:[%s3464_s28 + $0x240] sm:$0xf]  ;;  %v293_v49 = vld [vmem:[%s3464_s28 + $0x24c] sm:$0xf]  ;;  %290 = vst [vmem:[%s3471_s29 + $0xbc] sm:$0xf] %v289_v47 }
  0x34   : > { %292 = vst [vmem:[%s3471_s29 + $0xc0] sm:$0xf] %v291_v48  ;;  %294 = vst [vmem:[%s3471_s29 + $0xc4] sm:$0xf] %v293_v49  ;;  %v295_v50 = vld [vmem:[%s3464_s28 + $0x258] sm:$0xf] }
  0x35   : > { %v297_v51 = vld [vmem:[%s3464_s28 + $0x264] sm:$0xf]  ;;  %v299_v52 = vld [vmem:[%s3464_s28 + $0x270] sm:$0xf]  ;;  %296 = vst [vmem:[%s3471_s29 + $0xc8] sm:$0xf] %v295_v50 }
  0x36   : > { %298 = vst [vmem:[%s3471_s29 + $0xcc] sm:$0xf] %v297_v51  ;;  %300 = vst [vmem:[%s3471_s29 + $0xd0] sm:$0xf] %v299_v52  ;;  %v301_v53 = vld [vmem:[%s3464_s28 + $0x27c] sm:$0xf] }
  0x37   : > { %v303_v54 = vld [vmem:[%s3464_s28 + $0x288] sm:$0xf]  ;;  %v305_v55 = vld [vmem:[%s3464_s28 + $0x294] sm:$0xf]  ;;  %302 = vst [vmem:[%s3471_s29 + $0xd4] sm:$0xf] %v301_v53 }
  0x38   : > { %304 = vst [vmem:[%s3471_s29 + $0xd8] sm:$0xf] %v303_v54  ;;  %306 = vst [vmem:[%s3471_s29 + $0xdc] sm:$0xf] %v305_v55  ;;  %v307_v56 = vld [vmem:[%s3464_s28 + $0x2a0] sm:$0xf] }
  0x39   : > { %v309_v57 = vld [vmem:[%s3464_s28 + $0x2ac] sm:$0xf]  ;;  %v311_v58 = vld [vmem:[%s3464_s28 + $0x2b8] sm:$0xf]  ;;  %308 = vst [vmem:[%s3471_s29 + $0xe0] sm:$0xf] %v307_v56 }
  0x3a   : > { %310 = vst [vmem:[%s3471_s29 + $0xe4] sm:$0xf] %v309_v57  ;;  %312 = vst [vmem:[%s3471_s29 + $0xe8] sm:$0xf] %v311_v58  ;;  %v313_v59 = vld [vmem:[%s3464_s28 + $0x2c4] sm:$0xf] }
  0x3b   : > { %v315_v60 = vld [vmem:[%s3464_s28 + $0x2d0] sm:$0xf]  ;;  %v317_v61 = vld [vmem:[%s3464_s28 + $0x2dc] sm:$0xf]  ;;  %314 = vst [vmem:[%s3471_s29 + $0xec] sm:$0xf] %v313_v59 }
  0x3c   : > { %316 = vst [vmem:[%s3471_s29 + $0xf0] sm:$0xf] %v315_v60  ;;  %318 = vst [vmem:[%s3471_s29 + $0xf4] sm:$0xf] %v317_v61  ;;  %v319_v62 = vld [vmem:[%s3464_s28 + $0x2e8] sm:$0xf] }
  0x3d   : > { %v321_v63 = vld [vmem:[%s3464_s28 + $0x2f4] sm:$0xf]  ;;  %v323_v0 = vld [vmem:[%s3464_s28 + $0x300] sm:$0xf]  ;;  %320 = vst [vmem:[%s3471_s29 + $0xf8] sm:$0xf] %v319_v62 }
  0x3e   : > { %322 = vst [vmem:[%s3471_s29 + $0xfc] sm:$0xf] %v321_v63  ;;  %324 = vst [vmem:[%s3471_s29 + $0x100] sm:$0xf] %v323_v0  ;;  %v325_v1 = vld [vmem:[%s3464_s28 + $0x30c] sm:$0xf] }
  0x3f   : > { %v327_v2 = vld [vmem:[%s3464_s28 + $0x318] sm:$0xf]  ;;  %v329_v3 = vld [vmem:[%s3464_s28 + $0x324] sm:$0xf]  ;;  %326 = vst [vmem:[%s3471_s29 + $0x104] sm:$0xf] %v325_v1 }
  0x40   : > { %328 = vst [vmem:[%s3471_s29 + $0x108] sm:$0xf] %v327_v2  ;;  %330 = vst [vmem:[%s3471_s29 + $0x10c] sm:$0xf] %v329_v3  ;;  %v331_v4 = vld [vmem:[%s3464_s28 + $0x330] sm:$0xf] }
  0x41   : > { %v333_v5 = vld [vmem:[%s3464_s28 + $0x33c] sm:$0xf]  ;;  %v335_v6 = vld [vmem:[%s3464_s28 + $0x348] sm:$0xf]  ;;  %332 = vst [vmem:[%s3471_s29 + $0x110] sm:$0xf] %v331_v4 }
  0x42   : > { %334 = vst [vmem:[%s3471_s29 + $0x114] sm:$0xf] %v333_v5  ;;  %336 = vst [vmem:[%s3471_s29 + $0x118] sm:$0xf] %v335_v6  ;;  %v337_v7 = vld [vmem:[%s3464_s28 + $0x354] sm:$0xf] }
  0x43   : > { %v339_v8 = vld [vmem:[%s3464_s28 + $0x360] sm:$0xf]  ;;  %v341_v9 = vld [vmem:[%s3464_s28 + $0x36c] sm:$0xf]  ;;  %338 = vst [vmem:[%s3471_s29 + $0x11c] sm:$0xf] %v337_v7 }
  0x44   : > { %340 = vst [vmem:[%s3471_s29 + $0x120] sm:$0xf] %v339_v8  ;;  %342 = vst [vmem:[%s3471_s29 + $0x124] sm:$0xf] %v341_v9  ;;  %v343_v10 = vld [vmem:[%s3464_s28 + $0x378] sm:$0xf] }
  0x45   : > { %v345_v11 = vld [vmem:[%s3464_s28 + $0x384] sm:$0xf]  ;;  %v347_v12 = vld [vmem:[%s3464_s28 + $0x390] sm:$0xf]  ;;  %344 = vst [vmem:[%s3471_s29 + $0x128] sm:$0xf] %v343_v10 }
  0x46   : > { %346 = vst [vmem:[%s3471_s29 + $0x12c] sm:$0xf] %v345_v11  ;;  %348 = vst [vmem:[%s3471_s29 + $0x130] sm:$0xf] %v347_v12  ;;  %v349_v13 = vld [vmem:[%s3464_s28 + $0x39c] sm:$0xf] }
  0x47   : > { %v351_v14 = vld [vmem:[%s3464_s28 + $0x3a8] sm:$0xf]  ;;  %v353_v15 = vld [vmem:[%s3464_s28 + $0x3b4] sm:$0xf]  ;;  %350 = vst [vmem:[%s3471_s29 + $0x134] sm:$0xf] %v349_v13 }
  0x48   : > { %352 = vst [vmem:[%s3471_s29 + $0x138] sm:$0xf] %v351_v14  ;;  %354 = vst [vmem:[%s3471_s29 + $0x13c] sm:$0xf] %v353_v15  ;;  %v355_v16 = vld [vmem:[%s3464_s28 + $0x3c0] sm:$0xf] }
  0x49   : > { %v357_v17 = vld [vmem:[%s3464_s28 + $0x3cc] sm:$0xf]  ;;  %v359_v18 = vld [vmem:[%s3464_s28 + $0x3d8] sm:$0xf]  ;;  %356 = vst [vmem:[%s3471_s29 + $0x140] sm:$0xf] %v355_v16 }
  0x4a   : > { %358 = vst [vmem:[%s3471_s29 + $0x144] sm:$0xf] %v357_v17  ;;  %360 = vst [vmem:[%s3471_s29 + $0x148] sm:$0xf] %v359_v18  ;;  %v361_v19 = vld [vmem:[%s3464_s28 + $0x3e4] sm:$0xf] }
  0x4b   : > { %v363_v20 = vld [vmem:[%s3464_s28 + $0x3f0] sm:$0xf]  ;;  %v365_v21 = vld [vmem:[%s3464_s28 + $0x3fc] sm:$0xf]  ;;  %362 = vst [vmem:[%s3471_s29 + $0x14c] sm:$0xf] %v361_v19 }
  0x4c   : > { %364 = vst [vmem:[%s3471_s29 + $0x150] sm:$0xf] %v363_v20  ;;  %366 = vst [vmem:[%s3471_s29 + $0x154] sm:$0xf] %v365_v21  ;;  %v367_v22 = vld [vmem:[%s3464_s28 + $0x408] sm:$0xf] }
  0x4d   : > { %v369_v23 = vld [vmem:[%s3464_s28 + $0x414] sm:$0xf]  ;;  %v371_v24 = vld [vmem:[%s3464_s28 + $0x420] sm:$0xf]  ;;  %368 = vst [vmem:[%s3471_s29 + $0x158] sm:$0xf] %v367_v22 }
  0x4e   : > { %370 = vst [vmem:[%s3471_s29 + $0x15c] sm:$0xf] %v369_v23  ;;  %372 = vst [vmem:[%s3471_s29 + $0x160] sm:$0xf] %v371_v24  ;;  %v373_v25 = vld [vmem:[%s3464_s28 + $0x42c] sm:$0xf] }
  0x4f   : > { %v375_v26 = vld [vmem:[%s3464_s28 + $0x438] sm:$0xf]  ;;  %v377_v27 = vld [vmem:[%s3464_s28 + $0x444] sm:$0xf]  ;;  %374 = vst [vmem:[%s3471_s29 + $0x164] sm:$0xf] %v373_v25 }
  0x50   : > { %376 = vst [vmem:[%s3471_s29 + $0x168] sm:$0xf] %v375_v26  ;;  %378 = vst [vmem:[%s3471_s29 + $0x16c] sm:$0xf] %v377_v27  ;;  %v379_v28 = vld [vmem:[%s3464_s28 + $0x450] sm:$0xf] }
  0x51   : > { %v381_v29 = vld [vmem:[%s3464_s28 + $0x45c] sm:$0xf]  ;;  %v383_v30 = vld [vmem:[%s3464_s28 + $0x468] sm:$0xf]  ;;  %380 = vst [vmem:[%s3471_s29 + $0x170] sm:$0xf] %v379_v28 }
  0x52   : > { %382 = vst [vmem:[%s3471_s29 + $0x174] sm:$0xf] %v381_v29  ;;  %384 = vst [vmem:[%s3471_s29 + $0x178] sm:$0xf] %v383_v30  ;;  %v385_v31 = vld [vmem:[%s3464_s28 + $0x474] sm:$0xf] }
  0x53   : > { %v387_v32 = vld [vmem:[%s3464_s28 + $0x480] sm:$0xf]  ;;  %v389_v33 = vld [vmem:[%s3464_s28 + $0x48c] sm:$0xf]  ;;  %386 = vst [vmem:[%s3471_s29 + $0x17c] sm:$0xf] %v385_v31 }
  0x54   : > { %388 = vst [vmem:[%s3471_s29 + $0x180] sm:$0xf] %v387_v32  ;;  %390 = vst [vmem:[%s3471_s29 + $0x184] sm:$0xf] %v389_v33  ;;  %v391_v34 = vld [vmem:[%s3464_s28 + $0x498] sm:$0xf] }
  0x55   : > { %v393_v35 = vld [vmem:[%s3464_s28 + $0x4a4] sm:$0xf]  ;;  %v395_v36 = vld [vmem:[%s3464_s28 + $0x4b0] sm:$0xf]  ;;  %392 = vst [vmem:[%s3471_s29 + $0x188] sm:$0xf] %v391_v34 }
  0x56   : > { %394 = vst [vmem:[%s3471_s29 + $0x18c] sm:$0xf] %v393_v35  ;;  %396 = vst [vmem:[%s3471_s29 + $0x190] sm:$0xf] %v395_v36  ;;  %v397_v37 = vld [vmem:[%s3464_s28 + $0x4bc] sm:$0xf] }
  0x57   : > { %v399_v38 = vld [vmem:[%s3464_s28 + $0x4c8] sm:$0xf]  ;;  %v401_v39 = vld [vmem:[%s3464_s28 + $0x4d4] sm:$0xf]  ;;  %398 = vst [vmem:[%s3471_s29 + $0x194] sm:$0xf] %v397_v37 }
  0x58   : > { %400 = vst [vmem:[%s3471_s29 + $0x198] sm:$0xf] %v399_v38  ;;  %402 = vst [vmem:[%s3471_s29 + $0x19c] sm:$0xf] %v401_v39  ;;  %v403_v40 = vld [vmem:[%s3464_s28 + $0x4e0] sm:$0xf] }
  0x59   : > { %v405_v41 = vld [vmem:[%s3464_s28 + $0x4ec] sm:$0xf]  ;;  %v407_v42 = vld [vmem:[%s3464_s28 + $0x4f8] sm:$0xf]  ;;  %404 = vst [vmem:[%s3471_s29 + $0x1a0] sm:$0xf] %v403_v40 }
  0x5a   : > { %406 = vst [vmem:[%s3471_s29 + $0x1a4] sm:$0xf] %v405_v41  ;;  %408 = vst [vmem:[%s3471_s29 + $0x1a8] sm:$0xf] %v407_v42  ;;  %v409_v43 = vld [vmem:[%s3464_s28 + $0x504] sm:$0xf] }
  0x5b   : > { %v411_v44 = vld [vmem:[%s3464_s28 + $0x510] sm:$0xf]  ;;  %v413_v45 = vld [vmem:[%s3464_s28 + $0x51c] sm:$0xf]  ;;  %410 = vst [vmem:[%s3471_s29 + $0x1ac] sm:$0xf] %v409_v43 }
  0x5c   : > { %412 = vst [vmem:[%s3471_s29 + $0x1b0] sm:$0xf] %v411_v44  ;;  %414 = vst [vmem:[%s3471_s29 + $0x1b4] sm:$0xf] %v413_v45  ;;  %v415_v46 = vld [vmem:[%s3464_s28 + $0x528] sm:$0xf] }
  0x5d   : > { %v417_v47 = vld [vmem:[%s3464_s28 + $0x534] sm:$0xf]  ;;  %v419_v48 = vld [vmem:[%s3464_s28 + $0x540] sm:$0xf]  ;;  %416 = vst [vmem:[%s3471_s29 + $0x1b8] sm:$0xf] %v415_v46 }
  0x5e   : > { %418 = vst [vmem:[%s3471_s29 + $0x1bc] sm:$0xf] %v417_v47  ;;  %420 = vst [vmem:[%s3471_s29 + $0x1c0] sm:$0xf] %v419_v48  ;;  %v421_v49 = vld [vmem:[%s3464_s28 + $0x54c] sm:$0xf] }
  0x5f   : > { %v423_v50 = vld [vmem:[%s3464_s28 + $0x558] sm:$0xf]  ;;  %v425_v51 = vld [vmem:[%s3464_s28 + $0x564] sm:$0xf]  ;;  %422 = vst [vmem:[%s3471_s29 + $0x1c4] sm:$0xf] %v421_v49 }
  0x60   : > { %424 = vst [vmem:[%s3471_s29 + $0x1c8] sm:$0xf] %v423_v50  ;;  %426 = vst [vmem:[%s3471_s29 + $0x1cc] sm:$0xf] %v425_v51  ;;  %v427_v52 = vld [vmem:[%s3464_s28 + $0x570] sm:$0xf] }
  0x61   : > { %v429_v53 = vld [vmem:[%s3464_s28 + $0x57c] sm:$0xf]  ;;  %v431_v54 = vld [vmem:[%s3464_s28 + $0x588] sm:$0xf]  ;;  %428 = vst [vmem:[%s3471_s29 + $0x1d0] sm:$0xf] %v427_v52 }
  0x62   : > { %430 = vst [vmem:[%s3471_s29 + $0x1d4] sm:$0xf] %v429_v53  ;;  %432 = vst [vmem:[%s3471_s29 + $0x1d8] sm:$0xf] %v431_v54  ;;  %v433_v55 = vld [vmem:[%s3464_s28 + $0x594] sm:$0xf] }
  0x63   : > { %v435_v56 = vld [vmem:[%s3464_s28 + $0x5a0] sm:$0xf]  ;;  %v437_v57 = vld [vmem:[%s3464_s28 + $0x5ac] sm:$0xf]  ;;  %434 = vst [vmem:[%s3471_s29 + $0x1dc] sm:$0xf] %v433_v55 }
  0x64   : > { %436 = vst [vmem:[%s3471_s29 + $0x1e0] sm:$0xf] %v435_v56  ;;  %438 = vst [vmem:[%s3471_s29 + $0x1e4] sm:$0xf] %v437_v57  ;;  %v439_v58 = vld [vmem:[%s3464_s28 + $0x5b8] sm:$0xf] }
  0x65   : > { %v441_v59 = vld [vmem:[%s3464_s28 + $0x5c4] sm:$0xf]  ;;  %v443_v60 = vld [vmem:[%s3464_s28 + $0x5d0] sm:$0xf]  ;;  %440 = vst [vmem:[%s3471_s29 + $0x1e8] sm:$0xf] %v439_v58 }
  0x66   : > { %442 = vst [vmem:[%s3471_s29 + $0x1ec] sm:$0xf] %v441_v59  ;;  %444 = vst [vmem:[%s3471_s29 + $0x1f0] sm:$0xf] %v443_v60  ;;  %v445_v61 = vld [vmem:[%s3464_s28 + $0x5dc] sm:$0xf] }
  0x67   : > { %v447_v62 = vld [vmem:[%s3464_s28 + $0x5e8] sm:$0xf]  ;;  %v449_v63 = vld [vmem:[%s3464_s28 + $0x5f4] sm:$0xf]  ;;  %446 = vst [vmem:[%s3471_s29 + $0x1f4] sm:$0xf] %v445_v61 }
  0x68   : > { %448 = vst [vmem:[%s3471_s29 + $0x1f8] sm:$0xf] %v447_v62  ;;  %450 = vst [vmem:[%s3471_s29 + $0x1fc] sm:$0xf] %v449_v63  ;;  %v451_v0 = vld [vmem:[%s3464_s28 + $0x600] sm:$0xf] }
  0x69   : > { %v453_v1 = vld [vmem:[%s3464_s28 + $0x60c] sm:$0xf]  ;;  %v455_v2 = vld [vmem:[%s3464_s28 + $0x618] sm:$0xf]  ;;  %452 = vst [vmem:[%s3471_s29 + $0x200] sm:$0xf] %v451_v0 }
  0x6a   : > { %454 = vst [vmem:[%s3471_s29 + $0x204] sm:$0xf] %v453_v1  ;;  %456 = vst [vmem:[%s3471_s29 + $0x208] sm:$0xf] %v455_v2  ;;  %v457_v3 = vld [vmem:[%s3464_s28 + $0x624] sm:$0xf] }
  0x6b   : > { %v459_v4 = vld [vmem:[%s3464_s28 + $0x630] sm:$0xf]  ;;  %v461_v5 = vld [vmem:[%s3464_s28 + $0x63c] sm:$0xf]  ;;  %458 = vst [vmem:[%s3471_s29 + $0x20c] sm:$0xf] %v457_v3 }
  0x6c   : > { %460 = vst [vmem:[%s3471_s29 + $0x210] sm:$0xf] %v459_v4  ;;  %462 = vst [vmem:[%s3471_s29 + $0x214] sm:$0xf] %v461_v5  ;;  %v463_v6 = vld [vmem:[%s3464_s28 + $0x648] sm:$0xf] }
  0x6d   : > { %v465_v7 = vld [vmem:[%s3464_s28 + $0x654] sm:$0xf]  ;;  %v467_v8 = vld [vmem:[%s3464_s28 + $0x660] sm:$0xf]  ;;  %464 = vst [vmem:[%s3471_s29 + $0x218] sm:$0xf] %v463_v6 }
  0x6e   : > { %466 = vst [vmem:[%s3471_s29 + $0x21c] sm:$0xf] %v465_v7  ;;  %468 = vst [vmem:[%s3471_s29 + $0x220] sm:$0xf] %v467_v8  ;;  %v469_v9 = vld [vmem:[%s3464_s28 + $0x66c] sm:$0xf] }
  0x6f   : > { %v471_v10 = vld [vmem:[%s3464_s28 + $0x678] sm:$0xf]  ;;  %v473_v11 = vld [vmem:[%s3464_s28 + $0x684] sm:$0xf]  ;;  %470 = vst [vmem:[%s3471_s29 + $0x224] sm:$0xf] %v469_v9 }
  0x70   : > { %472 = vst [vmem:[%s3471_s29 + $0x228] sm:$0xf] %v471_v10  ;;  %474 = vst [vmem:[%s3471_s29 + $0x22c] sm:$0xf] %v473_v11  ;;  %v475_v12 = vld [vmem:[%s3464_s28 + $0x690] sm:$0xf] }
  0x71   : > { %v477_v13 = vld [vmem:[%s3464_s28 + $0x69c] sm:$0xf]  ;;  %v479_v14 = vld [vmem:[%s3464_s28 + $0x6a8] sm:$0xf]  ;;  %476 = vst [vmem:[%s3471_s29 + $0x230] sm:$0xf] %v475_v12 }
  0x72   : > { %478 = vst [vmem:[%s3471_s29 + $0x234] sm:$0xf] %v477_v13  ;;  %480 = vst [vmem:[%s3471_s29 + $0x238] sm:$0xf] %v479_v14  ;;  %v481_v15 = vld [vmem:[%s3464_s28 + $0x6b4] sm:$0xf] }
  0x73   : > { %v483_v16 = vld [vmem:[%s3464_s28 + $0x6c0] sm:$0xf]  ;;  %v485_v17 = vld [vmem:[%s3464_s28 + $0x6cc] sm:$0xf]  ;;  %482 = vst [vmem:[%s3471_s29 + $0x23c] sm:$0xf] %v481_v15 }
  0x74   : > { %484 = vst [vmem:[%s3471_s29 + $0x240] sm:$0xf] %v483_v16  ;;  %486 = vst [vmem:[%s3471_s29 + $0x244] sm:$0xf] %v485_v17  ;;  %v487_v18 = vld [vmem:[%s3464_s28 + $0x6d8] sm:$0xf] }
  0x75   : > { %v489_v19 = vld [vmem:[%s3464_s28 + $0x6e4] sm:$0xf]  ;;  %v491_v20 = vld [vmem:[%s3464_s28 + $0x6f0] sm:$0xf]  ;;  %488 = vst [vmem:[%s3471_s29 + $0x248] sm:$0xf] %v487_v18 }
  0x76   : > { %490 = vst [vmem:[%s3471_s29 + $0x24c] sm:$0xf] %v489_v19  ;;  %492 = vst [vmem:[%s3471_s29 + $0x250] sm:$0xf] %v491_v20  ;;  %v493_v21 = vld [vmem:[%s3464_s28 + $0x6fc] sm:$0xf] }
  0x77   : > { %v495_v22 = vld [vmem:[%s3464_s28 + $0x708] sm:$0xf]  ;;  %v497_v23 = vld [vmem:[%s3464_s28 + $0x714] sm:$0xf]  ;;  %494 = vst [vmem:[%s3471_s29 + $0x254] sm:$0xf] %v493_v21 }
  0x78   : > { %496 = vst [vmem:[%s3471_s29 + $0x258] sm:$0xf] %v495_v22  ;;  %498 = vst [vmem:[%s3471_s29 + $0x25c] sm:$0xf] %v497_v23  ;;  %v499_v24 = vld [vmem:[%s3464_s28 + $0x720] sm:$0xf] }
  0x79   : > { %v501_v25 = vld [vmem:[%s3464_s28 + $0x72c] sm:$0xf]  ;;  %v503_v26 = vld [vmem:[%s3464_s28 + $0x738] sm:$0xf]  ;;  %500 = vst [vmem:[%s3471_s29 + $0x260] sm:$0xf] %v499_v24 }
  0x7a   : > { %502 = vst [vmem:[%s3471_s29 + $0x264] sm:$0xf] %v501_v25  ;;  %504 = vst [vmem:[%s3471_s29 + $0x268] sm:$0xf] %v503_v26  ;;  %v505_v27 = vld [vmem:[%s3464_s28 + $0x744] sm:$0xf] }
  0x7b   : > { %v507_v28 = vld [vmem:[%s3464_s28 + $0x750] sm:$0xf]  ;;  %v509_v29 = vld [vmem:[%s3464_s28 + $0x75c] sm:$0xf]  ;;  %506 = vst [vmem:[%s3471_s29 + $0x26c] sm:$0xf] %v505_v27 }
  0x7c   : > { %508 = vst [vmem:[%s3471_s29 + $0x270] sm:$0xf] %v507_v28  ;;  %510 = vst [vmem:[%s3471_s29 + $0x274] sm:$0xf] %v509_v29  ;;  %v511_v30 = vld [vmem:[%s3464_s28 + $0x768] sm:$0xf] }
  0x7d   : > { %v513_v31 = vld [vmem:[%s3464_s28 + $0x774] sm:$0xf]  ;;  %v515_v32 = vld [vmem:[%s3464_s28 + $0x780] sm:$0xf]  ;;  %512 = vst [vmem:[%s3471_s29 + $0x278] sm:$0xf] %v511_v30 }
  0x7e   : > { %514 = vst [vmem:[%s3471_s29 + $0x27c] sm:$0xf] %v513_v31  ;;  %516 = vst [vmem:[%s3471_s29 + $0x280] sm:$0xf] %v515_v32  ;;  %v517_v33 = vld [vmem:[%s3464_s28 + $0x78c] sm:$0xf] }
  0x7f   : > { %v519_v34 = vld [vmem:[%s3464_s28 + $0x798] sm:$0xf]  ;;  %v521_v35 = vld [vmem:[%s3464_s28 + $0x7a4] sm:$0xf]  ;;  %518 = vst [vmem:[%s3471_s29 + $0x284] sm:$0xf] %v517_v33 }
  0x80   : > { %520 = vst [vmem:[%s3471_s29 + $0x288] sm:$0xf] %v519_v34  ;;  %522 = vst [vmem:[%s3471_s29 + $0x28c] sm:$0xf] %v521_v35  ;;  %v523_v36 = vld [vmem:[%s3464_s28 + $0x7b0] sm:$0xf] }
  0x81   : > { %v525_v37 = vld [vmem:[%s3464_s28 + $0x7bc] sm:$0xf]  ;;  %v527_v38 = vld [vmem:[%s3464_s28 + $0x7c8] sm:$0xf]  ;;  %524 = vst [vmem:[%s3471_s29 + $0x290] sm:$0xf] %v523_v36 }
  0x82   : > { %526 = vst [vmem:[%s3471_s29 + $0x294] sm:$0xf] %v525_v37  ;;  %528 = vst [vmem:[%s3471_s29 + $0x298] sm:$0xf] %v527_v38  ;;  %v529_v39 = vld [vmem:[%s3464_s28 + $0x7d4] sm:$0xf] }
  0x83   : > { %v531_v40 = vld [vmem:[%s3464_s28 + $0x7e0] sm:$0xf]  ;;  %v533_v41 = vld [vmem:[%s3464_s28 + $0x7ec] sm:$0xf]  ;;  %530 = vst [vmem:[%s3471_s29 + $0x29c] sm:$0xf] %v529_v39 }
  0x84   : > { %532 = vst [vmem:[%s3471_s29 + $0x2a0] sm:$0xf] %v531_v40  ;;  %534 = vst [vmem:[%s3471_s29 + $0x2a4] sm:$0xf] %v533_v41  ;;  %v535_v42 = vld [vmem:[%s3464_s28 + $0x7f8] sm:$0xf] }
  0x85   : > { %v537_v43 = vld [vmem:[%s3464_s28 + $0x804] sm:$0xf]  ;;  %v539_v44 = vld [vmem:[%s3464_s28 + $0x810] sm:$0xf]  ;;  %536 = vst [vmem:[%s3471_s29 + $0x2a8] sm:$0xf] %v535_v42 }
  0x86   : > { %538 = vst [vmem:[%s3471_s29 + $0x2ac] sm:$0xf] %v537_v43  ;;  %540 = vst [vmem:[%s3471_s29 + $0x2b0] sm:$0xf] %v539_v44  ;;  %v541_v45 = vld [vmem:[%s3464_s28 + $0x81c] sm:$0xf] }
  0x87   : > { %v543_v46 = vld [vmem:[%s3464_s28 + $0x828] sm:$0xf]  ;;  %v545_v47 = vld [vmem:[%s3464_s28 + $0x834] sm:$0xf]  ;;  %542 = vst [vmem:[%s3471_s29 + $0x2b4] sm:$0xf] %v541_v45 }
  0x88   : > { %544 = vst [vmem:[%s3471_s29 + $0x2b8] sm:$0xf] %v543_v46  ;;  %546 = vst [vmem:[%s3471_s29 + $0x2bc] sm:$0xf] %v545_v47  ;;  %v547_v48 = vld [vmem:[%s3464_s28 + $0x840] sm:$0xf] }
  0x89   : > { %v549_v49 = vld [vmem:[%s3464_s28 + $0x84c] sm:$0xf]  ;;  %v551_v50 = vld [vmem:[%s3464_s28 + $0x858] sm:$0xf]  ;;  %548 = vst [vmem:[%s3471_s29 + $0x2c0] sm:$0xf] %v547_v48 }
  0x8a   : > { %550 = vst [vmem:[%s3471_s29 + $0x2c4] sm:$0xf] %v549_v49  ;;  %552 = vst [vmem:[%s3471_s29 + $0x2c8] sm:$0xf] %v551_v50  ;;  %v553_v51 = vld [vmem:[%s3464_s28 + $0x864] sm:$0xf] }
  0x8b   : > { %v555_v52 = vld [vmem:[%s3464_s28 + $0x870] sm:$0xf]  ;;  %v557_v53 = vld [vmem:[%s3464_s28 + $0x87c] sm:$0xf]  ;;  %554 = vst [vmem:[%s3471_s29 + $0x2cc] sm:$0xf] %v553_v51 }
  0x8c   : > { %556 = vst [vmem:[%s3471_s29 + $0x2d0] sm:$0xf] %v555_v52  ;;  %558 = vst [vmem:[%s3471_s29 + $0x2d4] sm:$0xf] %v557_v53  ;;  %v559_v54 = vld [vmem:[%s3464_s28 + $0x888] sm:$0xf] }
  0x8d   : > { %v561_v55 = vld [vmem:[%s3464_s28 + $0x894] sm:$0xf]  ;;  %v563_v56 = vld [vmem:[%s3464_s28 + $0x8a0] sm:$0xf]  ;;  %560 = vst [vmem:[%s3471_s29 + $0x2d8] sm:$0xf] %v559_v54 }
  0x8e   : > { %562 = vst [vmem:[%s3471_s29 + $0x2dc] sm:$0xf] %v561_v55  ;;  %564 = vst [vmem:[%s3471_s29 + $0x2e0] sm:$0xf] %v563_v56  ;;  %v565_v57 = vld [vmem:[%s3464_s28 + $0x8ac] sm:$0xf] }
  0x8f   : > { %v567_v58 = vld [vmem:[%s3464_s28 + $0x8b8] sm:$0xf]  ;;  %v569_v59 = vld [vmem:[%s3464_s28 + $0x8c4] sm:$0xf]  ;;  %566 = vst [vmem:[%s3471_s29 + $0x2e4] sm:$0xf] %v565_v57 }
  0x90   : > { %568 = vst [vmem:[%s3471_s29 + $0x2e8] sm:$0xf] %v567_v58  ;;  %570 = vst [vmem:[%s3471_s29 + $0x2ec] sm:$0xf] %v569_v59  ;;  %v571_v60 = vld [vmem:[%s3464_s28 + $0x8d0] sm:$0xf] }
  0x91   : > { %v573_v61 = vld [vmem:[%s3464_s28 + $0x8dc] sm:$0xf]  ;;  %v575_v62 = vld [vmem:[%s3464_s28 + $0x8e8] sm:$0xf]  ;;  %572 = vst [vmem:[%s3471_s29 + $0x2f0] sm:$0xf] %v571_v60 }
  0x92   : > { %574 = vst [vmem:[%s3471_s29 + $0x2f4] sm:$0xf] %v573_v61  ;;  %576 = vst [vmem:[%s3471_s29 + $0x2f8] sm:$0xf] %v575_v62  ;;  %v577_v63 = vld [vmem:[%s3464_s28 + $0x8f4] sm:$0xf] }
  0x93   : > { %v579_v0 = vld [vmem:[%s3464_s28 + $0x900] sm:$0xf]  ;;  %v581_v1 = vld [vmem:[%s3464_s28 + $0x90c] sm:$0xf]  ;;  %578 = vst [vmem:[%s3471_s29 + $0x2fc] sm:$0xf] %v577_v63 }
  0x94   : > { %580 = vst [vmem:[%s3471_s29 + $0x300] sm:$0xf] %v579_v0  ;;  %582 = vst [vmem:[%s3471_s29 + $0x304] sm:$0xf] %v581_v1  ;;  %v583_v2 = vld [vmem:[%s3464_s28 + $0x918] sm:$0xf] }
  0x95   : > { %v585_v3 = vld [vmem:[%s3464_s28 + $0x924] sm:$0xf]  ;;  %v587_v4 = vld [vmem:[%s3464_s28 + $0x930] sm:$0xf]  ;;  %584 = vst [vmem:[%s3471_s29 + $0x308] sm:$0xf] %v583_v2 }
  0x96   : > { %586 = vst [vmem:[%s3471_s29 + $0x30c] sm:$0xf] %v585_v3  ;;  %588 = vst [vmem:[%s3471_s29 + $0x310] sm:$0xf] %v587_v4  ;;  %v589_v5 = vld [vmem:[%s3464_s28 + $0x93c] sm:$0xf] }
  0x97   : > { %v591_v6 = vld [vmem:[%s3464_s28 + $0x948] sm:$0xf]  ;;  %v593_v7 = vld [vmem:[%s3464_s28 + $0x954] sm:$0xf]  ;;  %590 = vst [vmem:[%s3471_s29 + $0x314] sm:$0xf] %v589_v5 }
  0x98   : > { %592 = vst [vmem:[%s3471_s29 + $0x318] sm:$0xf] %v591_v6  ;;  %594 = vst [vmem:[%s3471_s29 + $0x31c] sm:$0xf] %v593_v7  ;;  %v595_v8 = vld [vmem:[%s3464_s28 + $0x960] sm:$0xf] }
  0x99   : > { %v597_v9 = vld [vmem:[%s3464_s28 + $0x96c] sm:$0xf]  ;;  %v599_v10 = vld [vmem:[%s3464_s28 + $0x978] sm:$0xf]  ;;  %596 = vst [vmem:[%s3471_s29 + $0x320] sm:$0xf] %v595_v8 }
  0x9a   : > { %598 = vst [vmem:[%s3471_s29 + $0x324] sm:$0xf] %v597_v9  ;;  %600 = vst [vmem:[%s3471_s29 + $0x328] sm:$0xf] %v599_v10  ;;  %v601_v11 = vld [vmem:[%s3464_s28 + $0x984] sm:$0xf] }
  0x9b   : > { %v603_v12 = vld [vmem:[%s3464_s28 + $0x990] sm:$0xf]  ;;  %v605_v13 = vld [vmem:[%s3464_s28 + $0x99c] sm:$0xf]  ;;  %602 = vst [vmem:[%s3471_s29 + $0x32c] sm:$0xf] %v601_v11 }
  0x9c   : > { %604 = vst [vmem:[%s3471_s29 + $0x330] sm:$0xf] %v603_v12  ;;  %606 = vst [vmem:[%s3471_s29 + $0x334] sm:$0xf] %v605_v13  ;;  %v607_v14 = vld [vmem:[%s3464_s28 + $0x9a8] sm:$0xf] }
  0x9d   : > { %v609_v15 = vld [vmem:[%s3464_s28 + $0x9b4] sm:$0xf]  ;;  %v611_v16 = vld [vmem:[%s3464_s28 + $0x9c0] sm:$0xf]  ;;  %608 = vst [vmem:[%s3471_s29 + $0x338] sm:$0xf] %v607_v14 }
  0x9e   : > { %610 = vst [vmem:[%s3471_s29 + $0x33c] sm:$0xf] %v609_v15  ;;  %612 = vst [vmem:[%s3471_s29 + $0x340] sm:$0xf] %v611_v16  ;;  %v613_v17 = vld [vmem:[%s3464_s28 + $0x9cc] sm:$0xf] }
  0x9f   : > { %v615_v18 = vld [vmem:[%s3464_s28 + $0x9d8] sm:$0xf]  ;;  %v617_v19 = vld [vmem:[%s3464_s28 + $0x9e4] sm:$0xf]  ;;  %614 = vst [vmem:[%s3471_s29 + $0x344] sm:$0xf] %v613_v17 }
  0xa0   : > { %616 = vst [vmem:[%s3471_s29 + $0x348] sm:$0xf] %v615_v18  ;;  %618 = vst [vmem:[%s3471_s29 + $0x34c] sm:$0xf] %v617_v19  ;;  %v619_v20 = vld [vmem:[%s3464_s28 + $0x9f0] sm:$0xf] }
  0xa1   : > { %v621_v21 = vld [vmem:[%s3464_s28 + $0x9fc] sm:$0xf]  ;;  %v623_v22 = vld [vmem:[%s3464_s28 + $0xa08] sm:$0xf]  ;;  %620 = vst [vmem:[%s3471_s29 + $0x350] sm:$0xf] %v619_v20 }
  0xa2   : > { %622 = vst [vmem:[%s3471_s29 + $0x354] sm:$0xf] %v621_v21  ;;  %624 = vst [vmem:[%s3471_s29 + $0x358] sm:$0xf] %v623_v22  ;;  %v625_v23 = vld [vmem:[%s3464_s28 + $0xa14] sm:$0xf] }
  0xa3   : > { %v627_v24 = vld [vmem:[%s3464_s28 + $0xa20] sm:$0xf]  ;;  %v629_v25 = vld [vmem:[%s3464_s28 + $0xa2c] sm:$0xf]  ;;  %626 = vst [vmem:[%s3471_s29 + $0x35c] sm:$0xf] %v625_v23 }
  0xa4   : > { %628 = vst [vmem:[%s3471_s29 + $0x360] sm:$0xf] %v627_v24  ;;  %630 = vst [vmem:[%s3471_s29 + $0x364] sm:$0xf] %v629_v25  ;;  %v631_v26 = vld [vmem:[%s3464_s28 + $0xa38] sm:$0xf] }
  0xa5   : > { %v633_v27 = vld [vmem:[%s3464_s28 + $0xa44] sm:$0xf]  ;;  %v635_v28 = vld [vmem:[%s3464_s28 + $0xa50] sm:$0xf]  ;;  %632 = vst [vmem:[%s3471_s29 + $0x368] sm:$0xf] %v631_v26 }
  0xa6   : > { %634 = vst [vmem:[%s3471_s29 + $0x36c] sm:$0xf] %v633_v27  ;;  %636 = vst [vmem:[%s3471_s29 + $0x370] sm:$0xf] %v635_v28  ;;  %v637_v29 = vld [vmem:[%s3464_s28 + $0xa5c] sm:$0xf] }
  0xa7   : > { %v639_v30 = vld [vmem:[%s3464_s28 + $0xa68] sm:$0xf]  ;;  %v641_v31 = vld [vmem:[%s3464_s28 + $0xa74] sm:$0xf]  ;;  %638 = vst [vmem:[%s3471_s29 + $0x374] sm:$0xf] %v637_v29 }
  0xa8   : > { %640 = vst [vmem:[%s3471_s29 + $0x378] sm:$0xf] %v639_v30  ;;  %642 = vst [vmem:[%s3471_s29 + $0x37c] sm:$0xf] %v641_v31 }
  0xa9 PF: > { %p2801_p8 = scmp.ge.s32.totalorder %s3394_s16, 1  ;;  %p1119_p9 = scmp.lt.s32.totalorder %s3394_s16, 4 }
  0xab   : > { %p1120_p10 = pnand %p2801_p8, %p1119_p9 }
  0xac   : > { %s1126_s30 = sand.u32 (!%p1120_p10), 1, %s3378_s12   ;;  %p1173_p11 = scmp.lt.s32.totalorder (!%p1120_p10), %s3386_s14, 2 }
  0xad   : > { %1123 = sbr.rel (%p1120_p10) target bundleno = 526 (0x20e), region = 69  ;;  %s2802_s20 = sshll.u32 (!%p1120_p10), %s1126_s30, 5 }
  0xae   : > { %s3161_s4 = smul.u32 (!%p1120_p10), 896, %s1126_s30  ;;  %s1160_s23 = scalar_lea.vmem (!%p1120_p10), [#allocation4], %s2802_s20 }
  0xb0   : > { %s3927_s9 = scalar_lea.vmem (!%p1120_p10), [#allocation3], %s3161_s4 }
  0xb2   : > { %v3236_v32 = vld [vmem:[%s4150_s0 + $0x4] ss:$56 sps:$4 sm:$0xff]   ;;  %v3206_v38 = vld [vmem:[%s3927_s9 + $0x70] sm:$0xff]   ;;  %v3210_v42 = vld [vmem:[%s3927_s9 + $0x68] sm:$0xff]   ;;  %s2945_s12 = sshll.u32 (%p3451_p6), %s3386_s14, 3 }
  0xb3   : > { %v3239_v33 = vld [vmem:[%s4150_s0 + $0xc] ss:$56 sps:$4 sm:$0xff]   ;;  %2291 = vmatprep.mubr.bf16.mxu0 %v3236_v32  ;;  %v3202_v34 = vld [vmem:[%s3927_s9 + $0x78] sm:$0xff]   ;;  %v3207_v39 = vld [vmem:[%s3927_s9 + $0xf0] sm:$0xff]   ;;  %s2647_s25 = scalar_lea.vmem (%p3451_p6), %s4153_s3, %s2945_s12 }
  0xb4   : > { %2340 = vmatprep.mubr.bf16.mxu1 %v3239_v33  ;;  %v3203_v35 = vld [vmem:[%s3927_s9 + $0xf8] sm:$0xff]   ;;  %2948 = vmatprep.subr.bf16.mxu0 %v3202_v34  ;;  %v3208_v40 = vld [vmem:[%s3927_s9 + $0x30] sm:$0xff]   ;;  %v3211_v43 = vld [vmem:[%s3927_s9 + $0xe8] sm:$0xff]  }
  0xb5   : > { %v3204_v36 = vld [vmem:[%s3927_s9 + $0x38] sm:$0xff]   ;;  %2976 = vmatprep.subr.bf16.mxu1 %v3203_v35  ;;  %v3209_v41 = vld [vmem:[%s3927_s9 + $0xb0] sm:$0xff]   ;;  %v3212_v44 = vld [vmem:[%s3927_s9 + $0x28] sm:$0xff]  }
  0xb6   : > { %v3205_v37 = vld [vmem:[%s3927_s9 + $0xb8] sm:$0xff]   ;;  %2949 = vmatpush3.bf16.msra.mxu0 %v3204_v36  ;;  %v3213_v45 = vld [vmem:[%s3927_s9 + $0xa8] sm:$0xff]   ;;  %v3214_v46 = vld [vmem:[%s3927_s9 + $0x60] sm:$0xff]  }
  0xb7   : > { %2977 = vmatpush3.bf16.msra.mxu1 %v3205_v37  ;;  %2950 = vmatprep.subr.bf16.mxu0 %v3206_v38  ;;  %v3215_v47 = vld [vmem:[%s3927_s9 + $0xe0] sm:$0xff]   ;;  %v3218_v50 = vld [vmem:[%s3927_s9 + $0x58] sm:$0xff]   ;;  %v3222_v54 = vld [vmem:[%s3927_s9 + $0x50] sm:$0xff]  }
  0xb8   : > { %2978 = vmatprep.subr.bf16.mxu1 %v3207_v39  ;;  %v3216_v48 = vld [vmem:[%s3927_s9 + $0x20] sm:$0xff]   ;;  %v3219_v51 = vld [vmem:[%s3927_s9 + $0xd8] sm:$0xff]   ;;  %v3223_v55 = vld [vmem:[%s3927_s9 + $0xd0] sm:$0xff]  }
  0xb9   : > { %v3217_v49 = vld [vmem:[%s3927_s9 + $0xa0] sm:$0xff]   ;;  %v3220_v52 = vld [vmem:[%s3927_s9 + $0x18] sm:$0xff]   ;;  %v3224_v56 = vld [vmem:[%s3927_s9 + $0x10] sm:$0xff]  }
  0xba   : > { %2951 = vmatpush3.bf16.msra.mxu0 %v3208_v40  ;;  %v3221_v53 = vld [vmem:[%s3927_s9 + $0x98] sm:$0xff]   ;;  %v3225_v57 = vld [vmem:[%s3927_s9 + $0x90] sm:$0xff]   ;;  %v3226_v58 = vld [vmem:[%s3927_s9 + $0x48] sm:$0xff]  }
  0xbb   : > { %2979 = vmatpush3.bf16.msra.mxu1 %v3209_v41  ;;  %2952 = vmatprep.subr.bf16.mxu0 %v3210_v42  ;;  %v3227_v59 = vld [vmem:[%s3927_s9 + $0xc8] sm:$0xff]   ;;  %v3230_v62 = vld [vmem:[%s3927_s9 + $0x40] sm:$0xff]   ;;  %v3240_v5 = vld [vmem:[%s3927_s9 + $0x178] sm:$0xff]  }
  0xbc   : > { %2980 = vmatprep.subr.bf16.mxu1 %v3211_v43  ;;  %v3228_v60 = vld [vmem:[%s3927_s9 + $0x8] sm:$0xff]   ;;  %v3231_v63 = vld [vmem:[%s3927_s9 + $0xc0] sm:$0xff]   ;;  %v3241_v6 = vld [vmem:[%s3927_s9 + $0x1f8] sm:$0xff]  }
  0xbd   : > { %v3229_v61 = vld [vmem:[%s3927_s9 + $0x88] sm:$0xff]   ;;  %v3234_v0 = vld [vmem:[%s4150_s0] ss:$56 sps:$4 sm:$0xff]   ;;  %v3244_v9 = vld [vmem:[%s3927_s9 + $0x170] sm:$0xff]  }
  0xbe   : > { %2953 = vmatpush3.bf16.msra.mxu0 %v3212_v44  ;;  %v3232_v1 = vld [vmem:[%s3927_s9] sm:$0xff]   ;;  %v3260_v4 = vld [vmem:[%s4150_s0 + $0x74] ss:$56 sps:$4 sm:$0xff]   ;;  %v3242_v7 = vld [vmem:[%s3927_s9 + $0x138] sm:$0xff]  }
  0xbf   : > { %2981 = vmatpush3.bf16.msra.mxu1 %v3213_v45  ;;  %2954 = vmatprep.subr.bf16.mxu0 %v3214_v46  ;;  %v3237_v2 = vld [vmem:[%s4150_s0 + $0x8] ss:$56 sps:$4 sm:$0xff]   ;;  %v3243_v8 = vld [vmem:[%s3927_s9 + $0x1b8] sm:$0xff]   ;;  %v3245_v10 = vld [vmem:[%s3927_s9 + $0x1f0] sm:$0xff]  }
  0xc0   : > { %2982 = vmatprep.subr.bf16.mxu1 %v3215_v47  ;;  %v3233_v3 = vld [vmem:[%s3927_s9 + $0x80] sm:$0xff]   ;;  %v3246_v11 = vld [vmem:[%s3927_s9 + $0x130] sm:$0xff]   ;;  %v3248_v13 = vld [vmem:[%s3927_s9 + $0x168] sm:$0xff]  }
  0xc1   : > { %v3247_v12 = vld [vmem:[%s3927_s9 + $0x1b0] sm:$0xff]   ;;  %v3249_v14 = vld [vmem:[%s3927_s9 + $0x1e8] sm:$0xff]   ;;  %v3252_v17 = vld [vmem:[%s3927_s9 + $0x160] sm:$0xff]  }
  0xc2   : > { %2955 = vmatpush3.bf16.msra.mxu0 %v3216_v48  ;;  %v3250_v15 = vld [vmem:[%s3927_s9 + $0x128] sm:$0xff]   ;;  %v3253_v18 = vld [vmem:[%s3927_s9 + $0x1e0] sm:$0xff]   ;;  %v3256_v21 = vld [vmem:[%s3927_s9 + $0x158] sm:$0xff]  }
  0xc3   : > { %2983 = vmatpush3.bf16.msra.mxu1 %v3217_v49  ;;  %2956 = vmatprep.subr.bf16.mxu0 %v3218_v50  ;;  %v3251_v16 = vld [vmem:[%s3927_s9 + $0x1a8] sm:$0xff]   ;;  %v3254_v19 = vld [vmem:[%s3927_s9 + $0x120] sm:$0xff]   ;;  %v3257_v22 = vld [vmem:[%s3927_s9 + $0x1d8] sm:$0xff]  }
  0xc4   : > { %2984 = vmatprep.subr.bf16.mxu1 %v3219_v51  ;;  %v3255_v20 = vld [vmem:[%s3927_s9 + $0x1a0] sm:$0xff]   ;;  %v3258_v23 = vld [vmem:[%s3927_s9 + $0x118] sm:$0xff]   ;;  %v3264_v26 = vld [vmem:[%s4150_s0 + $0x70] ss:$56 sps:$4 sm:$0xff]  }
  0xc5   : > { %v3259_v24 = vld [vmem:[%s3927_s9 + $0x198] sm:$0xff]   ;;  %v3266_v28 = vld [vmem:[%s3927_s9 + $0x150] sm:$0xff]   ;;  %v3270_v32 = vld [vmem:[%s3927_s9 + $0x148] sm:$0xff]  }
  0xc6   : > { %2957 = vmatpush3.bf16.msra.mxu0 %v3220_v52  ;;  %v3262_v25 = vld [vmem:[%s4150_s0 + $0x7c] ss:$56 sps:$4 sm:$0xff]   ;;  %v3265_v27 = vld [vmem:[%s4150_s0 + $0x78] ss:$56 sps:$4 sm:$0xff]   ;;  %v3271_v33 = vld [vmem:[%s3927_s9 + $0x1c8] sm:$0xff]  }
  0xc7   : > { %2985 = vmatpush3.bf16.msra.mxu1 %v3221_v53  ;;  %2958 = vmatprep.subr.bf16.mxu0 %v3222_v54  ;;  %v3267_v29 = vld [vmem:[%s3927_s9 + $0x1d0] sm:$0xff]   ;;  %v3272_v34 = vld [vmem:[%s3927_s9 + $0x108] sm:$0xff]   ;;  %v3274_v36 = vld [vmem:[%s3927_s9 + $0x140] sm:$0xff]  }
  0xc8   : > { %2986 = vmatprep.subr.bf16.mxu1 %v3223_v55  ;;  %v3268_v30 = vld [vmem:[%s3927_s9 + $0x110] sm:$0xff]   ;;  %v3273_v35 = vld [vmem:[%s3927_s9 + $0x188] sm:$0xff]   ;;  %v3275_v37 = vld [vmem:[%s3927_s9 + $0x1c0] sm:$0xff]  }
  0xc9   : > { %v3269_v31 = vld [vmem:[%s3927_s9 + $0x190] sm:$0xff]   ;;  %v3276_v38 = vld [vmem:[%s3927_s9 + $0x100] sm:$0xff]   ;;  %v3284_v44 = vld [vmem:[%s3927_s9 + $0x278] sm:$0xff]  }
  0xca   : > { %2959 = vmatpush3.bf16.msra.mxu0 %v3224_v56  ;;  %v3277_v39 = vld [vmem:[%s3927_s9 + $0x180] sm:$0xff]   ;;  %v3278_v40 = vld [vmem:[%s4150_s0 + $0x10] ss:$56 sps:$4 sm:$0xff]   ;;  %v3280_v41 = vld [vmem:[%s4150_s0 + $0x14] ss:$56 sps:$4 sm:$0xff]  }
  0xcb   : > { %2987 = vmatpush3.bf16.msra.mxu1 %v3225_v57  ;;  %2960 = vmatprep.subr.bf16.mxu0 %v3226_v58  ;;  %v3281_v42 = vld [vmem:[%s4150_s0 + $0x18] ss:$56 sps:$4 sm:$0xff]   ;;  %v3283_v43 = vld [vmem:[%s4150_s0 + $0x1c] ss:$56 sps:$4 sm:$0xff]   ;;  %v3295_v54 = vld [vmem:[%s3927_s9 + $0x268] sm:$0xff]  }
  0xcc   : > { %2988 = vmatprep.subr.bf16.mxu1 %v3227_v59  ;;  %v3285_v45 = vld [vmem:[%s3927_s9 + $0x2f8] sm:$0xff]   ;;  %v3288_v48 = vld [vmem:[%s3927_s9 + $0x270] sm:$0xff]   ;;  %v3296_v55 = vld [vmem:[%s3927_s9 + $0x2e8] sm:$0xff]  }
  0xcd   : > { %v3286_v46 = vld [vmem:[%s3927_s9 + $0x238] sm:$0xff]   ;;  %v3289_v49 = vld [vmem:[%s3927_s9 + $0x2f0] sm:$0xff]   ;;  %v3297_v56 = vld [vmem:[%s4150_s0 + $0x8c] ss:$56 sps:$4 sm:$0xff]  }
  0xce   : > { %2961 = vmatpush3.bf16.msra.mxu0 %v3228_v60  ;;  %v3287_v47 = vld [vmem:[%s3927_s9 + $0x2b8] sm:$0xff]   ;;  %v3290_v50 = vld [vmem:[%s3927_s9 + $0x230] sm:$0xff]   ;;  %v3299_v57 = vld [vmem:[%s3927_s9 + $0x228] sm:$0xff]  }
  0xcf   : > { %2989 = vmatpush3.bf16.msra.mxu1 %v3229_v61  ;;  %2962 = vmatprep.subr.bf16.mxu0 %v3230_v62  ;;  %v3291_v51 = vld [vmem:[%s3927_s9 + $0x2b0] sm:$0xff]   ;;  %v3292_v52 = vld [vmem:[%s4150_s0 + $0x84] ss:$56 sps:$4 sm:$0xff]   ;;  %v3294_v53 = vld [vmem:[%s4150_s0 + $0x80] ss:$56 sps:$4 sm:$0xff]  }
  0xd0   : > { %2990 = vmatprep.subr.bf16.mxu1 %v3231_v63  ;;  %v3300_v58 = vld [vmem:[%s3927_s9 + $0x2a8] sm:$0xff]   ;;  %v3302_v60 = vld [vmem:[%s3927_s9 + $0x260] sm:$0xff]  }
  0xd1   : > { %v3301_v59 = vld [vmem:[%s4150_s0 + $0x88] ss:$56 sps:$4 sm:$0xff]  }
  0xd2   : > { %2963 = vmatpush3.bf16.msra.mxu0 %v3232_v1  ;;  %v3303_v61 = vld [vmem:[%s3927_s9 + $0x2e0] sm:$0xff]   ;;  %v3307_v1 = vld [vmem:[%s3927_s9 + $0x2d8] sm:$0xff]  }
  0xd3   : > { %2991 = vmatpush3.bf16.msra.mxu1 %v3233_v3  ;;  %3004 = vmatprep.subr.bf16.mxu0 %v3240_v5  ;;  %v3304_v62 = vld [vmem:[%s3927_s9 + $0x220] sm:$0xff]   ;;  %v3309_v3 = vld [vmem:[%s3927_s9 + $0x298] sm:$0xff]   ;;  %v3311_v5 = vld [vmem:[%s3927_s9 + $0x2d0] sm:$0xff]  }
  0xd4   : > { %3032 = vmatprep.subr.bf16.mxu1 %v3241_v6  ;;  %v3305_v63 = vld [vmem:[%s3927_s9 + $0x2a0] sm:$0xff]   ;;  %v3312_v6 = vld [vmem:[%s3927_s9 + $0x210] sm:$0xff]  }
  0xd5   : > { %2292 = vmatmul.mubr.bf16.vlgmr.msra.gmra.mxu0 %v3234_v0  ;;  %v3306_v0 = vld [vmem:[%s3927_s9 + $0x258] sm:$0xff]  }
  0xd6   : > { %2341 = vmatmul.mubr.bf16.vlgmr.msra.gmra.mxu1 %v3237_v2  ;;  %3005 = vmatpush3.bf16.msra.mxu0 %v3242_v7  ;;  %v3308_v2 = vld [vmem:[%s3927_s9 + $0x218] sm:$0xff]   ;;  %v3313_v7 = vld [vmem:[%s3927_s9 + $0x290] sm:$0xff]  }
  0xd7   : > { %3033 = vmatpush3.bf16.msra.mxu1 %v3243_v8  ;;  %2299 = vmatprep.mubr.bf16.mxu0 %v3260_v4  ;;  %v3310_v4 = vld [vmem:[%s3927_s9 + $0x250] sm:$0xff]   ;;  %v3314_v8 = vld [vmem:[%s3927_s9 + $0x248] sm:$0xff]  }
  0xd8   : > { %3006 = vmatprep.subr.bf16.mxu0 %v3244_v9  ;;  %3034 = vmatprep.subr.bf16.mxu1 %v3245_v10  ;;  %v3315_v9 = vld [vmem:[%s3927_s9 + $0x2c8] sm:$0xff]  }
  0xd9   : > { %2348 = vmatprep.mubr.bf16.mxu1 %v3262_v25  ;;  %v3316_v10 = vld [vmem:[%s3927_s9 + $0x208] sm:$0xff]  }
  0xda   : > { %3007 = vmatpush3.bf16.msra.mxu0 %v3246_v11  ;;  %v3317_v11 = vld [vmem:[%s3927_s9 + $0x288] sm:$0xff]  }
  0xdb   : > { %3035 = vmatpush3.bf16.msra.mxu1 %v3247_v12  ;;  %3008 = vmatprep.subr.bf16.mxu0 %v3248_v13  ;;  %v3318_v12 = vld [vmem:[%s3927_s9 + $0x240] sm:$0xff]   ;;  %v3334_v25 = vld [vmem:[%s4150_s0 + $0x90] ss:$56 sps:$4 sm:$0xff]  }
  0xdc   : > { %3036 = vmatprep.subr.bf16.mxu1 %v3249_v14  ;;  %v3319_v13 = vld [vmem:[%s3927_s9 + $0x2c0] sm:$0xff]  }
  0xdd   : > { %2300 = vmatmul.mubr.bf16.gmra.mxu0 %v3264_v26  ;;  %v3320_v14 = vld [vmem:[%s3927_s9 + $0x200] sm:$0xff]   ;;  %v3335_v26 = vld [vmem:[%s3927_s9 + $0x368] sm:$0xff]  }
  0xde   : > { %3009 = vmatpush3.bf16.msra.mxu0 %v3250_v15  ;;  %2349 = vmatmul.mubr.bf16.gmra.mxu1 %v3265_v27  ;;  %v3321_v15 = vld [vmem:[%s3927_s9 + $0x280] sm:$0xff]   ;;  %v3336_v27 = vld [vmem:[%s4150_s0 + $0x9c] ss:$56 sps:$4 sm:$0xff]  }
  0xdf   : > { %3037 = vmatpush3.bf16.msra.mxu1 %v3251_v16  ;;  %3010 = vmatprep.subr.bf16.mxu0 %v3252_v17  ;;  %v3322_v16 = vld [vmem:[%s4150_s0 + $0x20] ss:$56 sps:$4 sm:$0xff]   ;;  %v3324_v17 = vld [vmem:[%s4150_s0 + $0x24] ss:$56 sps:$4 sm:$0xff]  }
  0xe0   : > { %3038 = vmatprep.subr.bf16.mxu1 %v3253_v18  ;;  %2389 = vmatprep.mubr.bf16.mxu0 %v3280_v41  ;;  %v3325_v18 = vld [vmem:[%s4150_s0 + $0x28] ss:$56 sps:$4 sm:$0xff]  }
  0xe1   : > { %2438 = vmatprep.mubr.bf16.mxu1 %v3283_v43  ;;  %v3349_v41 = vld [vmem:[%s3927_s9 + $0x300] sm:$0xff]  }
  0xe2   : > { %3011 = vmatpush3.bf16.msra.mxu0 %v3254_v19  ;;  %v3327_v19 = vld [vmem:[%s4150_s0 + $0x2c] ss:$56 sps:$4 sm:$0xff]   ;;  %v3353_v43 = vld [vmem:[%s4150_s0 + $0xa0] ss:$56 sps:$4 sm:$0xff]  }
  0xe3   : > { %3039 = vmatpush3.bf16.msra.mxu1 %v3255_v20  ;;  %3012 = vmatprep.subr.bf16.mxu0 %v3256_v21  ;;  %v3328_v20 = vld [vmem:[%s3927_s9 + $0x378] sm:$0xff]  }
  0xe4   : > { %3040 = vmatprep.subr.bf16.mxu1 %v3257_v22  ;;  %v3329_v21 = vld [vmem:[%s3927_s9 + $0x338] sm:$0xff]   ;;  %v3330_v22 = vld [vmem:[%s3927_s9 + $0x370] sm:$0xff]  }
  0xe6   : > { %3013 = vmatpush3.bf16.msra.mxu0 %v3258_v23  ;;  %v3331_v23 = vld [vmem:[%s3927_s9 + $0x330] sm:$0xff]  }
  0xe7   : > { %3041 = vmatpush3.bf16.msra.mxu1 %v3259_v24  ;;  %3014 = vmatprep.subr.bf16.mxu0 %v3266_v28  ;;  %v3332_v24 = vld [vmem:[%s4150_s0 + $0x94] ss:$56 sps:$4 sm:$0xff]  }
  0xe8   : > { %3042 = vmatprep.subr.bf16.mxu1 %v3267_v29  ;;  %v3338_v28 = vld [vmem:[%s3927_s9 + $0x328] sm:$0xff]   ;;  %v3339_v29 = vld [vmem:[%s4150_s0 + $0x98] ss:$56 sps:$4 sm:$0xff]  }
  0xea   : > { %3015 = vmatpush3.bf16.msra.mxu0 %v3268_v30  ;;  %v3340_v30 = vld [vmem:[%s3927_s9 + $0x360] sm:$0xff]  }
  0xeb   : > { %3043 = vmatpush3.bf16.msra.mxu1 %v3269_v31  ;;  %3016 = vmatprep.subr.bf16.mxu0 %v3270_v32  ;;  %v3341_v31 = vld [vmem:[%s3927_s9 + $0x320] sm:$0xff]   ;;  %v3342_v32 = vld [vmem:[%s3927_s9 + $0x358] sm:$0xff]  }
  0xec   : > { %3044 = vmatprep.subr.bf16.mxu1 %v3271_v33  ;;  %v3343_v33 = vld [vmem:[%s3927_s9 + $0x318] sm:$0xff]  }
  0xee   : > { %3017 = vmatpush3.bf16.msra.mxu0 %v3272_v34  ;;  %v3344_v34 = vld [vmem:[%s3927_s9 + $0x350] sm:$0xff]  }
  0xef   : > { %3045 = vmatpush3.bf16.msra.mxu1 %v3273_v35  ;;  %3018 = vmatprep.subr.bf16.mxu0 %v3274_v36  ;;  %v3345_v35 = vld [vmem:[%s3927_s9 + $0x310] sm:$0xff]  }
  0xf0   : > { %3046 = vmatprep.subr.bf16.mxu1 %v3275_v37  ;;  %v3352_v36 = vld [vmem:[%s4150_s0 + $0x34] ss:$56 sps:$4 sm:$0xff]  }
  0xf1   : > { %v3346_v37 = vld [vmem:[%s3927_s9 + $0x348] sm:$0xff]  }
  0xf2   : > { %3019 = vmatpush3.bf16.msra.mxu0 %v3276_v38  ;;  %v3355_v38 = vld [vmem:[%s4150_s0 + $0xa4] ss:$56 sps:$4 sm:$0xff]  }
  0xf3   : > { %3047 = vmatpush3.bf16.msra.mxu1 %v3277_v39  ;;  %3060 = vmatprep.subr.bf16.mxu0 %v3284_v44  ;;  %v3347_v39 = vld [vmem:[%s3927_s9 + $0x308] sm:$0xff]  }
  0xf4   : > { %3088 = vmatprep.subr.bf16.mxu1 %v3285_v45 }
  0xf5   : > { %2390 = vmatmul.mubr.bf16.vlgmr.msra.gmra.mxu0 %v3278_v40  ;;  %v3348_v40 = vld [vmem:[%s3927_s9 + $0x340] sm:$0xff]   ;;  %s1174_s9 = scalar_select %p1173_p11, %s3386_s14, 2 }
  0xf6   : > { %2439 = vmatmul.mubr.bf16.vlgmr.msra.gmra.mxu1 %v3281_v42  ;;  %3061 = vmatpush3.bf16.msra.mxu0 %v3286_v46  ;;  %v3350_v42 = vld [vmem:[%s4150_s0 + $0x30] ss:$56 sps:$4 sm:$0xff]  }
  0xf7   : > { %3089 = vmatpush3.bf16.msra.mxu1 %v3287_v47  ;;  %3062 = vmatprep.subr.bf16.mxu0 %v3288_v48  ;;  %s1175_s19 = scalar_lea.vmem %s4152_s2, %s1174_s9 }
  0xf8   : > { %3090 = vmatprep.subr.bf16.mxu1 %v3289_v49  ;;  %2397 = vmatprep.mubr.bf16.mxu0 %v3292_v52 }
  0xf9   : > { %2446 = vmatprep.mubr.bf16.mxu1 %v3297_v56 }
  0xfa   : > { %3063 = vmatpush3.bf16.msra.mxu0 %v3290_v50 }
  0xfb   : > { %3091 = vmatpush3.bf16.msra.mxu1 %v3291_v51  ;;  %3064 = vmatprep.subr.bf16.mxu0 %v3295_v54 }
  0xfc   : > { %3092 = vmatprep.subr.bf16.mxu1 %v3296_v55 }
  0xfd   : > { %2398 = vmatmul.mubr.bf16.gmra.mxu0 %v3294_v53 }
  0xfe   : > { %3065 = vmatpush3.bf16.msra.mxu0 %v3299_v57  ;;  %2447 = vmatmul.mubr.bf16.gmra.mxu1 %v3301_v59 }
  0xff   : > { %3093 = vmatpush3.bf16.msra.mxu1 %v3300_v58  ;;  %3066 = vmatprep.subr.bf16.mxu0 %v3302_v60 }
 0x100   : > { %3094 = vmatprep.subr.bf16.mxu1 %v3303_v61  ;;  %2487 = vmatprep.mubr.bf16.mxu0 %v3324_v17 }
 0x101   : > { %2536 = vmatprep.mubr.bf16.mxu1 %v3327_v19 }
 0x102   : > { %3067 = vmatpush3.bf16.msra.mxu0 %v3304_v62 }
 0x103   : > { %3095 = vmatpush3.bf16.msra.mxu1 %v3305_v63  ;;  %3068 = vmatprep.subr.bf16.mxu0 %v3306_v0 }
 0x104   : > { %3096 = vmatprep.subr.bf16.mxu1 %v3307_v1 }
 0x106   : > { %3069 = vmatpush3.bf16.msra.mxu0 %v3308_v2 }
 0x107   : > { %3097 = vmatpush3.bf16.msra.mxu1 %v3309_v3  ;;  %3070 = vmatprep.subr.bf16.mxu0 %v3310_v4 }
 0x108   : > { %3098 = vmatprep.subr.bf16.mxu1 %v3311_v5 }
 0x10a   : > { %3071 = vmatpush3.bf16.msra.mxu0 %v3312_v6 }
 0x10b   : > { %3099 = vmatpush3.bf16.msra.mxu1 %v3313_v7  ;;  %3072 = vmatprep.subr.bf16.mxu0 %v3314_v8 }
 0x10c   : > { %3100 = vmatprep.subr.bf16.mxu1 %v3315_v9 }
 0x10e   : > { %3073 = vmatpush3.bf16.msra.mxu0 %v3316_v10 }
 0x10f   : > { %3101 = vmatpush3.bf16.msra.mxu1 %v3317_v11  ;;  %3074 = vmatprep.subr.bf16.mxu0 %v3318_v12 }
 0x110   : > { %3102 = vmatprep.subr.bf16.mxu1 %v3319_v13 }
 0x112   : > { %3075 = vmatpush3.bf16.msra.mxu0 %v3320_v14 }
 0x113   : > { %3103 = vmatpush3.bf16.msra.mxu1 %v3321_v15  ;;  %3116 = vmatprep.subr.bf16.mxu0 %v3328_v20 }
 0x114   : > { %3144 = vmatprep.subr.bf16.mxu1 %v3328_v20 }
 0x115   : > { %2488 = vmatmul.mubr.bf16.vlgmr.msra.gmra.mxu0 %v3322_v16 }
 0x116   : > { %2537 = vmatmul.mubr.bf16.vlgmr.msra.gmra.mxu1 %v3325_v18  ;;  %3117 = vmatpush3.bf16.msra.mxu0 %v3329_v21 }
 0x117   : > { %3152 = vmatpush3.bf16.msra.mxu1 %v3329_v21  ;;  %3118 = vmatprep.subr.bf16.mxu0 %v3330_v22 }
 0x118   : > { %3145 = vmatprep.subr.bf16.mxu1 %v3330_v22  ;;  %2495 = vmatprep.mubr.bf16.mxu0 %v3332_v24 }
 0x119   : > { %2544 = vmatprep.mubr.bf16.mxu1 %v3336_v27 }
 0x11a   : > { %3119 = vmatpush3.bf16.msra.mxu0 %v3331_v23 }
 0x11b   : > { %3153 = vmatpush3.bf16.msra.mxu1 %v3331_v23  ;;  %3120 = vmatprep.subr.bf16.mxu0 %v3335_v26 }
 0x11c   : > { %3146 = vmatprep.subr.bf16.mxu1 %v3335_v26 }
 0x11d   : > { %2496 = vmatmul.mubr.bf16.gmra.mxu0 %v3334_v25 }
 0x11e   : > { %3121 = vmatpush3.bf16.msra.mxu0 %v3338_v28  ;;  %2545 = vmatmul.mubr.bf16.gmra.mxu1 %v3339_v29 }
 0x11f   : > { %3154 = vmatpush3.bf16.msra.mxu1 %v3338_v28  ;;  %3122 = vmatprep.subr.bf16.mxu0 %v3340_v30 }
 0x120   : > { %3147 = vmatprep.subr.bf16.mxu1 %v3340_v30  ;;  %2585 = vmatprep.mubr.bf16.mxu0 %v3352_v36 }
 0x121   : > { %2593 = vmatprep.mubr.bf16.mxu1 %v3355_v38 }
 0x122   : > { %3123 = vmatpush3.bf16.msra.mxu0 %v3341_v31 }
 0x123   : > { %3155 = vmatpush3.bf16.msra.mxu1 %v3341_v31  ;;  %3124 = vmatprep.subr.bf16.mxu0 %v3342_v32 }
 0x124   : > { %3148 = vmatprep.subr.bf16.mxu1 %v3342_v32 }
 0x126   : > { %3125 = vmatpush3.bf16.msra.mxu0 %v3343_v33 }
 0x127   : > { %3156 = vmatpush3.bf16.msra.mxu1 %v3343_v33  ;;  %3126 = vmatprep.subr.bf16.mxu0 %v3344_v34 }
 0x128   : > { %3149 = vmatprep.subr.bf16.mxu1 %v3344_v34 }
 0x12a   : > { %3127 = vmatpush3.bf16.msra.mxu0 %v3345_v35 }
 0x12b   : > { %3157 = vmatpush3.bf16.msra.mxu1 %v3345_v35  ;;  %3128 = vmatprep.subr.bf16.mxu0 %v3346_v37 }
 0x12c   : > { %3150 = vmatprep.subr.bf16.mxu1 %v3346_v37 }
 0x12e   : > { %3129 = vmatpush3.bf16.msra.mxu0 %v3347_v39 }
 0x12f   : > { %3158 = vmatpush3.bf16.msra.mxu1 %v3347_v39  ;;  %3130 = vmatprep.subr.bf16.mxu0 %v3348_v40 }
 0x130   : > { %3151 = vmatprep.subr.bf16.mxu1 %v3348_v40 }
 0x132   : > { %3131 = vmatpush3.bf16.msra.mxu0 %v3349_v41 }
 0x133   : > { %3159 = vmatpush3.bf16.msra.mxu1 %v3349_v41 }
 0x135   : > { %2586 = vmatmul.mubr.bf16.vlgmr.msra.gmra.mxu0 %v3350_v42 }
 0x136   : > { %2594 = vmatmul.mubr.bf16.vlgmr.msra.gmra.mxu1 %v3353_v43 }
 0x195   : > { %v2964_v44 = vpop.f32.mrf.mxu0 }
 0x196   : > { %v2992_v46 = vpop.f32.mrf.mxu1 }
 0x197   : > { %v2965_v45 = vpop.f32.mrf.mxu0 }
 0x198   : > { %v2993_v48 = vpop.f32.mrf.mxu1  ;;  %v2966_v21 = vadd.f32 %v2965_v45, %v2964_v44 }
 0x199   : > { %v2967_v47 = vpop.f32.mrf.mxu0  ;;  %v2994_v22 = vadd.f32 %v2993_v48, %v2992_v46 }
 0x19a   : > { %v2995_v50 = vpop.f32.mrf.mxu1 }
 0x19b   : > { %v2968_v49 = vpop.f32.mrf.mxu0  ;;  %v2343_v29 = vadd.f32 %v2994_v22, %v2966_v21 }
 0x19c   : > { %v2996_v52 = vpop.f32.mrf.mxu1  ;;  %v2969_v30 = vadd.f32 %v2968_v49, %v2967_v47 }
 0x19d   : > { %v2970_v51 = vpop.f32.mrf.mxu0  ;;  %v2997_v31 = vadd.f32 %v2996_v52, %v2995_v50 }
 0x19e   : > { %v2998_v54 = vpop.f32.mrf.mxu1 }
 0x19f   : > { %v2971_v53 = vpop.f32.mrf.mxu0  ;;  %v2346_v42 = vadd.f32 %v2997_v31, %v2969_v30 }
 0x1a0   : > { %v2999_v56 = vpop.f32.mrf.mxu1  ;;  %v2972_v24 = vadd.f32 %v2971_v53, %v2970_v51 }
 0x1a1   : > { %v2973_v55 = vpop.f32.mrf.mxu0  ;;  %v3000_v25 = vadd.f32 %v2999_v56, %v2998_v54 }
 0x1a2   : > { %v3001_v58 = vpop.f32.mrf.mxu1 }
 0x1a3   : > { %v2974_v57 = vpop.f32.mrf.mxu0  ;;  %v2351_v33 = vadd.f32 %v3000_v25, %v2972_v24 }
 0x1a4   : > { %v3002_v60 = vpop.f32.mrf.mxu1  ;;  %v2975_v34 = vadd.f32 %v2974_v57, %v2973_v55 }
 0x1a5   : > { %v3003_v35 = vadd.f32 %v3002_v60, %v3001_v58 }
 0x1a7   : > { %v2354_v46 = vadd.f32 %v3003_v35, %v2975_v34 }
 0x1b5   : > { %v3020_v59 = vpop.f32.mrf.mxu0 }
 0x1b6   : > { %v3048_v62 = vpop.f32.mrf.mxu1 }
 0x1b7   : > { %v3021_v61 = vpop.f32.mrf.mxu0 }
 0x1b8   : > { %v3049_v0 = vpop.f32.mrf.mxu1  ;;  %v3022_v26 = vadd.f32 %v3021_v61, %v3020_v59 }
 0x1b9   : > { %v3023_v63 = vpop.f32.mrf.mxu0  ;;  %v3050_v43 = vadd.f32 %v3049_v0, %v3048_v62 }
 0x1ba   : > { %v3051_v2 = vpop.f32.mrf.mxu1  ;;  %v2392_v36 = vadd.f32 %v3022_v26, %v2343_v29 }
 0x1bb   : > { %v3024_v1 = vpop.f32.mrf.mxu0 }
 0x1bc   : > { %v3052_v4 = vpop.f32.mrf.mxu1  ;;  %v3025_v37 = vadd.f32 %v3024_v1, %v3023_v63  ;;  %v2441_v47 = vadd.f32 %v3050_v43, %v2392_v36 }
 0x1bd   : > { %v3026_v3 = vpop.f32.mrf.mxu0  ;;  %v3053_v54 = vadd.f32 %v3052_v4, %v3051_v2 }
 0x1be   : > { %v3054_v6 = vpop.f32.mrf.mxu1  ;;  %v2395_v49 = vadd.f32 %v3025_v37, %v2346_v42 }
 0x1bf   : > { %v3027_v5 = vpop.f32.mrf.mxu0 }
 0x1c0   : > { %v3055_v8 = vpop.f32.mrf.mxu1  ;;  %v3028_v28 = vadd.f32 %v3027_v5, %v3026_v3  ;;  %v2444_v62 = vadd.f32 %v3053_v54, %v2395_v49 }
 0x1c1   : > { %v3029_v7 = vpop.f32.mrf.mxu0  ;;  %v3056_v40 = vadd.f32 %v3055_v8, %v3054_v6 }
 0x1c2   : > { %v3057_v10 = vpop.f32.mrf.mxu1  ;;  %v2400_v39 = vadd.f32 %v3028_v28, %v2351_v33 }
 0x1c3   : > { %v3030_v9 = vpop.f32.mrf.mxu0 }
 0x1c4   : > { %v3058_v12 = vpop.f32.mrf.mxu1  ;;  %v3031_v41 = vadd.f32 %v3030_v9, %v3029_v7  ;;  %v2449_v51 = vadd.f32 %v3056_v40, %v2400_v39 }
 0x1c5   : > { %v3059_v53 = vadd.f32 %v3058_v12, %v3057_v10  ;;  %v2943_v10 = vld [vmem:[%s1175_s19] ss:$0 sm:$0xff] }
 0x1c6   : > { %v2403_v52 = vadd.f32 %v3031_v41, %v2354_v46 }
 0x1c8   : > { %v2452_v1 = vadd.f32 %v3059_v53, %v2403_v52 }
 0x1d5   : > { %v3076_v11 = vpop.f32.mrf.mxu0 }
 0x1d6   : > { %v3104_v13 = vpop.f32.mrf.mxu1 }
 0x1d7   : > { %v3077_v14 = vpop.f32.mrf.mxu0 }
 0x1d8   : > { %v3105_v15 = vpop.f32.mrf.mxu1  ;;  %v3078_v44 = vadd.f32 %v3077_v14, %v3076_v11 }
 0x1d9   : > { %v3079_v16 = vpop.f32.mrf.mxu0  ;;  %v3106_v63 = vadd.f32 %v3105_v15, %v3104_v13 }
 0x1da   : > { %v4119_v17 = vpop.f32.mrf.mxu1  ;;  %v2490_v55 = vadd.f32 %v3078_v44, %v2441_v47 }
 0x1db   : > { %v3080_v18 = vpop.f32.mrf.mxu0 }
 0x1dc   : > { %v3108_v19 = vpop.f32.mrf.mxu1  ;;  %v3081_v56 = vadd.f32 %v3080_v18, %v3079_v16  ;;  %v2539_v5 = vadd.f32 %v3106_v63, %v2490_v55 }
 0x1dd   : > { %v3082_v20 = vpop.f32.mrf.mxu0  ;;  %v3109_v13 = vadd.f32 %v3108_v19, %v4119_v17 }
 0x1de   : > { %v3110_v23 = vpop.f32.mrf.mxu1  ;;  %v2493_v6 = vadd.f32 %v3081_v56, %v2444_v62 }
 0x1df   : > { %v3083_v27 = vpop.f32.mrf.mxu0 }
 0x1e0   : > { %v3111_v32 = vpop.f32.mrf.mxu1  ;;  %v3084_v48 = vadd.f32 %v3083_v27, %v3082_v20  ;;  %v2542_v20 = vadd.f32 %v3109_v13, %v2493_v6 }
 0x1e1   : > { %v3085_v38 = vpop.f32.mrf.mxu0  ;;  %v3112_v59 = vadd.f32 %v3111_v32, %v3110_v23 }
 0x1e2   : > { %v3113_v45 = vpop.f32.mrf.mxu1  ;;  %v2498_v58 = vadd.f32 %v3084_v48, %v2449_v51 }
 0x1e3   : > { %v3086_v50 = vpop.f32.mrf.mxu0 }
 0x1e4   : > { %v3114_v57 = vpop.f32.mrf.mxu1  ;;  %v3087_v60 = vadd.f32 %v3086_v50, %v3085_v38  ;;  %v2547_v7 = vadd.f32 %v3112_v59, %v2498_v58 }
 0x1e5   : > { %v3115_v9 = vadd.f32 %v3114_v57, %v3113_v45 }
 0x1e6   : > { %v2501_v8 = vadd.f32 %v3087_v60, %v2452_v1 }
 0x1e8   : > { %v2550_v24 = vadd.f32 %v3115_v9, %v2501_v8 }
 0x1f5   : > { %v3132_v61 = vpop.f32.mrf.mxu0 }
 0x1f6   : > { %v3138_v0 = vpop.f32.mrf.mxu1 }
 0x1f7   : > { %v3133_v3 = vpop.f32.mrf.mxu0 }
 0x1f8   : > { %v3134_v2 = vadd.f32 %v3133_v3, %v3132_v61  ;;  %v3139_v4 = vpop.f32.mrf.mxu1 }
 0x1f9   : > { %v3140_v11 = vadd.f32 %v3139_v4, %v3138_v0  ;;  %v3135_v12 = vpop.f32.mrf.mxu0 }
 0x1fa   : > { %v2588_v14 = vadd.f32 %v3134_v2, %v2539_v5  ;;  %v3141_v15 = vpop.f32.mrf.mxu1 }
 0x1fb   : > { %v2596_v16 = vadd.f32 %v3140_v11, %v2547_v7  ;;  %v3136_v18 = vpop.f32.mrf.mxu0 }
 0x1fc   : > { %v2624_v21 = vadd.f32 %v2943_v10, %v2588_v14  ;;  %v3137_v22 = vadd.f32 %v3136_v18, %v3135_v12  ;;  %v3142_v23 = vpop.f32.mrf.mxu1 }
 0x1fd   : > { %v2626_v25 = vadd.f32 %v2943_v10, %v2596_v16  ;;  %v3143_v26 = vadd.f32 %v3142_v23, %v3141_v15 }
 0x1fe   : > { %v2628_v27 = vmax.f32 %v2624_v21, 0.0  ;;  %v2591_v28 = vadd.f32 %v3137_v22, %v2542_v20 }
 0x1ff   : > { %v2630_v29 = vmax.f32 %v2626_v25, 0.0  ;;  %v2599_v30 = vadd.f32 %v3143_v26, %v2550_v24 }
 0x200   : > { %2632 = vst [vmem:[%s1160_s23] sm:$0xff] %v2628_v27  ;;  %v2625_v17 = vadd.f32 %v2943_v10, %v2591_v28 }
 0x201   : > { %2634 = vst [vmem:[%s1160_s23 + $0x10] sm:$0xff] %v2630_v29  ;;  %v2627_v19 = vadd.f32 %v2943_v10, %v2599_v30  ;;  %2642 = sbr.rel (!%p3451_p6) target bundleno = 526 (0x20e), region = 85 }
 0x202   : > { %v2629_v31 = vmax.f32 %v2625_v17, 0.0 }
 0x203   : > { %v2631_v32 = vmax.f32 %v2627_v19, 0.0 }
 0x204   : > { %2633 = vst [vmem:[%s1160_s23 + $0x8] sm:$0xff] %v2629_v31 }
 0x205   : > { %2635 = vst [vmem:[%s1160_s23 + $0x18] sm:$0xff] %v2631_v32 }
 0x207   : > { %v2682_v33 = vld [vmem:[%s1160_s23] sm:$0xff] }
 0x208   : > { %v2686_v35 = vld [vmem:[%s1160_s23 + $0x10] sm:$0xff]  ;;  %2683 = vst [vmem:[%s2647_s25] sm:$0xff] %v2682_v33 }
 0x209   : > { %2687 = vst [vmem:[%s2647_s25 + $0x30] sm:$0xff] %v2686_v35 }
 0x20b   : > { %v2684_v34 = vld [vmem:[%s1160_s23 + $0x8] sm:$0xff] }
 0x20c   : > { %v2688_v36 = vld [vmem:[%s1160_s23 + $0x18] sm:$0xff]  ;;  %2685 = vst [vmem:[%s2647_s25 + $0x18] sm:$0xff] %v2684_v34 }
 0x20d   : > { %2689 = vst [vmem:[%s2647_s25 + $0x48] sm:$0xff] %v2688_v36 }
 0x20e PF: > { %s13_s16 = sadd.s32 1, %s3394_s16   ;;  %s4155_s12 = smov %s3382_s13 }
 0x20f   : > { %p10_p12 = scmp.ge.s32.totalorder %s13_s16, 5   ;;  %s4156_s13 = smov %s3456_s22 }
 0x210   : > { %s4157_s14 = smov %s3390_s15  ;;  %s4158_s15 = smov %s4160_s17 }
 0x211   :  { %12 = sbr.rel (!%p10_p12) target bundleno = 3 (0x3), region = 161 }

// kernel: inception_d_forward.10
= control target key start
LH: loop header
LB: loop body
LE: loop exit
PB: predicated region body
PF: predicated region fallthrough
CT: control target
= control target key end

     0   :  { %s3463_s1 = inlined_call_operand.vmem [shape: bf16[1792,256], index: 1, kind: input, shape index: {}]   ;;  %s3464_s0 = inlined_call_operand.vmem [shape: bf16[32,1792], index: 0, kind: input, shape index: {}]   ;;  %s3465_s2 = inlined_call_operand.vmem [shape: f32[1,256], index: 2, kind: input, shape index: {}]   ;;  %s3466_s3 = inlined_call_operand.vmem [shape: f32[32,256], index: 3, kind: output, shape index: {}]  }
   0x1   :  { %v2276_v0 = vld [vmem:[%s3463_s1 + $0x74] ss:$8 sps:$4 sm:$0xff]   ;;  %v2280_v2 = vld [vmem:[%s3463_s1 + $0x70] ss:$8 sps:$4 sm:$0xff]   ;;  %v2282_v4 = vld [vmem:[%s3463_s1 + $0x64] ss:$8 sps:$4 sm:$0xff]  }
   0x2   :  { %v2278_v1 = vld [vmem:[%s3463_s1 + $0x174] ss:$8 sps:$4 sm:$0xff]   ;;  %1552 = vmatprep.subr.bf16.mxu0 %v2276_v0  ;;  %v2281_v3 = vld [vmem:[%s3463_s1 + $0x170] ss:$8 sps:$4 sm:$0xff]   ;;  %v2284_v5 = vld [vmem:[%s3463_s1 + $0x164] ss:$8 sps:$4 sm:$0xff]  }
   0x3   :  { %1605 = vmatprep.subr.bf16.mxu1 %v2278_v1  ;;  %1553 = vmatpush1.bf16.msra.mxu0 %v2280_v2  ;;  %v2286_v6 = vld [vmem:[%s3463_s1 + $0x60] ss:$8 sps:$4 sm:$0xff]   ;;  %v2288_v8 = vld [vmem:[%s3463_s1 + $0x54] ss:$8 sps:$4 sm:$0xff]   ;;  %v2292_v10 = vld [vmem:[%s3463_s1 + $0x50] ss:$8 sps:$4 sm:$0xff]  }
   0x4   :  { %1606 = vmatpush1.bf16.msra.mxu1 %v2281_v3  ;;  %1554 = vmatprep.subr.bf16.mxu0 %v2282_v4  ;;  %v2287_v7 = vld [vmem:[%s3463_s1 + $0x160] ss:$8 sps:$4 sm:$0xff]   ;;  %v2290_v9 = vld [vmem:[%s3463_s1 + $0x154] ss:$8 sps:$4 sm:$0xff]   ;;  %v2293_v11 = vld [vmem:[%s3463_s1 + $0x150] ss:$8 sps:$4 sm:$0xff]  }
   0x5   :  { %1607 = vmatprep.subr.bf16.mxu1 %v2284_v5  ;;  %v2294_v12 = vld [vmem:[%s3463_s1 + $0x44] ss:$8 sps:$4 sm:$0xff]   ;;  %v2298_v14 = vld [vmem:[%s3463_s1 + $0x40] ss:$8 sps:$4 sm:$0xff]   ;;  %v2300_v16 = vld [vmem:[%s3463_s1 + $0x34] ss:$8 sps:$4 sm:$0xff]  }
   0x6   :  { %v2296_v13 = vld [vmem:[%s3463_s1 + $0x144] ss:$8 sps:$4 sm:$0xff]   ;;  %v2299_v15 = vld [vmem:[%s3463_s1 + $0x140] ss:$8 sps:$4 sm:$0xff]   ;;  %v2302_v17 = vld [vmem:[%s3463_s1 + $0x134] ss:$8 sps:$4 sm:$0xff]  }
   0x7   :  { %1555 = vmatpush1.bf16.msra.mxu0 %v2286_v6  ;;  %v2304_v18 = vld [vmem:[%s3463_s1 + $0x30] ss:$8 sps:$4 sm:$0xff]   ;;  %v2306_v20 = vld [vmem:[%s3463_s1 + $0x24] ss:$8 sps:$4 sm:$0xff]   ;;  %v2310_v22 = vld [vmem:[%s3463_s1 + $0x20] ss:$8 sps:$4 sm:$0xff]  }
   0x8   :  { %1608 = vmatpush1.bf16.msra.mxu1 %v2287_v7  ;;  %1556 = vmatprep.subr.bf16.mxu0 %v2288_v8  ;;  %v2305_v19 = vld [vmem:[%s3463_s1 + $0x130] ss:$8 sps:$4 sm:$0xff]   ;;  %v2308_v21 = vld [vmem:[%s3463_s1 + $0x124] ss:$8 sps:$4 sm:$0xff]   ;;  %v2311_v23 = vld [vmem:[%s3463_s1 + $0x120] ss:$8 sps:$4 sm:$0xff]  }
   0x9   :  { %1609 = vmatprep.subr.bf16.mxu1 %v2290_v9  ;;  %v2312_v24 = vld [vmem:[%s3463_s1 + $0x14] ss:$8 sps:$4 sm:$0xff]   ;;  %v2316_v26 = vld [vmem:[%s3463_s1 + $0x10] ss:$8 sps:$4 sm:$0xff]   ;;  %v2318_v28 = vld [vmem:[%s3463_s1 + $0x4] ss:$8 sps:$4 sm:$0xff]  }
   0xa   :  { %v2314_v25 = vld [vmem:[%s3463_s1 + $0x114] ss:$8 sps:$4 sm:$0xff]   ;;  %v2317_v27 = vld [vmem:[%s3463_s1 + $0x110] ss:$8 sps:$4 sm:$0xff]   ;;  %v2320_v29 = vld [vmem:[%s3463_s1 + $0x104] ss:$8 sps:$4 sm:$0xff]  }
   0xb   :  { %1557 = vmatpush1.bf16.msra.mxu0 %v2292_v10  ;;  %v2322_v30 = vld [vmem:[%s3463_s1] ss:$8 sps:$4 sm:$0xff]   ;;  %v2324_v32 = vld [vmem:[%s3463_s1 + $0xf4] ss:$8 sps:$4 sm:$0xff]   ;;  %v2328_v34 = vld [vmem:[%s3463_s1 + $0xf0] ss:$8 sps:$4 sm:$0xff]  }
   0xc   :  { %1610 = vmatpush1.bf16.msra.mxu1 %v2293_v11  ;;  %1558 = vmatprep.subr.bf16.mxu0 %v2294_v12  ;;  %v2323_v31 = vld [vmem:[%s3463_s1 + $0x100] ss:$8 sps:$4 sm:$0xff]   ;;  %v2326_v33 = vld [vmem:[%s3463_s1 + $0x1f4] ss:$8 sps:$4 sm:$0xff]   ;;  %v2329_v35 = vld [vmem:[%s3463_s1 + $0x1f0] ss:$8 sps:$4 sm:$0xff]  }
   0xd   :  { %1611 = vmatprep.subr.bf16.mxu1 %v2296_v13  ;;  %v2330_v36 = vld [vmem:[%s3463_s1 + $0xe4] ss:$8 sps:$4 sm:$0xff]   ;;  %v2334_v38 = vld [vmem:[%s3463_s1 + $0xe0] ss:$8 sps:$4 sm:$0xff]   ;;  %v2336_v40 = vld [vmem:[%s3463_s1 + $0xd4] ss:$8 sps:$4 sm:$0xff]  }
   0xe   :  { %v2332_v37 = vld [vmem:[%s3463_s1 + $0x1e4] ss:$8 sps:$4 sm:$0xff]   ;;  %v2335_v39 = vld [vmem:[%s3463_s1 + $0x1e0] ss:$8 sps:$4 sm:$0xff]   ;;  %v2338_v41 = vld [vmem:[%s3463_s1 + $0x1d4] ss:$8 sps:$4 sm:$0xff]  }
   0xf   :  { %1559 = vmatpush1.bf16.msra.mxu0 %v2298_v14  ;;  %v2340_v42 = vld [vmem:[%s3463_s1 + $0xd0] ss:$8 sps:$4 sm:$0xff]   ;;  %v2342_v44 = vld [vmem:[%s3463_s1 + $0xc4] ss:$8 sps:$4 sm:$0xff]   ;;  %v2346_v46 = vld [vmem:[%s3463_s1 + $0xc0] ss:$8 sps:$4 sm:$0xff]  }
  0x10   :  { %1612 = vmatpush1.bf16.msra.mxu1 %v2299_v15  ;;  %1560 = vmatprep.subr.bf16.mxu0 %v2300_v16  ;;  %v2341_v43 = vld [vmem:[%s3463_s1 + $0x1d0] ss:$8 sps:$4 sm:$0xff]   ;;  %v2344_v45 = vld [vmem:[%s3463_s1 + $0x1c4] ss:$8 sps:$4 sm:$0xff]   ;;  %v2347_v47 = vld [vmem:[%s3463_s1 + $0x1c0] ss:$8 sps:$4 sm:$0xff]  }
  0x11   :  { %1613 = vmatprep.subr.bf16.mxu1 %v2302_v17  ;;  %v2348_v48 = vld [vmem:[%s3463_s1 + $0xb4] ss:$8 sps:$4 sm:$0xff]   ;;  %v2377_v51 = vld [vmem:[%s3464_s0 + $0xc] ss:$56 sps:$4 sm:$0xff]   ;;  %v2352_v52 = vld [vmem:[%s3463_s1 + $0xb0] ss:$8 sps:$4 sm:$0xff]  }
  0x12   :  { %v2374_v49 = vld [vmem:[%s3464_s0 + $0x4] ss:$56 sps:$4 sm:$0xff]   ;;  %v2353_v53 = vld [vmem:[%s3463_s1 + $0x1b0] ss:$8 sps:$4 sm:$0xff]   ;;  %1637 = vmatprep.mubr.bf16.mxu1 %v2377_v51  ;;  %v2358_v56 = vld [vmem:[%s3463_s1 + $0xa0] ss:$8 sps:$4 sm:$0xff]  }
  0x13   :  { %1561 = vmatpush1.bf16.msra.mxu0 %v2304_v18  ;;  %v2350_v50 = vld [vmem:[%s3463_s1 + $0x1b4] ss:$8 sps:$4 sm:$0xff]   ;;  %1584 = vmatprep.mubr.bf16.mxu0 %v2374_v49  ;;  %v2354_v54 = vld [vmem:[%s3463_s1 + $0xa4] ss:$8 sps:$4 sm:$0xff]   ;;  %v2359_v57 = vld [vmem:[%s3463_s1 + $0x1a0] ss:$8 sps:$4 sm:$0xff]  }
  0x14   :  { %1614 = vmatpush1.bf16.msra.mxu1 %v2305_v19  ;;  %1562 = vmatprep.subr.bf16.mxu0 %v2306_v20  ;;  %v2356_v55 = vld [vmem:[%s3463_s1 + $0x1a4] ss:$8 sps:$4 sm:$0xff]   ;;  %v2360_v58 = vld [vmem:[%s3463_s1 + $0x94] ss:$8 sps:$4 sm:$0xff]   ;;  %v2364_v60 = vld [vmem:[%s3463_s1 + $0x90] ss:$8 sps:$4 sm:$0xff]  }
  0x15   :  { %1615 = vmatprep.subr.bf16.mxu1 %v2308_v21  ;;  %v2362_v59 = vld [vmem:[%s3463_s1 + $0x194] ss:$8 sps:$4 sm:$0xff]   ;;  %v2365_v61 = vld [vmem:[%s3463_s1 + $0x190] ss:$8 sps:$4 sm:$0xff]   ;;  %v2366_v62 = vld [vmem:[%s3463_s1 + $0x84] ss:$8 sps:$4 sm:$0xff]  }
  0x16   :  { %v2368_v63 = vld [vmem:[%s3463_s1 + $0x184] ss:$8 sps:$4 sm:$0xff]   ;;  %v2370_v0 = vld [vmem:[%s3463_s1 + $0x80] ss:$8 sps:$4 sm:$0xff]   ;;  %v2380_v2 = vld [vmem:[%s3463_s1 + $0x274] ss:$8 sps:$4 sm:$0xff]  }
  0x17   :  { %1563 = vmatpush1.bf16.msra.mxu0 %v2310_v22  ;;  %v2371_v1 = vld [vmem:[%s3463_s1 + $0x180] ss:$8 sps:$4 sm:$0xff]   ;;  %v2383_v3 = vld [vmem:[%s3463_s1 + $0x374] ss:$8 sps:$4 sm:$0xff]   ;;  %v2378_v6 = vld [vmem:[%s3463_s1 + $0x270] ss:$8 sps:$4 sm:$0xff]  }
  0x18   :  { %1616 = vmatpush1.bf16.msra.mxu1 %v2311_v23  ;;  %1564 = vmatprep.subr.bf16.mxu0 %v2312_v24  ;;  %v2372_v4 = vld [vmem:[%s3464_s0] ss:$56 sps:$4 sm:$0xff]   ;;  %v2386_v8 = vld [vmem:[%s3463_s1 + $0x264] ss:$8 sps:$4 sm:$0xff]   ;;  %v2392_v12 = vld [vmem:[%s3463_s1 + $0x254] ss:$8 sps:$4 sm:$0xff]  }
  0x19   :  { %1617 = vmatprep.subr.bf16.mxu1 %v2314_v25  ;;  %v2375_v5 = vld [vmem:[%s3464_s0 + $0x8] ss:$56 sps:$4 sm:$0xff]   ;;  %v2381_v7 = vld [vmem:[%s3463_s1 + $0x370] ss:$8 sps:$4 sm:$0xff]   ;;  %v2389_v9 = vld [vmem:[%s3463_s1 + $0x364] ss:$8 sps:$4 sm:$0xff]  }
  0x1a   :  { %v2384_v10 = vld [vmem:[%s3463_s1 + $0x260] ss:$8 sps:$4 sm:$0xff]   ;;  %v2395_v13 = vld [vmem:[%s3463_s1 + $0x354] ss:$8 sps:$4 sm:$0xff]   ;;  %v2390_v14 = vld [vmem:[%s3463_s1 + $0x250] ss:$8 sps:$4 sm:$0xff]  }
  0x1b   :  { %1565 = vmatpush1.bf16.msra.mxu0 %v2316_v26  ;;  %v2387_v11 = vld [vmem:[%s3463_s1 + $0x360] ss:$8 sps:$4 sm:$0xff]   ;;  %v2393_v15 = vld [vmem:[%s3463_s1 + $0x350] ss:$8 sps:$4 sm:$0xff]   ;;  %v2398_v16 = vld [vmem:[%s3463_s1 + $0x244] ss:$8 sps:$4 sm:$0xff]  }
  0x1c   :  { %1618 = vmatpush1.bf16.msra.mxu1 %v2317_v27  ;;  %1566 = vmatprep.subr.bf16.mxu0 %v2318_v28  ;;  %v2401_v17 = vld [vmem:[%s3463_s1 + $0x344] ss:$8 sps:$4 sm:$0xff]   ;;  %v2396_v18 = vld [vmem:[%s3463_s1 + $0x240] ss:$8 sps:$4 sm:$0xff]   ;;  %v2404_v20 = vld [vmem:[%s3463_s1 + $0x234] ss:$8 sps:$4 sm:$0xff]  }
  0x1d   :  { %1619 = vmatprep.subr.bf16.mxu1 %v2320_v29  ;;  %v2399_v19 = vld [vmem:[%s3463_s1 + $0x340] ss:$8 sps:$4 sm:$0xff]   ;;  %v2407_v21 = vld [vmem:[%s3463_s1 + $0x334] ss:$8 sps:$4 sm:$0xff]   ;;  %v2402_v22 = vld [vmem:[%s3463_s1 + $0x230] ss:$8 sps:$4 sm:$0xff]  }
  0x1e   :  { %v2405_v23 = vld [vmem:[%s3463_s1 + $0x330] ss:$8 sps:$4 sm:$0xff]   ;;  %v2410_v24 = vld [vmem:[%s3463_s1 + $0x224] ss:$8 sps:$4 sm:$0xff]   ;;  %v2458_v27 = vld [vmem:[%s3464_s0 + $0x7c] ss:$56 sps:$4 sm:$0xff]  }
  0x1f   :  { %1567 = vmatpush1.bf16.msra.mxu0 %v2322_v30  ;;  %v2413_v25 = vld [vmem:[%s3463_s1 + $0x324] ss:$8 sps:$4 sm:$0xff]   ;;  %v2460_v28 = vld [vmem:[%s3464_s0 + $0x70] ss:$56 sps:$4 sm:$0xff]   ;;  %v2443_v51 = vld [vmem:[%s3463_s1 + $0x3d4] ss:$8 sps:$4 sm:$0xff]  }
  0x20   :  { %1620 = vmatpush1.bf16.msra.mxu1 %v2323_v31  ;;  %1568 = vmatprep.subr.bf16.mxu0 %v2324_v32  ;;  %v2456_v26 = vld [vmem:[%s3464_s0 + $0x74] ss:$56 sps:$4 sm:$0xff]   ;;  %v2461_v29 = vld [vmem:[%s3464_s0 + $0x78] ss:$56 sps:$4 sm:$0xff]   ;;  %v2408_v30 = vld [vmem:[%s3463_s1 + $0x220] ss:$8 sps:$4 sm:$0xff]  }
  0x21   :  { %1621 = vmatprep.subr.bf16.mxu1 %v2326_v33  ;;  %v2411_v31 = vld [vmem:[%s3463_s1 + $0x320] ss:$8 sps:$4 sm:$0xff]   ;;  %v2416_v32 = vld [vmem:[%s3463_s1 + $0x214] ss:$8 sps:$4 sm:$0xff]  }
  0x22   :  { %v2419_v33 = vld [vmem:[%s3463_s1 + $0x314] ss:$8 sps:$4 sm:$0xff]   ;;  %v2435_v49 = vld [vmem:[%s3463_s1 + $0x3e0] ss:$8 sps:$4 sm:$0xff]  }
  0x23   :  { %1569 = vmatpush2.bf16.msra.mxu0 %v2328_v34  ;;  %v2414_v34 = vld [vmem:[%s3463_s1 + $0x210] ss:$8 sps:$4 sm:$0xff]  }
  0x24   :  { %1622 = vmatpush2.bf16.msra.mxu1 %v2329_v35  ;;  %1570 = vmatprep.subr.bf16.mxu0 %v2330_v36  ;;  %v2417_v35 = vld [vmem:[%s3463_s1 + $0x310] ss:$8 sps:$4 sm:$0xff]   ;;  %v2422_v36 = vld [vmem:[%s3463_s1 + $0x204] ss:$8 sps:$4 sm:$0xff]  }
  0x25   :  { %1623 = vmatprep.subr.bf16.mxu1 %v2332_v37  ;;  %v2425_v37 = vld [vmem:[%s3463_s1 + $0x304] ss:$8 sps:$4 sm:$0xff]  }
  0x27   :  { %1571 = vmatpush2.bf16.msra.mxu0 %v2334_v38  ;;  %v2420_v38 = vld [vmem:[%s3463_s1 + $0x200] ss:$8 sps:$4 sm:$0xff]  }
  0x28   :  { %1624 = vmatpush2.bf16.msra.mxu1 %v2335_v39  ;;  %1572 = vmatprep.subr.bf16.mxu0 %v2336_v40  ;;  %v2423_v39 = vld [vmem:[%s3463_s1 + $0x300] ss:$8 sps:$4 sm:$0xff]   ;;  %v2428_v40 = vld [vmem:[%s3463_s1 + $0x2f4] ss:$8 sps:$4 sm:$0xff]  }
  0x29   :  { %1625 = vmatprep.subr.bf16.mxu1 %v2338_v41  ;;  %v2482_v41 = vld [vmem:[%s3464_s0 + $0x14] ss:$56 sps:$4 sm:$0xff]  }
  0x2b   :  { %1573 = vmatpush2.bf16.msra.mxu0 %v2340_v42  ;;  %v2431_v42 = vld [vmem:[%s3463_s1 + $0x3f4] ss:$8 sps:$4 sm:$0xff]  }
  0x2c   :  { %1626 = vmatpush2.bf16.msra.mxu1 %v2341_v43  ;;  %1574 = vmatprep.subr.bf16.mxu0 %v2342_v44  ;;  %v2485_v43 = vld [vmem:[%s3464_s0 + $0x1c] ss:$56 sps:$4 sm:$0xff]   ;;  %v2426_v44 = vld [vmem:[%s3463_s1 + $0x2f0] ss:$8 sps:$4 sm:$0xff]  }
  0x2d   :  { %1627 = vmatprep.subr.bf16.mxu1 %v2344_v45  ;;  %v2429_v45 = vld [vmem:[%s3463_s1 + $0x3f0] ss:$8 sps:$4 sm:$0xff]  }
  0x2f   :  { %1575 = vmatpush2.bf16.msra.mxu0 %v2346_v46  ;;  %v2434_v46 = vld [vmem:[%s3463_s1 + $0x2e4] ss:$8 sps:$4 sm:$0xff]  }
  0x30   :  { %1628 = vmatpush2.bf16.msra.mxu1 %v2347_v47  ;;  %1576 = vmatprep.subr.bf16.mxu0 %v2348_v48  ;;  %v2437_v47 = vld [vmem:[%s3463_s1 + $0x3e4] ss:$8 sps:$4 sm:$0xff]   ;;  %v2432_v48 = vld [vmem:[%s3463_s1 + $0x2e0] ss:$8 sps:$4 sm:$0xff]  }
  0x31   :  { %1629 = vmatprep.subr.bf16.mxu1 %v2350_v50  ;;  %v2440_v50 = vld [vmem:[%s3463_s1 + $0x2d4] ss:$8 sps:$4 sm:$0xff]  }
  0x33   :  { %1577 = vmatpush2.bf16.msra.mxu0 %v2352_v52  ;;  %v2438_v52 = vld [vmem:[%s3463_s1 + $0x2d0] ss:$8 sps:$4 sm:$0xff]  }
  0x34   :  { %1630 = vmatpush2.bf16.msra.mxu1 %v2353_v53  ;;  %1578 = vmatprep.subr.bf16.mxu0 %v2354_v54  ;;  %v2441_v53 = vld [vmem:[%s3463_s1 + $0x3d0] ss:$8 sps:$4 sm:$0xff]   ;;  %v2446_v54 = vld [vmem:[%s3463_s1 + $0x2c4] ss:$8 sps:$4 sm:$0xff]  }
  0x35   :  { %1631 = vmatprep.subr.bf16.mxu1 %v2356_v55  ;;  %v2449_v55 = vld [vmem:[%s3463_s1 + $0x3c4] ss:$8 sps:$4 sm:$0xff]  }
  0x37   :  { %1579 = vmatpush2.bf16.msra.mxu0 %v2358_v56  ;;  %v2444_v56 = vld [vmem:[%s3463_s1 + $0x2c0] ss:$8 sps:$4 sm:$0xff]  }
  0x38   :  { %1632 = vmatpush2.bf16.msra.mxu1 %v2359_v57  ;;  %1580 = vmatprep.subr.bf16.mxu0 %v2360_v58  ;;  %v2447_v57 = vld [vmem:[%s3463_s1 + $0x3c0] ss:$8 sps:$4 sm:$0xff]   ;;  %v2452_v58 = vld [vmem:[%s3463_s1 + $0x2b4] ss:$8 sps:$4 sm:$0xff]  }
  0x39   :  { %1633 = vmatprep.subr.bf16.mxu1 %v2362_v59  ;;  %v2455_v59 = vld [vmem:[%s3463_s1 + $0x3b4] ss:$8 sps:$4 sm:$0xff]  }
  0x3b   :  { %1581 = vmatpush2.bf16.msra.mxu0 %v2364_v60  ;;  %v2450_v60 = vld [vmem:[%s3463_s1 + $0x2b0] ss:$8 sps:$4 sm:$0xff]  }
  0x3c   :  { %1634 = vmatpush2.bf16.msra.mxu1 %v2365_v61  ;;  %1582 = vmatprep.subr.bf16.mxu0 %v2366_v62  ;;  %v2453_v61 = vld [vmem:[%s3463_s1 + $0x3b0] ss:$8 sps:$4 sm:$0xff]   ;;  %v2464_v62 = vld [vmem:[%s3463_s1 + $0x2a4] ss:$8 sps:$4 sm:$0xff]  }
  0x3d   :  { %1635 = vmatprep.subr.bf16.mxu1 %v2368_v63  ;;  %v2467_v63 = vld [vmem:[%s3463_s1 + $0x3a4] ss:$8 sps:$4 sm:$0xff]  }
  0x3f   :  { %1583 = vmatpush2.bf16.msra.mxu0 %v2370_v0  ;;  %v2462_v0 = vld [vmem:[%s3463_s1 + $0x2a0] ss:$8 sps:$4 sm:$0xff]  }
  0x40   :  { %1636 = vmatpush2.bf16.msra.mxu1 %v2371_v1  ;;  %1658 = vmatprep.subr.bf16.mxu0 %v2380_v2  ;;  %v2465_v1 = vld [vmem:[%s3463_s1 + $0x3a0] ss:$8 sps:$4 sm:$0xff]   ;;  %v2470_v2 = vld [vmem:[%s3463_s1 + $0x294] ss:$8 sps:$4 sm:$0xff]  }
  0x41   :  { %1711 = vmatprep.subr.bf16.mxu1 %v2383_v3  ;;  %v2473_v3 = vld [vmem:[%s3463_s1 + $0x394] ss:$8 sps:$4 sm:$0xff]  }
  0x42   :  { %1585 = vmatmul.mubr.bf16.vlgmr.msra.gmra.mxu0 %v2372_v4  ;;  %v2468_v4 = vld [vmem:[%s3463_s1 + $0x290] ss:$8 sps:$4 sm:$0xff]  }
  0x43   :  { %1638 = vmatmul.mubr.bf16.vlgmr.msra.gmra.mxu1 %v2375_v5  ;;  %1659 = vmatpush1.bf16.msra.mxu0 %v2378_v6  ;;  %v2471_v5 = vld [vmem:[%s3463_s1 + $0x390] ss:$8 sps:$4 sm:$0xff]   ;;  %v2476_v6 = vld [vmem:[%s3463_s1 + $0x284] ss:$8 sps:$4 sm:$0xff]  }
  0x44   :  { %1712 = vmatpush1.bf16.msra.mxu1 %v2381_v7  ;;  %1660 = vmatprep.subr.bf16.mxu0 %v2386_v8  ;;  %v2479_v7 = vld [vmem:[%s3463_s1 + $0x384] ss:$8 sps:$4 sm:$0xff]   ;;  %v2474_v8 = vld [vmem:[%s3463_s1 + $0x280] ss:$8 sps:$4 sm:$0xff]  }
  0x45   :  { %1713 = vmatprep.subr.bf16.mxu1 %v2389_v9  ;;  %1594 = vmatprep.mubr.bf16.mxu0 %v2456_v26  ;;  %v2477_v9 = vld [vmem:[%s3463_s1 + $0x380] ss:$8 sps:$4 sm:$0xff]   ;;  %v2504_v26 = vld [vmem:[%s3463_s1 + $0x550] ss:$8 sps:$4 sm:$0xff]  }
  0x46   :  { %1647 = vmatprep.mubr.bf16.mxu1 %v2458_v27  ;;  %v2509_v27 = vld [vmem:[%s3464_s0 + $0x88] ss:$56 sps:$4 sm:$0xff]  }
  0x47   :  { %1661 = vmatpush1.bf16.msra.mxu0 %v2384_v10  ;;  %v2488_v10 = vld [vmem:[%s3463_s1 + $0x474] ss:$8 sps:$4 sm:$0xff]  }
  0x48   :  { %1714 = vmatpush1.bf16.msra.mxu1 %v2387_v11  ;;  %1662 = vmatprep.subr.bf16.mxu0 %v2392_v12  ;;  %v2491_v11 = vld [vmem:[%s3463_s1 + $0x574] ss:$8 sps:$4 sm:$0xff]   ;;  %v2480_v12 = vld [vmem:[%s3464_s0 + $0x10] ss:$56 sps:$4 sm:$0xff]  }
  0x49   :  { %1715 = vmatprep.subr.bf16.mxu1 %v2395_v13  ;;  %v2483_v13 = vld [vmem:[%s3464_s0 + $0x18] ss:$56 sps:$4 sm:$0xff]  }
  0x4a   :  { %1595 = vmatmul.mubr.bf16.gmra.mxu0 %v2460_v28  ;;  %v2512_v28 = vld [vmem:[%s3463_s1 + $0x444] ss:$8 sps:$4 sm:$0xff]  }
  0x4b   :  { %1663 = vmatpush1.bf16.msra.mxu0 %v2390_v14  ;;  %1648 = vmatmul.mubr.bf16.gmra.mxu1 %v2461_v29  ;;  %v2486_v14 = vld [vmem:[%s3463_s1 + $0x470] ss:$8 sps:$4 sm:$0xff]   ;;  %v2515_v29 = vld [vmem:[%s3463_s1 + $0x544] ss:$8 sps:$4 sm:$0xff]  }
  0x4c   :  { %1716 = vmatpush1.bf16.msra.mxu1 %v2393_v15  ;;  %1664 = vmatprep.subr.bf16.mxu0 %v2398_v16  ;;  %v2489_v15 = vld [vmem:[%s3463_s1 + $0x570] ss:$8 sps:$4 sm:$0xff]   ;;  %v2494_v16 = vld [vmem:[%s3463_s1 + $0x464] ss:$8 sps:$4 sm:$0xff]  }
  0x4d   :  { %1717 = vmatprep.subr.bf16.mxu1 %v2401_v17  ;;  %1690 = vmatprep.mubr.bf16.mxu0 %v2482_v41  ;;  %v2497_v17 = vld [vmem:[%s3463_s1 + $0x564] ss:$8 sps:$4 sm:$0xff]   ;;  %v2525_v41 = vld [vmem:[%s3463_s1 + $0x520] ss:$8 sps:$4 sm:$0xff]  }
  0x4e   :  { %1743 = vmatprep.mubr.bf16.mxu1 %v2485_v43  ;;  %v2533_v43 = vld [vmem:[%s3463_s1 + $0x514] ss:$8 sps:$4 sm:$0xff]  }
  0x4f   :  { %1665 = vmatpush1.bf16.msra.mxu0 %v2396_v18  ;;  %v2498_v18 = vld [vmem:[%s3464_s0 + $0x84] ss:$56 sps:$4 sm:$0xff]  }
  0x50   :  { %1718 = vmatpush1.bf16.msra.mxu1 %v2399_v19  ;;  %1666 = vmatprep.subr.bf16.mxu0 %v2404_v20  ;;  %v2507_v19 = vld [vmem:[%s3464_s0 + $0x8c] ss:$56 sps:$4 sm:$0xff]   ;;  %v2492_v20 = vld [vmem:[%s3463_s1 + $0x460] ss:$8 sps:$4 sm:$0xff]  }
  0x51   :  { %1719 = vmatprep.subr.bf16.mxu1 %v2407_v21  ;;  %v2495_v21 = vld [vmem:[%s3463_s1 + $0x560] ss:$8 sps:$4 sm:$0xff]  }
  0x53   :  { %1667 = vmatpush1.bf16.msra.mxu0 %v2402_v22  ;;  %v2503_v22 = vld [vmem:[%s3463_s1 + $0x454] ss:$8 sps:$4 sm:$0xff]  }
  0x54   :  { %1720 = vmatpush1.bf16.msra.mxu1 %v2405_v23  ;;  %1668 = vmatprep.subr.bf16.mxu0 %v2410_v24  ;;  %v2506_v23 = vld [vmem:[%s3463_s1 + $0x554] ss:$8 sps:$4 sm:$0xff]   ;;  %v2500_v24 = vld [vmem:[%s3464_s0 + $0x80] ss:$56 sps:$4 sm:$0xff]  }
  0x55   :  { %1721 = vmatprep.subr.bf16.mxu1 %v2413_v25  ;;  %v2501_v25 = vld [vmem:[%s3463_s1 + $0x450] ss:$8 sps:$4 sm:$0xff]  }
  0x57   :  { %1669 = vmatpush1.bf16.msra.mxu0 %v2408_v30  ;;  %v2510_v30 = vld [vmem:[%s3463_s1 + $0x440] ss:$8 sps:$4 sm:$0xff]  }
  0x58   :  { %1722 = vmatpush1.bf16.msra.mxu1 %v2411_v31  ;;  %1670 = vmatprep.subr.bf16.mxu0 %v2416_v32  ;;  %v2513_v31 = vld [vmem:[%s3463_s1 + $0x540] ss:$8 sps:$4 sm:$0xff]   ;;  %v2518_v32 = vld [vmem:[%s3463_s1 + $0x434] ss:$8 sps:$4 sm:$0xff]  }
  0x59   :  { %1723 = vmatprep.subr.bf16.mxu1 %v2419_v33  ;;  %v2590_v33 = vld [vmem:[%s3464_s0 + $0x24] ss:$56 sps:$4 sm:$0xff]  }
  0x5b   :  { %1671 = vmatpush1.bf16.msra.mxu0 %v2414_v34  ;;  %v2521_v34 = vld [vmem:[%s3463_s1 + $0x534] ss:$8 sps:$4 sm:$0xff]  }
  0x5c   :  { %1724 = vmatpush1.bf16.msra.mxu1 %v2417_v35  ;;  %1672 = vmatprep.subr.bf16.mxu0 %v2422_v36  ;;  %v2593_v35 = vld [vmem:[%s3464_s0 + $0x2c] ss:$56 sps:$4 sm:$0xff]   ;;  %v2516_v36 = vld [vmem:[%s3463_s1 + $0x430] ss:$8 sps:$4 sm:$0xff]  }
  0x5d   :  { %1725 = vmatprep.subr.bf16.mxu1 %v2425_v37  ;;  %v2519_v37 = vld [vmem:[%s3463_s1 + $0x530] ss:$8 sps:$4 sm:$0xff]  }
  0x5f   :  { %1673 = vmatpush1.bf16.msra.mxu0 %v2420_v38  ;;  %v2524_v38 = vld [vmem:[%s3463_s1 + $0x424] ss:$8 sps:$4 sm:$0xff]  }
  0x60   :  { %1726 = vmatpush1.bf16.msra.mxu1 %v2423_v39  ;;  %1674 = vmatprep.subr.bf16.mxu0 %v2428_v40  ;;  %v2527_v39 = vld [vmem:[%s3463_s1 + $0x524] ss:$8 sps:$4 sm:$0xff]   ;;  %v2522_v40 = vld [vmem:[%s3463_s1 + $0x420] ss:$8 sps:$4 sm:$0xff]  }
  0x61   :  { %1727 = vmatprep.subr.bf16.mxu1 %v2431_v42  ;;  %v2530_v42 = vld [vmem:[%s3463_s1 + $0x414] ss:$8 sps:$4 sm:$0xff]  }
  0x63   :  { %1675 = vmatpush2.bf16.msra.mxu0 %v2426_v44  ;;  %v2528_v44 = vld [vmem:[%s3463_s1 + $0x410] ss:$8 sps:$4 sm:$0xff]  }
  0x64   :  { %1728 = vmatpush2.bf16.msra.mxu1 %v2429_v45  ;;  %1676 = vmatprep.subr.bf16.mxu0 %v2434_v46  ;;  %v2531_v45 = vld [vmem:[%s3463_s1 + $0x510] ss:$8 sps:$4 sm:$0xff]   ;;  %v2536_v46 = vld [vmem:[%s3463_s1 + $0x404] ss:$8 sps:$4 sm:$0xff]  }
  0x65   :  { %1729 = vmatprep.subr.bf16.mxu1 %v2437_v47  ;;  %v2539_v47 = vld [vmem:[%s3463_s1 + $0x504] ss:$8 sps:$4 sm:$0xff]  }
  0x67   :  { %1677 = vmatpush2.bf16.msra.mxu0 %v2432_v48  ;;  %v2534_v48 = vld [vmem:[%s3463_s1 + $0x400] ss:$8 sps:$4 sm:$0xff]  }
  0x68   :  { %1730 = vmatpush2.bf16.msra.mxu1 %v2435_v49  ;;  %1678 = vmatprep.subr.bf16.mxu0 %v2440_v50  ;;  %v2537_v49 = vld [vmem:[%s3463_s1 + $0x500] ss:$8 sps:$4 sm:$0xff]   ;;  %v2542_v50 = vld [vmem:[%s3463_s1 + $0x4f4] ss:$8 sps:$4 sm:$0xff]  }
  0x69   :  { %1731 = vmatprep.subr.bf16.mxu1 %v2443_v51  ;;  %v2545_v51 = vld [vmem:[%s3463_s1 + $0x5f4] ss:$8 sps:$4 sm:$0xff]  }
  0x6b   :  { %1679 = vmatpush2.bf16.msra.mxu0 %v2438_v52  ;;  %v2540_v52 = vld [vmem:[%s3463_s1 + $0x4f0] ss:$8 sps:$4 sm:$0xff]  }
  0x6c   :  { %1732 = vmatpush2.bf16.msra.mxu1 %v2441_v53  ;;  %1680 = vmatprep.subr.bf16.mxu0 %v2446_v54  ;;  %v2543_v53 = vld [vmem:[%s3463_s1 + $0x5f0] ss:$8 sps:$4 sm:$0xff]   ;;  %v2548_v54 = vld [vmem:[%s3463_s1 + $0x4e4] ss:$8 sps:$4 sm:$0xff]  }
  0x6d   :  { %1733 = vmatprep.subr.bf16.mxu1 %v2449_v55  ;;  %v2551_v55 = vld [vmem:[%s3463_s1 + $0x5e4] ss:$8 sps:$4 sm:$0xff]  }
  0x6f   :  { %1681 = vmatpush2.bf16.msra.mxu0 %v2444_v56  ;;  %v2546_v56 = vld [vmem:[%s3463_s1 + $0x4e0] ss:$8 sps:$4 sm:$0xff]  }
  0x70   :  { %1734 = vmatpush2.bf16.msra.mxu1 %v2447_v57  ;;  %1682 = vmatprep.subr.bf16.mxu0 %v2452_v58  ;;  %v2549_v57 = vld [vmem:[%s3463_s1 + $0x5e0] ss:$8 sps:$4 sm:$0xff]   ;;  %v2554_v58 = vld [vmem:[%s3463_s1 + $0x4d4] ss:$8 sps:$4 sm:$0xff]  }
  0x71   :  { %1735 = vmatprep.subr.bf16.mxu1 %v2455_v59  ;;  %v2557_v59 = vld [vmem:[%s3463_s1 + $0x5d4] ss:$8 sps:$4 sm:$0xff]  }
  0x73   :  { %1683 = vmatpush2.bf16.msra.mxu0 %v2450_v60  ;;  %v2552_v60 = vld [vmem:[%s3463_s1 + $0x4d0] ss:$8 sps:$4 sm:$0xff]  }
  0x74   :  { %1736 = vmatpush2.bf16.msra.mxu1 %v2453_v61  ;;  %1684 = vmatprep.subr.bf16.mxu0 %v2464_v62  ;;  %v2555_v61 = vld [vmem:[%s3463_s1 + $0x5d0] ss:$8 sps:$4 sm:$0xff]   ;;  %v2560_v62 = vld [vmem:[%s3463_s1 + $0x4c4] ss:$8 sps:$4 sm:$0xff]  }
  0x75   :  { %1737 = vmatprep.subr.bf16.mxu1 %v2467_v63  ;;  %v2563_v63 = vld [vmem:[%s3463_s1 + $0x5c4] ss:$8 sps:$4 sm:$0xff]  }
  0x77   :  { %1685 = vmatpush2.bf16.msra.mxu0 %v2462_v0  ;;  %v2558_v0 = vld [vmem:[%s3463_s1 + $0x4c0] ss:$8 sps:$4 sm:$0xff]  }
  0x78   :  { %1738 = vmatpush2.bf16.msra.mxu1 %v2465_v1  ;;  %1686 = vmatprep.subr.bf16.mxu0 %v2470_v2  ;;  %v2561_v1 = vld [vmem:[%s3463_s1 + $0x5c0] ss:$8 sps:$4 sm:$0xff]   ;;  %v2566_v2 = vld [vmem:[%s3463_s1 + $0x4b4] ss:$8 sps:$4 sm:$0xff]  }
  0x79   :  { %1739 = vmatprep.subr.bf16.mxu1 %v2473_v3  ;;  %v2569_v3 = vld [vmem:[%s3463_s1 + $0x5b4] ss:$8 sps:$4 sm:$0xff]  }
  0x7b   :  { %1687 = vmatpush2.bf16.msra.mxu0 %v2468_v4  ;;  %v2564_v4 = vld [vmem:[%s3463_s1 + $0x4b0] ss:$8 sps:$4 sm:$0xff]  }
  0x7c   :  { %1740 = vmatpush2.bf16.msra.mxu1 %v2471_v5  ;;  %1688 = vmatprep.subr.bf16.mxu0 %v2476_v6  ;;  %v2567_v5 = vld [vmem:[%s3463_s1 + $0x5b0] ss:$8 sps:$4 sm:$0xff]   ;;  %v2572_v6 = vld [vmem:[%s3463_s1 + $0x4a4] ss:$8 sps:$4 sm:$0xff]  }
  0x7d   :  { %1741 = vmatprep.subr.bf16.mxu1 %v2479_v7  ;;  %v2575_v7 = vld [vmem:[%s3463_s1 + $0x5a4] ss:$8 sps:$4 sm:$0xff]  }
  0x7f   :  { %1689 = vmatpush2.bf16.msra.mxu0 %v2474_v8  ;;  %v2570_v8 = vld [vmem:[%s3463_s1 + $0x4a0] ss:$8 sps:$4 sm:$0xff]  }
  0x80   :  { %1742 = vmatpush2.bf16.msra.mxu1 %v2477_v9  ;;  %1764 = vmatprep.subr.bf16.mxu0 %v2488_v10  ;;  %v2573_v9 = vld [vmem:[%s3463_s1 + $0x5a0] ss:$8 sps:$4 sm:$0xff]   ;;  %v2578_v10 = vld [vmem:[%s3463_s1 + $0x494] ss:$8 sps:$4 sm:$0xff]  }
  0x81   :  { %1817 = vmatprep.subr.bf16.mxu1 %v2491_v11  ;;  %v2581_v11 = vld [vmem:[%s3463_s1 + $0x594] ss:$8 sps:$4 sm:$0xff]  }
  0x82   :  { %1691 = vmatmul.mubr.bf16.vlgmr.msra.gmra.mxu0 %v2480_v12  ;;  %v2576_v12 = vld [vmem:[%s3463_s1 + $0x490] ss:$8 sps:$4 sm:$0xff]  }
  0x83   :  { %1744 = vmatmul.mubr.bf16.vlgmr.msra.gmra.mxu1 %v2483_v13  ;;  %1765 = vmatpush1.bf16.msra.mxu0 %v2486_v14  ;;  %v2579_v13 = vld [vmem:[%s3463_s1 + $0x590] ss:$8 sps:$4 sm:$0xff]   ;;  %v2584_v14 = vld [vmem:[%s3463_s1 + $0x484] ss:$8 sps:$4 sm:$0xff]  }
  0x84   :  { %1818 = vmatpush1.bf16.msra.mxu1 %v2489_v15  ;;  %1766 = vmatprep.subr.bf16.mxu0 %v2494_v16  ;;  %v2587_v15 = vld [vmem:[%s3463_s1 + $0x584] ss:$8 sps:$4 sm:$0xff]   ;;  %v2582_v16 = vld [vmem:[%s3463_s1 + $0x480] ss:$8 sps:$4 sm:$0xff]  }
  0x85   :  { %1819 = vmatprep.subr.bf16.mxu1 %v2497_v17  ;;  %1700 = vmatprep.mubr.bf16.mxu0 %v2498_v18  ;;  %v2585_v17 = vld [vmem:[%s3463_s1 + $0x580] ss:$8 sps:$4 sm:$0xff]   ;;  %v2596_v18 = vld [vmem:[%s3463_s1 + $0x674] ss:$8 sps:$4 sm:$0xff]  }
  0x86   :  { %1753 = vmatprep.mubr.bf16.mxu1 %v2507_v19  ;;  %v2588_v19 = vld [vmem:[%s3464_s0 + $0x20] ss:$56 sps:$4 sm:$0xff]  }
  0x87   :  { %1767 = vmatpush1.bf16.msra.mxu0 %v2492_v20  ;;  %v2591_v20 = vld [vmem:[%s3464_s0 + $0x28] ss:$56 sps:$4 sm:$0xff]  }
  0x88   :  { %1820 = vmatpush1.bf16.msra.mxu1 %v2495_v21  ;;  %1768 = vmatprep.subr.bf16.mxu0 %v2503_v22  ;;  %v2594_v21 = vld [vmem:[%s3463_s1 + $0x670] ss:$8 sps:$4 sm:$0xff]   ;;  %v2599_v22 = vld [vmem:[%s3463_s1 + $0x664] ss:$8 sps:$4 sm:$0xff]  }
  0x89   :  { %1821 = vmatprep.subr.bf16.mxu1 %v2506_v23  ;;  %v2600_v23 = vld [vmem:[%s3464_s0 + $0x94] ss:$56 sps:$4 sm:$0xff]  }
  0x8a   :  { %1701 = vmatmul.mubr.bf16.gmra.mxu0 %v2500_v24  ;;  %v2606_v24 = vld [vmem:[%s3464_s0 + $0x9c] ss:$56 sps:$4 sm:$0xff]  }
  0x8b   :  { %1754 = vmatmul.mubr.bf16.gmra.mxu1 %v2509_v27  ;;  %1769 = vmatpush1.bf16.msra.mxu0 %v2501_v25  ;;  %v2597_v25 = vld [vmem:[%s3463_s1 + $0x660] ss:$8 sps:$4 sm:$0xff]  }
  0x8c   :  { %1822 = vmatpush1.bf16.msra.mxu1 %v2504_v26  ;;  %1770 = vmatprep.subr.bf16.mxu0 %v2512_v28  ;;  %v2605_v26 = vld [vmem:[%s3463_s1 + $0x654] ss:$8 sps:$4 sm:$0xff]   ;;  %v2602_v27 = vld [vmem:[%s3464_s0 + $0x90] ss:$56 sps:$4 sm:$0xff]  }
  0x8d   :  { %1823 = vmatprep.subr.bf16.mxu1 %v2515_v29  ;;  %1796 = vmatprep.mubr.bf16.mxu0 %v2590_v33  ;;  %v2608_v28 = vld [vmem:[%s3464_s0 + $0x98] ss:$56 sps:$4 sm:$0xff]   ;;  %v2609_v33 = vld [vmem:[%s3463_s1 + $0x640] ss:$8 sps:$4 sm:$0xff]  }
  0x8e   :  { %1849 = vmatprep.mubr.bf16.mxu1 %v2593_v35  ;;  %v2603_v29 = vld [vmem:[%s3463_s1 + $0x650] ss:$8 sps:$4 sm:$0xff]  }
  0x8f   :  { %1771 = vmatpush1.bf16.msra.mxu0 %v2510_v30  ;;  %v2611_v30 = vld [vmem:[%s3463_s1 + $0x644] ss:$8 sps:$4 sm:$0xff]   ;;  %v2612_v35 = vld [vmem:[%s3463_s1 + $0x630] ss:$8 sps:$4 sm:$0xff]  }
  0x90   :  { %1824 = vmatpush1.bf16.msra.mxu1 %v2513_v31  ;;  %1772 = vmatprep.subr.bf16.mxu0 %v2518_v32  ;;  %v2650_v31 = vld [vmem:[%s3464_s0 + $0x34] ss:$56 sps:$4 sm:$0xff]   ;;  %v2653_v32 = vld [vmem:[%s3464_s0 + $0xa4] ss:$56 sps:$4 sm:$0xff]  }
  0x91   :  { %1825 = vmatprep.subr.bf16.mxu1 %v2521_v34  ;;  %v2614_v34 = vld [vmem:[%s3463_s1 + $0x634] ss:$8 sps:$4 sm:$0xff]  }
  0x93   :  { %1773 = vmatpush1.bf16.msra.mxu0 %v2516_v36  ;;  %v2617_v36 = vld [vmem:[%s3463_s1 + $0x624] ss:$8 sps:$4 sm:$0xff]  }
  0x94   :  { %1826 = vmatpush1.bf16.msra.mxu1 %v2519_v37  ;;  %1774 = vmatprep.subr.bf16.mxu0 %v2524_v38  ;;  %v2615_v37 = vld [vmem:[%s3463_s1 + $0x620] ss:$8 sps:$4 sm:$0xff]   ;;  %v2620_v38 = vld [vmem:[%s3463_s1 + $0x614] ss:$8 sps:$4 sm:$0xff]  }
  0x95   :  { %1827 = vmatprep.subr.bf16.mxu1 %v2527_v39  ;;  %v2618_v39 = vld [vmem:[%s3463_s1 + $0x610] ss:$8 sps:$4 sm:$0xff]  }
  0x97   :  { %1775 = vmatpush1.bf16.msra.mxu0 %v2522_v40  ;;  %v2623_v40 = vld [vmem:[%s3463_s1 + $0x604] ss:$8 sps:$4 sm:$0xff]  }
  0x98   :  { %1828 = vmatpush1.bf16.msra.mxu1 %v2525_v41  ;;  %1776 = vmatprep.subr.bf16.mxu0 %v2530_v42  ;;  %v2621_v41 = vld [vmem:[%s3463_s1 + $0x600] ss:$8 sps:$4 sm:$0xff]   ;;  %v2626_v42 = vld [vmem:[%s3463_s1 + $0x6f4] ss:$8 sps:$4 sm:$0xff]  }
  0x99   :  { %1829 = vmatprep.subr.bf16.mxu1 %v2533_v43  ;;  %v2624_v43 = vld [vmem:[%s3463_s1 + $0x6f0] ss:$8 sps:$4 sm:$0xff]  }
  0x9b   :  { %1777 = vmatpush1.bf16.msra.mxu0 %v2528_v44  ;;  %v2629_v44 = vld [vmem:[%s3463_s1 + $0x6e4] ss:$8 sps:$4 sm:$0xff]  }
  0x9c   :  { %1830 = vmatpush1.bf16.msra.mxu1 %v2531_v45  ;;  %1778 = vmatprep.subr.bf16.mxu0 %v2536_v46  ;;  %v2627_v45 = vld [vmem:[%s3463_s1 + $0x6e0] ss:$8 sps:$4 sm:$0xff]   ;;  %v2632_v46 = vld [vmem:[%s3463_s1 + $0x6d4] ss:$8 sps:$4 sm:$0xff]  }
  0x9d   :  { %1831 = vmatprep.subr.bf16.mxu1 %v2539_v47  ;;  %v2630_v47 = vld [vmem:[%s3463_s1 + $0x6d0] ss:$8 sps:$4 sm:$0xff]  }
  0x9f   :  { %1779 = vmatpush1.bf16.msra.mxu0 %v2534_v48  ;;  %v2635_v48 = vld [vmem:[%s3463_s1 + $0x6c4] ss:$8 sps:$4 sm:$0xff]  }
  0xa0   :  { %1832 = vmatpush1.bf16.msra.mxu1 %v2537_v49  ;;  %1780 = vmatprep.subr.bf16.mxu0 %v2542_v50  ;;  %v2633_v49 = vld [vmem:[%s3463_s1 + $0x6c0] ss:$8 sps:$4 sm:$0xff]   ;;  %v2638_v50 = vld [vmem:[%s3463_s1 + $0x6b4] ss:$8 sps:$4 sm:$0xff]  }
  0xa1   :  { %1833 = vmatprep.subr.bf16.mxu1 %v2545_v51  ;;  %v2636_v51 = vld [vmem:[%s3463_s1 + $0x6b0] ss:$8 sps:$4 sm:$0xff]  }
  0xa3   :  { %1781 = vmatpush2.bf16.msra.mxu0 %v2540_v52  ;;  %v2641_v52 = vld [vmem:[%s3463_s1 + $0x6a4] ss:$8 sps:$4 sm:$0xff]  }
  0xa4   :  { %1834 = vmatpush2.bf16.msra.mxu1 %v2543_v53  ;;  %1782 = vmatprep.subr.bf16.mxu0 %v2548_v54  ;;  %v2639_v53 = vld [vmem:[%s3463_s1 + $0x6a0] ss:$8 sps:$4 sm:$0xff]   ;;  %v2644_v54 = vld [vmem:[%s3463_s1 + $0x694] ss:$8 sps:$4 sm:$0xff]  }
  0xa5   :  { %1835 = vmatprep.subr.bf16.mxu1 %v2551_v55  ;;  %v2642_v55 = vld [vmem:[%s3463_s1 + $0x690] ss:$8 sps:$4 sm:$0xff]  }
  0xa7   :  { %1783 = vmatpush2.bf16.msra.mxu0 %v2546_v56  ;;  %v2647_v56 = vld [vmem:[%s3463_s1 + $0x684] ss:$8 sps:$4 sm:$0xff]  }
  0xa8   :  { %1836 = vmatpush2.bf16.msra.mxu1 %v2549_v57  ;;  %1784 = vmatprep.subr.bf16.mxu0 %v2554_v58  ;;  %v2645_v57 = vld [vmem:[%s3463_s1 + $0x680] ss:$8 sps:$4 sm:$0xff]  }
  0xa9   :  { %1837 = vmatprep.subr.bf16.mxu1 %v2557_v59  ;;  %v2648_v58 = vld [vmem:[%s3464_s0 + $0x30] ss:$56 sps:$4 sm:$0xff]   ;;  %v2651_v59 = vld [vmem:[%s3464_s0 + $0xa0] ss:$56 sps:$4 sm:$0xff]  }
  0xab   :  { %1785 = vmatpush2.bf16.msra.mxu0 %v2552_v60 }
  0xac   :  { %1838 = vmatpush2.bf16.msra.mxu1 %v2555_v61  ;;  %1786 = vmatprep.subr.bf16.mxu0 %v2560_v62 }
  0xad   :  { %1839 = vmatprep.subr.bf16.mxu1 %v2563_v63 }
  0xaf   :  { %1787 = vmatpush2.bf16.msra.mxu0 %v2558_v0 }
  0xb0   :  { %1840 = vmatpush2.bf16.msra.mxu1 %v2561_v1  ;;  %1788 = vmatprep.subr.bf16.mxu0 %v2566_v2 }
  0xb1   :  { %1841 = vmatprep.subr.bf16.mxu1 %v2569_v3 }
  0xb3   :  { %1789 = vmatpush2.bf16.msra.mxu0 %v2564_v4 }
  0xb4   :  { %1842 = vmatpush2.bf16.msra.mxu1 %v2567_v5  ;;  %1790 = vmatprep.subr.bf16.mxu0 %v2572_v6 }
  0xb5   :  { %1843 = vmatprep.subr.bf16.mxu1 %v2575_v7 }
  0xb7   :  { %1791 = vmatpush2.bf16.msra.mxu0 %v2570_v8 }
  0xb8   :  { %1844 = vmatpush2.bf16.msra.mxu1 %v2573_v9  ;;  %1792 = vmatprep.subr.bf16.mxu0 %v2578_v10 }
  0xb9   :  { %1845 = vmatprep.subr.bf16.mxu1 %v2581_v11 }
  0xbb   :  { %1793 = vmatpush2.bf16.msra.mxu0 %v2576_v12 }
  0xbc   :  { %1846 = vmatpush2.bf16.msra.mxu1 %v2579_v13  ;;  %1794 = vmatprep.subr.bf16.mxu0 %v2584_v14 }
  0xbd   :  { %1847 = vmatprep.subr.bf16.mxu1 %v2587_v15 }
  0xbf   :  { %1795 = vmatpush2.bf16.msra.mxu0 %v2582_v16 }
  0xc0   :  { %1848 = vmatpush2.bf16.msra.mxu1 %v2585_v17  ;;  %1870 = vmatprep.subr.bf16.mxu0 %v2596_v18 }
  0xc1   :  { %2244 = vmatprep.subr.bf16.mxu1 %v2596_v18 }
  0xc2   :  { %1797 = vmatmul.mubr.bf16.vlgmr.msra.gmra.mxu0 %v2588_v19 }
  0xc3   :  { %1850 = vmatmul.mubr.bf16.vlgmr.msra.gmra.mxu1 %v2591_v20  ;;  %1871 = vmatpush1.bf16.msra.mxu0 %v2594_v21 }
  0xc4   :  { %2260 = vmatpush1.bf16.msra.mxu1 %v2594_v21  ;;  %1872 = vmatprep.subr.bf16.mxu0 %v2599_v22 }
  0xc5   :  { %2245 = vmatprep.subr.bf16.mxu1 %v2599_v22  ;;  %1806 = vmatprep.mubr.bf16.mxu0 %v2600_v23 }
  0xc6   :  { %1859 = vmatprep.mubr.bf16.mxu1 %v2606_v24 }
  0xc7   :  { %1873 = vmatpush1.bf16.msra.mxu0 %v2597_v25 }
  0xc8   :  { %2261 = vmatpush1.bf16.msra.mxu1 %v2597_v25  ;;  %1874 = vmatprep.subr.bf16.mxu0 %v2605_v26 }
  0xc9   :  { %2246 = vmatprep.subr.bf16.mxu1 %v2605_v26 }
  0xca   :  { %1807 = vmatmul.mubr.bf16.gmra.mxu0 %v2602_v27 }
  0xcb   :  { %1860 = vmatmul.mubr.bf16.gmra.mxu1 %v2608_v28  ;;  %1875 = vmatpush1.bf16.msra.mxu0 %v2603_v29 }
  0xcc   :  { %2262 = vmatpush1.bf16.msra.mxu1 %v2603_v29  ;;  %1876 = vmatprep.subr.bf16.mxu0 %v2611_v30 }
  0xcd   :  { %2247 = vmatprep.subr.bf16.mxu1 %v2611_v30  ;;  %1902 = vmatprep.mubr.bf16.mxu0 %v2650_v31 }
  0xce   :  { %1912 = vmatprep.mubr.bf16.mxu1 %v2653_v32 }
  0xcf   :  { %1877 = vmatpush1.bf16.msra.mxu0 %v2609_v33 }
  0xd0   :  { %2263 = vmatpush1.bf16.msra.mxu1 %v2609_v33  ;;  %1878 = vmatprep.subr.bf16.mxu0 %v2614_v34 }
  0xd1   :  { %2248 = vmatprep.subr.bf16.mxu1 %v2614_v34 }
  0xd3   :  { %1879 = vmatpush1.bf16.msra.mxu0 %v2612_v35 }
  0xd4   :  { %2264 = vmatpush1.bf16.msra.mxu1 %v2612_v35  ;;  %1880 = vmatprep.subr.bf16.mxu0 %v2617_v36 }
  0xd5   :  { %2249 = vmatprep.subr.bf16.mxu1 %v2617_v36 }
  0xd7   :  { %1881 = vmatpush1.bf16.msra.mxu0 %v2615_v37 }
  0xd8   :  { %2265 = vmatpush1.bf16.msra.mxu1 %v2615_v37  ;;  %1882 = vmatprep.subr.bf16.mxu0 %v2620_v38  ;;  %v1952_v37 = vlaneseq }
  0xd9   :  { %2250 = vmatprep.subr.bf16.mxu1 %v2620_v38 }
  0xdb   :  { %1883 = vmatpush1.bf16.msra.mxu0 %v2618_v39 }
  0xdc   :  { %2266 = vmatpush1.bf16.msra.mxu1 %v2618_v39  ;;  %1884 = vmatprep.subr.bf16.mxu0 %v2623_v40 }
  0xdd   :  { %2251 = vmatprep.subr.bf16.mxu1 %v2623_v40 }
  0xdf   :  { %1885 = vmatpush1.bf16.msra.mxu0 %v2621_v41 }
  0xe0   :  { %2267 = vmatpush1.bf16.msra.mxu1 %v2621_v41  ;;  %1886 = vmatprep.subr.bf16.mxu0 %v2626_v42 }
  0xe1   :  { %2252 = vmatprep.subr.bf16.mxu1 %v2626_v42 }
  0xe3   :  { %1887 = vmatpush2.bf16.msra.mxu0 %v2624_v43 }
  0xe4   :  { %2268 = vmatpush2.bf16.msra.mxu1 %v2624_v43  ;;  %1888 = vmatprep.subr.bf16.mxu0 %v2629_v44 }
  0xe5   :  { %2253 = vmatprep.subr.bf16.mxu1 %v2629_v44 }
  0xe7   :  { %1889 = vmatpush2.bf16.msra.mxu0 %v2627_v45 }
  0xe8   :  { %2269 = vmatpush2.bf16.msra.mxu1 %v2627_v45  ;;  %1890 = vmatprep.subr.bf16.mxu0 %v2632_v46 }
  0xe9   :  { %2254 = vmatprep.subr.bf16.mxu1 %v2632_v46  ;;  %v1953_v46 = vshrl.u32 %v1952_v37, 7 }
  0xeb   :  { %1891 = vmatpush2.bf16.msra.mxu0 %v2630_v47 }
  0xec   :  { %2270 = vmatpush2.bf16.msra.mxu1 %v2630_v47  ;;  %1892 = vmatprep.subr.bf16.mxu0 %v2635_v48 }
  0xed   :  { %2255 = vmatprep.subr.bf16.mxu1 %v2635_v48 }
  0xef   :  { %1893 = vmatpush2.bf16.msra.mxu0 %v2633_v49 }
  0xf0   :  { %2271 = vmatpush2.bf16.msra.mxu1 %v2633_v49  ;;  %1894 = vmatprep.subr.bf16.mxu0 %v2638_v50 }
  0xf1   :  { %2256 = vmatprep.subr.bf16.mxu1 %v2638_v50 }
  0xf3   :  { %1895 = vmatpush2.bf16.msra.mxu0 %v2636_v51 }
  0xf4   :  { %2272 = vmatpush2.bf16.msra.mxu1 %v2636_v51  ;;  %1896 = vmatprep.subr.bf16.mxu0 %v2641_v52 }
  0xf5   :  { %2257 = vmatprep.subr.bf16.mxu1 %v2641_v52 }
  0xf7   :  { %1897 = vmatpush2.bf16.msra.mxu0 %v2639_v53 }
  0xf8   :  { %2273 = vmatpush2.bf16.msra.mxu1 %v2639_v53  ;;  %1898 = vmatprep.subr.bf16.mxu0 %v2644_v54 }
  0xf9   :  { %2258 = vmatprep.subr.bf16.mxu1 %v2644_v54 }
  0xfb   :  { %1899 = vmatpush2.bf16.msra.mxu0 %v2642_v55 }
  0xfc   :  { %2274 = vmatpush2.bf16.msra.mxu1 %v2642_v55  ;;  %1900 = vmatprep.subr.bf16.mxu0 %v2647_v56 }
  0xfd   :  { %2259 = vmatprep.subr.bf16.mxu1 %v2647_v56 }
  0xff   :  { %1901 = vmatpush2.bf16.msra.mxu0 %v2645_v57 }
 0x100   :  { %2275 = vmatpush2.bf16.msra.mxu1 %v2645_v57  ;;  %v1954_v57 = vsub.s32 0, %v1953_v46 }
 0x102   :  { %1903 = vmatmul.mubr.bf16.vlgmr.msra.gmra.mxu0 %v2648_v58  ;;  %v1586_v60 = vpop.f32.mrf.mxu0  ;;  %v1958_v58 = vsub.s32 1, %v1953_v46 }
 0x103   :  { %1913 = vmatmul.mubr.bf16.vlgmr.msra.gmra.mxu1 %v2651_v59  ;;  %v1639_v62 = vpop.f32.mrf.mxu1 }
 0x104   :  { %v1588_v61 = vpop.f32.mrf.mxu0  ;;  %v1640_v39 = vadd.f32 %v1639_v62, %v1586_v60 }
 0x105   :  { %v1641_v0 = vpop.f32.mrf.mxu1 }
 0x106   :  { %v1590_v63 = vpop.f32.mrf.mxu0  ;;  %v1642_v41 = vadd.f32 %v1641_v0, %v1588_v61 }
 0x107   :  { %v1643_v2 = vpop.f32.mrf.mxu1 }
 0x108   :  { %v1592_v1 = vpop.f32.mrf.mxu0  ;;  %v1644_v50 = vadd.f32 %v1643_v2, %v1590_v63  ;;  %v1950_v63 = vld [vmem:[%s3465_s2] sm:$0x3] }
 0x109   :  { %v1645_v4 = vpop.f32.mrf.mxu1 }
 0x10a   :  { %v1596_v3 = vpop.f32.mrf.mxu0  ;;  %v1646_v51 = vadd.f32 %v1645_v4, %v1592_v1 }
 0x10b   :  { %v1649_v6 = vpop.f32.mrf.mxu1 }
 0x10c   :  { %v1598_v5 = vpop.f32.mrf.mxu0  ;;  %v1650_v40 = vadd.f32 %v1649_v6, %v1596_v3 }
 0x10d   :  { %v1651_v8 = vpop.f32.mrf.mxu1 }
 0x10e   :  { %v1600_v7 = vpop.f32.mrf.mxu0  ;;  %v1652_v42 = vadd.f32 %v1651_v8, %v1598_v5 }
 0x10f   :  { %v1653_v10 = vpop.f32.mrf.mxu1 }
 0x110   :  { %v1602_v9 = vpop.f32.mrf.mxu0  ;;  %v1654_v52 = vadd.f32 %v1653_v10, %v1600_v7 }
 0x111   :  { %v1655_v12 = vpop.f32.mrf.mxu1 }
 0x112   :  { %v1656_v53 = vadd.f32 %v1655_v12, %v1602_v9 }
 0x142   :  { %v1692_v11 = vpop.f32.mrf.mxu0 }
 0x143   :  { %v1745_v14 = vpop.f32.mrf.mxu1  ;;  %v1693_v43 = vadd.f32 %v1692_v11, %v1640_v39 }
 0x144   :  { %v1694_v13 = vpop.f32.mrf.mxu0 }
 0x145   :  { %v1747_v16 = vpop.f32.mrf.mxu1  ;;  %v1695_v48 = vadd.f32 %v1694_v13, %v1642_v41  ;;  %v1746_v54 = vadd.f32 %v1745_v14, %v1693_v43 }
 0x146   :  { %v1696_v15 = vpop.f32.mrf.mxu0 }
 0x147   :  { %v1749_v18 = vpop.f32.mrf.mxu1  ;;  %v1697_v59 = vadd.f32 %v1696_v15, %v1644_v50  ;;  %v1748_v3 = vadd.f32 %v1747_v16, %v1695_v48  ;;  %v1955_v15 = vrot.slane %v1950_v63, %v1954_v57 }
 0x148   :  { %v1698_v17 = vpop.f32.mrf.mxu0 }
 0x149   :  { %v1751_v20 = vpop.f32.mrf.mxu1  ;;  %v1699_v60 = vadd.f32 %v1698_v17, %v1646_v51  ;;  %v1750_v7 = vadd.f32 %v1749_v18, %v1697_v59  ;;  %v1959_v17 = vrot.slane %v1950_v63, %v1958_v58 }
 0x14a   :  { %v1702_v19 = vpop.f32.mrf.mxu0 }
 0x14b   :  { %v1755_v21 = vpop.f32.mrf.mxu1  ;;  %v1703_v44 = vadd.f32 %v1702_v19, %v1650_v40  ;;  %v1752_v9 = vadd.f32 %v1751_v20, %v1699_v60 }
 0x14c   :  { %v1704_v22 = vpop.f32.mrf.mxu0 }
 0x14d   :  { %v1757_v23 = vpop.f32.mrf.mxu1  ;;  %v1705_v49 = vadd.f32 %v1704_v22, %v1652_v42  ;;  %v1756_v55 = vadd.f32 %v1755_v21, %v1703_v44 }
 0x14e   :  { %v1706_v24 = vpop.f32.mrf.mxu0 }
 0x14f   :  { %v1759_v25 = vpop.f32.mrf.mxu1  ;;  %v1707_v61 = vadd.f32 %v1706_v24, %v1654_v52  ;;  %v1758_v5 = vadd.f32 %v1757_v23, %v1705_v49 }
 0x150   :  { %v1708_v26 = vpop.f32.mrf.mxu0 }
 0x151   :  { %v1761_v28 = vpop.f32.mrf.mxu1  ;;  %v1709_v62 = vadd.f32 %v1708_v26, %v1656_v53  ;;  %v1760_v10 = vadd.f32 %v1759_v25, %v1707_v61 }
 0x153   :  { %v1762_v11 = vadd.f32 %v1761_v28, %v1709_v62 }
 0x182   :  { %v1798_v27 = vpop.f32.mrf.mxu0 }
 0x183   :  { %v1851_v29 = vpop.f32.mrf.mxu1  ;;  %v1799_v6 = vadd.f32 %v1798_v27, %v1746_v54 }
 0x184   :  { %v1800_v30 = vpop.f32.mrf.mxu0 }
 0x185   :  { %v1853_v31 = vpop.f32.mrf.mxu1  ;;  %v1801_v1 = vadd.f32 %v1800_v30, %v1748_v3  ;;  %v1852_v13 = vadd.f32 %v1851_v29, %v1799_v6 }
 0x186   :  { %v1802_v32 = vpop.f32.mrf.mxu0 }
 0x187   :  { %v3430_v33 = vpop.f32.mrf.mxu1  ;;  %v1803_v16 = vadd.f32 %v1802_v32, %v1750_v7  ;;  %v1854_v26 = vadd.f32 %v1853_v31, %v1801_v1 }
 0x188   :  { %v1804_v34 = vpop.f32.mrf.mxu0 }
 0x189   :  { %v3432_v35 = vpop.f32.mrf.mxu1  ;;  %v1805_v19 = vadd.f32 %v1804_v34, %v1752_v9  ;;  %v1856_v29 = vadd.f32 %v3430_v33, %v1803_v16 }
 0x18a   :  { %v1808_v36 = vpop.f32.mrf.mxu0 }
 0x18b   :  { %v1861_v38 = vpop.f32.mrf.mxu1  ;;  %v1809_v8 = vadd.f32 %v1808_v36, %v1756_v55 }
 0x18c   :  { %v1810_v45 = vpop.f32.mrf.mxu0 }
 0x18d   :  { %v1863_v47 = vpop.f32.mrf.mxu1  ;;  %v1811_v2 = vadd.f32 %v1810_v45, %v1758_v5  ;;  %v1862_v14 = vadd.f32 %v1861_v38, %v1809_v8  ;;  %v1858_v38 = vadd.f32 %v3432_v35, %v1805_v19 }
 0x18e   :  { %v1812_v56 = vpop.f32.mrf.mxu0 }
 0x18f   :  { %v1865_v0 = vpop.f32.mrf.mxu1  ;;  %v1813_v21 = vadd.f32 %v1812_v56, %v1760_v10  ;;  %v1864_v27 = vadd.f32 %v1863_v47, %v1811_v2 }
 0x190   :  { %v1814_v4 = vpop.f32.mrf.mxu0 }
 0x191   :  { %v1867_v12 = vpop.f32.mrf.mxu1  ;;  %v1815_v22 = vadd.f32 %v1814_v4, %v1762_v11  ;;  %v1866_v32 = vadd.f32 %v1865_v0, %v1813_v21 }
 0x193   :  { %v1868_v34 = vadd.f32 %v1867_v12, %v1815_v22 }
 0x1c2   :  { %v1904_v23 = vpop.f32.mrf.mxu0 }
 0x1c3   :  { %v1914_v24 = vpop.f32.mrf.mxu1  ;;  %v1905_v30 = vadd.f32 %v1904_v23, %v1852_v13 }
 0x1c4   :  { %v1915_v36 = vadd.f32 %v1914_v24, %v1862_v14  ;;  %v1906_v37 = vpop.f32.mrf.mxu0 }
 0x1c5   :  { %v1916_v18 = vpop.f32.mrf.mxu1  ;;  %v1962_v20 = vadd.f32 %v1955_v15, %v1905_v30  ;;  %v1907_v28 = vadd.f32 %v1906_v37, %v1854_v26 }
 0x1c6   :  { %v1966_v25 = vadd.f32 %v1955_v15, %v1915_v36  ;;  %v1917_v39 = vadd.f32 %v1916_v18, %v1864_v27  ;;  %v1908_v40 = vpop.f32.mrf.mxu0 }
 0x1c7   :  { %v1918_v41 = vpop.f32.mrf.mxu1  ;;  %v1970_v42 = vmax.f32 %v1962_v20, 0.0  ;;  %v1963_v31 = vadd.f32 %v1959_v17, %v1907_v28  ;;  %v1909_v45 = vadd.f32 %v1908_v40, %v1856_v29 }
 0x1c8   :  { %v1974_v43 = vmax.f32 %v1966_v25, 0.0  ;;  %v1967_v44 = vadd.f32 %v1959_v17, %v1917_v39  ;;  %v1919_v46 = vadd.f32 %v1918_v41, %v1866_v32  ;;  %v1910_v47 = vpop.f32.mrf.mxu0 }
 0x1c9   :  { %v1920_v48 = vpop.f32.mrf.mxu1  ;;  %1978 = vst [vmem:[%s3466_s3] sm:$0xff] %v1970_v42  ;;  %v1971_v33 = vmax.f32 %v1963_v31, 0.0  ;;  %v1911_v49 = vadd.f32 %v1910_v47, %v1858_v38  ;;  %v1964_v51 = vadd.f32 %v1955_v15, %v1909_v45 }
 0x1ca   :  { %1982 = vst [vmem:[%s3466_s3 + $0x20] sm:$0xff] %v1974_v43  ;;  %v1975_v35 = vmax.f32 %v1967_v44, 0.0  ;;  %v1921_v50 = vadd.f32 %v1920_v48, %v1868_v34  ;;  %v1968_v52 = vadd.f32 %v1955_v15, %v1919_v46 }
 0x1cb   :  { %1979 = vst [vmem:[%s3466_s3 + $0x8] sm:$0xff] %v1971_v33  ;;  %v1965_v53 = vadd.f32 %v1959_v17, %v1911_v49  ;;  %v1972_v55 = vmax.f32 %v1964_v51, 0.0 }
 0x1cc   :  { %1983 = vst [vmem:[%s3466_s3 + $0x28] sm:$0xff] %v1975_v35  ;;  %v1969_v54 = vadd.f32 %v1959_v17, %v1921_v50  ;;  %v1976_v56 = vmax.f32 %v1968_v52, 0.0 }
 0x1cd   :  { %v1973_v57 = vmax.f32 %v1965_v53, 0.0  ;;  %1980 = vst [vmem:[%s3466_s3 + $0x10] sm:$0xff] %v1972_v55 }
 0x1ce   :  { %v1977_v58 = vmax.f32 %v1969_v54, 0.0  ;;  %1984 = vst [vmem:[%s3466_s3 + $0x30] sm:$0xff] %v1976_v56 }
 0x1cf   :  { %1981 = vst [vmem:[%s3466_s3 + $0x18] sm:$0xff] %v1973_v57 }
 0x1d0   :  { %1985 = vst [vmem:[%s3466_s3 + $0x38] sm:$0xff] %v1977_v58 }

// kernel: inception_d_forward.11
= control target key start
LH: loop header
LB: loop body
LE: loop exit
PB: predicated region body
PF: predicated region fallthrough
CT: control target
= control target key end

     0   :  { %vm44_vm0 = vcmask 130048   ;;  %s291_s0 = inlined_call_operand.vmem [shape: f32[9,32,16], index: 0, kind: input, shape index: {}]   ;;  %s292_s1 = inlined_call_operand.vmem [shape: f32[32,16], index: 1, kind: output, shape index: {}]  }
   0x1   :  { %v8_v0 = vld [vmem:[%s291_s0] sm:$0xff]  ;;  %v9_v11 = vld [vmem:[%s291_s0 + $0x8] sm:$0xff]  ;;  %v10_v27 = vld [vmem:[%s291_s0 + $0x10] sm:$0xff] }
   0x2   :  { %v12_v1 = vld [vmem:[%s291_s0 + $0x20] sm:$0xff]  ;;  %v45_v4 = vsel %vm44_vm0, %v8_v0, -inf  ;;  %v13_v12 = vld [vmem:[%s291_s0 + $0x28] sm:$0xff]  ;;  %v62_v16 = vsel %vm44_vm0, %v9_v11, -inf  ;;  %v14_v28 = vld [vmem:[%s291_s0 + $0x30] sm:$0xff]  ;;  %v79_v33 = vsel %vm44_vm0, %v10_v27, -inf }
   0x3   :  { %v16_v2 = vld [vmem:[%s291_s0 + $0x40] sm:$0xff]  ;;  %v46_v5 = vsel %vm44_vm0, %v12_v1, -inf  ;;  %v17_v13 = vld [vmem:[%s291_s0 + $0x48] sm:$0xff]  ;;  %v63_v17 = vsel %vm44_vm0, %v13_v12, -inf  ;;  %v18_v29 = vld [vmem:[%s291_s0 + $0x50] sm:$0xff]  ;;  %v80_v34 = vsel %vm44_vm0, %v14_v28, -inf }
   0x4   :  { %v20_v3 = vld [vmem:[%s291_s0 + $0x60] sm:$0xff]  ;;  %v48_v6 = vsel %vm44_vm0, %v16_v2, -inf  ;;  %v47_v9 = vmax.f32 %v45_v4, %v46_v5  ;;  %v21_v15 = vld [vmem:[%s291_s0 + $0x68] sm:$0xff]  ;;  %v65_v18 = vsel %vm44_vm0, %v17_v13, -inf  ;;  %v64_v23 = vmax.f32 %v62_v16, %v63_v17  ;;  %v22_v32 = vld [vmem:[%s291_s0 + $0x70] sm:$0xff] }
   0x5   :  { %v24_v7 = vld [vmem:[%s291_s0 + $0x80] sm:$0xff]  ;;  %v50_v10 = vsel %vm44_vm0, %v20_v3, -inf  ;;  %v25_v22 = vld [vmem:[%s291_s0 + $0x88] sm:$0xff]  ;;  %v67_v26 = vsel %vm44_vm0, %v21_v15, -inf  ;;  %v82_v35 = vsel %vm44_vm0, %v18_v29, -inf  ;;  %v26_v39 = vld [vmem:[%s291_s0 + $0x90] sm:$0xff]  ;;  %v81_v40 = vmax.f32 %v79_v33, %v80_v34 }
   0x6   :  { %v28_v8 = vld [vmem:[%s291_s0 + $0xa0] sm:$0xff]  ;;  %v49_v14 = vmax.f32 %v47_v9, %v48_v6  ;;  %v52_v21 = vsel %vm44_vm0, %v24_v7, -inf  ;;  %v29_v30 = vld [vmem:[%s291_s0 + $0xa8] sm:$0xff]  ;;  %v66_v31 = vmax.f32 %v64_v23, %v65_v18  ;;  %v69_v38 = vsel %vm44_vm0, %v25_v22, -inf  ;;  %v11_v45 = vld [vmem:[%s291_s0 + $0x18] sm:$0xff] }
   0x7   :  { %v32_v19 = vld [vmem:[%s291_s0 + $0xc0] sm:$0xff]  ;;  %v54_v25 = vsel %vm44_vm0, %v28_v8, -inf  ;;  %v33_v37 = vld [vmem:[%s291_s0 + $0xc8] sm:$0xff]  ;;  %v84_v44 = vsel %vm44_vm0, %v22_v32, -inf  ;;  %v15_v46 = vld [vmem:[%s291_s0 + $0x38] sm:$0xff]  ;;  %v71_v50 = vsel %vm44_vm0, %v29_v30, -inf  ;;  %v83_v52 = vmax.f32 %v81_v40, %v82_v35 }
   0x8   :  { %v36_v20 = vld [vmem:[%s291_s0 + $0xe0] sm:$0xff]  ;;  %v51_v24 = vmax.f32 %v49_v14, %v50_v10  ;;  %v56_v41 = vsel %vm44_vm0, %v32_v19, -inf  ;;  %v68_v43 = vmax.f32 %v66_v31, %v67_v26  ;;  %v19_v47 = vld [vmem:[%s291_s0 + $0x58] sm:$0xff]  ;;  %v30_v51 = vld [vmem:[%s291_s0 + $0xb0] sm:$0xff]  ;;  %v96_v54 = vsel %vm44_vm0, %v11_v45, -inf }
   0x9   :  { %v58_v42 = vsel %vm44_vm0, %v36_v20, -inf  ;;  %v40_v48 = vld [vmem:[%s291_s0 + $0x100] sm:$0xff]  ;;  %v23_v53 = vld [vmem:[%s291_s0 + $0x78] sm:$0xff]  ;;  %v37_v55 = vld [vmem:[%s291_s0 + $0xe8] sm:$0xff]  ;;  %v86_v57 = vsel %vm44_vm0, %v26_v39, -inf  ;;  %v97_v58 = vsel %vm44_vm0, %v15_v46, -inf  ;;  %v85_v63 = vmax.f32 %v83_v52, %v84_v44 }
   0xa   :  { %v53_v36 = vmax.f32 %v51_v24, %v52_v21  ;;  %v70_v56 = vmax.f32 %v68_v43, %v69_v38  ;;  %v99_v59 = vsel %vm44_vm0, %v19_v47, -inf  ;;  %v73_v61 = vsel %vm44_vm0, %v33_v37, -inf  ;;  %v34_v62 = vld [vmem:[%s291_s0 + $0xd0] sm:$0xff]  ;;  %v27_v0 = vld [vmem:[%s291_s0 + $0x98] sm:$0xff]  ;;  %v41_v3 = vld [vmem:[%s291_s0 + $0x108] sm:$0xff] }
   0xb   :  { %v98_v1 = vmax.f32 %v96_v54, %v97_v58  ;;  %v60_v2 = vsel %vm44_vm0, %v40_v48, -inf  ;;  %v88_v5 = vsel %vm44_vm0, %v30_v51, -inf  ;;  %v101_v6 = vsel %vm44_vm0, %v23_v53, -inf  ;;  %v38_v9 = vld [vmem:[%s291_s0 + $0xf0] sm:$0xff]  ;;  %v31_v11 = vld [vmem:[%s291_s0 + $0xb8] sm:$0xff] }
   0xc   :  { %v55_v49 = vmax.f32 %v53_v36, %v54_v25  ;;  %v72_v4 = vmax.f32 %v70_v56, %v71_v50  ;;  %v75_v8 = vsel %vm44_vm0, %v37_v55, -inf  ;;  %v87_v10 = vmax.f32 %v85_v63, %v86_v57  ;;  %v42_v18 = vld [vmem:[%s291_s0 + $0x110] sm:$0xff]  ;;  %v35_v20 = vld [vmem:[%s291_s0 + $0xd8] sm:$0xff] }
   0xd   :  { %v100_v12 = vmax.f32 %v98_v1, %v99_v59  ;;  %v90_v14 = vsel %vm44_vm0, %v34_v62, -inf  ;;  %v103_v15 = vsel %vm44_vm0, %v27_v0, -inf  ;;  %v77_v17 = vsel %vm44_vm0, %v41_v3, -inf  ;;  %v39_v26 = vld [vmem:[%s291_s0 + $0xf8] sm:$0xff] }
   0xe   :  { %v57_v60 = vmax.f32 %v55_v49, %v56_v41  ;;  %v74_v13 = vmax.f32 %v72_v4, %v73_v61  ;;  %v89_v19 = vmax.f32 %v87_v10, %v88_v5  ;;  %v92_v23 = vsel %vm44_vm0, %v38_v9, -inf  ;;  %v43_v32 = vld [vmem:[%s291_s0 + $0x118] sm:$0xff] }
   0xf   :  { %v102_v21 = vmax.f32 %v100_v12, %v101_v6  ;;  %v105_v24 = vsel %vm44_vm0, %v31_v11, -inf  ;;  %v94_v29 = vsel %vm44_vm0, %v42_v18, -inf  ;;  %v107_v30 = vsel %vm44_vm0, %v35_v20, -inf }
  0x10   :  { %v59_v7 = vmax.f32 %v57_v60, %v58_v42  ;;  %v76_v22 = vmax.f32 %v74_v13, %v75_v8  ;;  %v91_v25 = vmax.f32 %v89_v19, %v90_v14  ;;  %v109_v34 = vsel %vm44_vm0, %v39_v26, -inf }
  0x11   :  { %v104_v27 = vmax.f32 %v102_v21, %v103_v15  ;;  %v111_v37 = vsel %vm44_vm0, %v43_v32, -inf }
  0x12   :  { %v61_v16 = vmax.f32 %v59_v7, %v60_v2  ;;  %v78_v28 = vmax.f32 %v76_v22, %v77_v17  ;;  %v93_v31 = vmax.f32 %v91_v25, %v92_v23 }
  0x13   :  { %v106_v33 = vmax.f32 %v104_v27, %v105_v24 }
  0x14   :  { %113 = vst.msk [vmem:[%s292_s1] sm:$0xff] %vm44_vm0, %v61_v16  ;;  %114 = vst.msk [vmem:[%s292_s1 + $0x8] sm:$0xff] %vm44_vm0, %v78_v28  ;;  %v95_v35 = vmax.f32 %v93_v31, %v94_v29 }
  0x15   :  { %v108_v36 = vmax.f32 %v106_v33, %v107_v30 }
  0x16   :  { %115 = vst.msk [vmem:[%s292_s1 + $0x10] sm:$0xff] %vm44_vm0, %v95_v35 }
  0x17   :  { %v110_v38 = vmax.f32 %v108_v36, %v109_v34 }
  0x19   :  { %v112_v39 = vmax.f32 %v110_v38, %v111_v37 }
  0x1b   :  { %116 = vst.msk [vmem:[%s292_s1 + $0x18] sm:$0xff] %vm44_vm0, %v112_v39 }

</bundles_post_ra>
